<compile_context>
chip_gen: v5e
topology: v5e:2x2
jax: 0.10.0
libtpu: 0.0.40
codegen_flags: <defaults>
</compile_context>

<pallas_src>
import jax
import jax.numpy as jnp
from jax.experimental import pallas as pl
from jax.experimental.pallas import tpu as pltpu

HIDDEN = 256
HEAD_LANES = 128   # fused-head matmul width (value/adv/q live in lanes 0..2)
HEAD_ROWS = 8      # sublane rows kept in the transposed (8, B_pad) output
LANES = 128        # batch sits on the lane axis of the transposed output


def _heads_block(x_ref, wx_ref, b1_ref, w2_ref, b2_ref, w3f_ref, b3_ref,
                 whf_ref, whh_ref, bh_ref):
    """Shared compute for one batch tile: returns (TILE_B, 128) f32 fused heads."""
    x = x_ref[...]                                                   # (TB, K) bf16

    # Fused l1 / l3-action matmul: lanes [0:H) = state@W1, [H:2H) = action@W3a
    # (zero-padded rows in wx make both halves exact).
    xw = jnp.dot(x, wx_ref[...], preferred_element_type=jnp.float32)  # (TB, 2H) f32

    # l1 + relu
    h1 = jnp.maximum(xw[:, :HIDDEN] + b1_ref[...], 0.0).astype(jnp.bfloat16)

    # l2 + relu -> feat
    feat = jnp.maximum(
        jnp.dot(h1, w2_ref[...], preferred_element_type=jnp.float32) + b2_ref[...],
        0.0).astype(jnp.bfloat16)

    # l3(cat([feat, action])) + relu
    h3 = jnp.maximum(
        jnp.dot(feat, w3f_ref[...], preferred_element_type=jnp.float32)
        + xw[:, HIDDEN:] + b3_ref[...],
        0.0).astype(jnp.bfloat16)

    # fused heads: lane 0 = value, lane 1 = adv, lane 2 = value + adv (q)
    return (jnp.dot(feat, whf_ref[...], preferred_element_type=jnp.float32)
            + jnp.dot(h3, whh_ref[...], preferred_element_type=jnp.float32)
            + bh_ref[...])                                           # (TB, 128) f32


def _kernel_transposed(x_ref, wx_ref, b1_ref, w2_ref, b2_ref, w3f_ref, b3_ref,
                       whf_ref, whh_ref, bh_ref, out_ref):
    heads = _heads_block(x_ref, wx_ref, b1_ref, w2_ref, b2_ref, w3f_ref, b3_ref,
                         whf_ref, whh_ref, bh_ref)
    # (TB,128) -> (128,TB) on the XLU; keep 8 sublanes: lane-dense (8, TB) store.
    out_ref[...] = jnp.transpose(heads)[:HEAD_ROWS, :]


def _kernel_wide(x_ref, wx_ref, b1_ref, w2_ref, b2_ref, w3f_ref, b3_ref,
                 whf_ref, whh_ref, bh_ref, out_ref):
    out_ref[...] = _heads_block(x_ref, wx_ref, b1_ref, w2_ref, b2_ref, w3f_ref,
                                b3_ref, whf_ref, whh_ref, bh_ref)


def _round_up(x, m):
    return (x + m - 1) // m * m


def _cdiv(a, b):
    return (a + b - 1) // b


def init_params(key, state_dim, action_dim, dtype=jnp.float32):
    """nn.Linear-style init: U(-1/sqrt(fan_in), 1/sqrt(fan_in)); weights stored (in, out)."""
    def linear(k, fan_in, fan_out):
        kw, kb = jax.random.split(k)
        bound = 1.0 / jnp.sqrt(jnp.asarray(fan_in, dtype))
        w = jax.random.uniform(kw, (fan_in, fan_out), dtype, -bound, bound)
        b = jax.random.uniform(kb, (1, fan_out), dtype, -bound, bound)
        return w, b

    k1, k2, kv, k3, ka = jax.random.split(key, 5)
    w1, b1 = linear(k1, state_dim, HIDDEN)
    w2, b2 = linear(k2, HIDDEN, HIDDEN)
    wv, bv = linear(kv, HIDDEN, 1)
    w3, b3 = linear(k3, HIDDEN + action_dim, HIDDEN)
    wa, ba = linear(ka, HIDDEN, 1)
    return dict(w1=w1, b1=b1, w2=w2, b2=b2, wv=wv, bv=bv,
                w3f=w3[:HIDDEN], w3a=w3[HIDDEN:], b3=b3, wa=wa, ba=ba)


def prepare_params(params, state_dim, action_dim):
    """One-time (hoisted out of the forward path) weight packing + bf16 casting."""
    K = state_dim + action_dim

    # Fused x-weight: lanes [0:H) hold W1 on the state rows, lanes [H:2H) hold
    # W3's action rows; the complementary rows are zero so both dots are exact.
    wx = jnp.zeros((K, 2 * HIDDEN), jnp.float32)
    wx = wx.at[:state_dim, :HIDDEN].set(params["w1"])
    wx = wx.at[state_dim:, HIDDEN:].set(params["w3a"])

    # Fused, lane-dense head weights: lane0 <- wv, lane1 <- wa, lane2 <- wv & wa (=> q).
    whf = jnp.zeros((HIDDEN, HEAD_LANES), jnp.float32)
    whf = whf.at[:, 0].set(params["wv"][:, 0]).at[:, 2].set(params["wv"][:, 0])
    whh = jnp.zeros((HIDDEN, HEAD_LANES), jnp.float32)
    whh = whh.at[:, 1].set(params["wa"][:, 0]).at[:, 2].set(params["wa"][:, 0])
    bh = jnp.zeros((1, HEAD_LANES), jnp.float32)
    bh = bh.at[0, 0].set(params["bv"][0, 0]).at[0, 1].set(params["ba"][0, 0])
    bh = bh.at[0, 2].set(params["bv"][0, 0] + params["ba"][0, 0])

    bf16 = lambda a: a.astype(jnp.bfloat16)
    f32 = lambda a: a.astype(jnp.float32)
    prep = dict(
        wx=bf16(wx), b1=f32(params["b1"]),
        w2=bf16(params["w2"]), b2=f32(params["b2"]),
        w3f=bf16(params["w3f"]), b3=f32(params["b3"]),
        whf=bf16(whf), whh=bf16(whh), bh=f32(bh),
    )
    return jax.block_until_ready(prep)


def dueling_critic_forward(state, action, prep, *, tile_b=2048):
    B, state_dim = state.shape
    action_dim = action.shape[1]
    K = state_dim + action_dim
    assert prep["wx"].shape[0] == K, "prepared params do not match input dims"

    # Batch tiling: multiple of 128 (batch sits on the lane axis of the transposed
    # output); cap the tile so the grid has >= 2 steps when the batch allows, so
    # the "parallel" axis spans both v7x TensorCores.
    b_ceil = _round_up(B, LANES)
    tb = min(max(_round_up(tile_b, LANES), LANES), b_ceil)
    if _cdiv(b_ceil, tb) < 2 and b_ceil >= 2 * LANES:
        tb = _round_up(_cdiv(b_ceil, 2), LANES)
    B_pad = _round_up(B, tb)
    grid = (B_pad // tb,)

    # Fused streaming input: concat([state, action]) padded to B_pad, bf16 MXU operand.
    x = jnp.concatenate([state, action], axis=1)
    x = jnp.pad(x, ((0, B_pad - B), (0, 0))).astype(jnp.bfloat16)

    const = lambda shape: pl.BlockSpec(shape, lambda i: (0, 0))   # weight-stationary
    in_specs = [
        pl.BlockSpec((tb, K), lambda i: (i, 0)),                  # streaming activations
        const((K, 2 * HIDDEN)), const((1, HIDDEN)),
        const((HIDDEN, HIDDEN)), const((1, HIDDEN)),
        const((HIDDEN, HIDDEN)), const((1, HIDDEN)),
        const((HIDDEN, HEAD_LANES)), const((HIDDEN, HEAD_LANES)), const((1, HEAD_LANES)),
    ]
    operands = (x, prep["wx"], prep["b1"], prep["w2"], prep["b2"],
                prep["w3f"], prep["b3"], prep["whf"], prep["whh"], prep["bh"])
    cparams = pltpu.CompilerParams(dimension_semantics=("parallel",),
                                   vmem_limit_bytes=32 * 1024 * 1024)

    def run(transposed):
        if transposed:
            out_shape = jax.ShapeDtypeStruct((HEAD_ROWS, B_pad), jnp.float32)
            out_spec = pl.BlockSpec((HEAD_ROWS, tb), lambda i: (0, i))
            kern = _kernel_transposed
        else:
            out_shape = jax.ShapeDtypeStruct((B_pad, HEAD_LANES), jnp.float32)
            out_spec = pl.BlockSpec((tb, HEAD_LANES), lambda i: (i, 0))
            kern = _kernel_wide
        return pl.pallas_call(kern, out_shape=out_shape, grid=grid,
                              in_specs=in_specs, out_specs=out_spec,
                              compiler_params=cparams)(*operands)

    try:
        out = run(True)                 # small (8, B_pad) f32 writeback (16x less HBM)
        res = out[:3, :B].T             # (B, 3): value, adv, q
    except Exception:                   # lowering fallback: proven wide f32 layout
        out = run(False)
        res = out[:B, :3]
    return res[:, 0:1], res[:, 1:2], res[:, 2:3]


def reference_forward(state, action, p):
    """Pure-JAX reference mirroring the kernel numerics (bf16 operands, f32 accumulate)."""
    def mm(a, b):
        return jnp.dot(a.astype(jnp.bfloat16), b.astype(jnp.bfloat16),
                       preferred_element_type=jnp.float32)
    h1 = jnp.maximum(mm(state, p["w1"]) + p["b1"], 0.0)
    feat = jnp.maximum(mm(h1, p["w2"]) + p["b2"], 0.0)
    value = mm(feat, p["wv"]) + p["bv"]
    h3 = jnp.maximum(mm(feat, p["w3f"]) + mm(action, p["w3a"]) + p["b3"], 0.0)
    adv = mm(h3, p["wa"]) + p["ba"]
    return value, adv, value + adv


if __name__ == "__main__":
    state_dim, action_dim, batch = 16, 4, 4
    key = jax.random.PRNGKey(0)
    k_params, k_state, k_action = jax.random.split(key, 3)

    params = init_params(k_params, state_dim, action_dim)
    prep = prepare_params(params, state_dim, action_dim)   # one-time weight packing

    state = jax.random.normal(k_state, (batch, state_dim), jnp.float32)
    action = jax.random.normal(k_action, (batch, action_dim), jnp.float32)

    value, adv, q = dueling_critic_forward(state, action, prep)
    jax.block_until_ready((value, adv, q))

    v_ref, a_ref, q_ref = reference_forward(state, action, params)
    assert value.shape == (batch, 1) and adv.shape == (batch, 1) and q.shape == (batch, 1)
    assert jnp.allclose(value, v_ref, atol=1e-3, rtol=1e-3)
    assert jnp.allclose(adv, a_ref, atol=1e-3, rtol=1e-3)
    assert jnp.allclose(q, q_ref, atol=1e-3, rtol=1e-3)

    print("KERNEL_OK")
</pallas_src>

<mosaic_0001>
module attributes {stable_mosaic.version = 11 : i64} {
  func.func @_kernel_transposed(%arg0: i32, %arg1: memref<128x20xbf16, #tpu.memory_space<vmem>>, %arg2: memref<20x512xbf16, #tpu.memory_space<vmem>>, %arg3: memref<1x256xf32, #tpu.memory_space<vmem>>, %arg4: memref<256x256xbf16, #tpu.memory_space<vmem>>, %arg5: memref<1x256xf32, #tpu.memory_space<vmem>>, %arg6: memref<256x256xbf16, #tpu.memory_space<vmem>>, %arg7: memref<1x256xf32, #tpu.memory_space<vmem>>, %arg8: memref<256x128xbf16, #tpu.memory_space<vmem>>, %arg9: memref<256x128xbf16, #tpu.memory_space<vmem>>, %arg10: memref<1x128xf32, #tpu.memory_space<vmem>>, %arg11: memref<8x128xf32, #tpu.memory_space<vmem>>) attributes {dimension_semantics = [#tpu.dimension_semantics<parallel>], iteration_bounds = array<i64: 1>, scalar_prefetch = 0 : i64, scratch_operands = 0 : i64, tpu.core_type = #tpu.core_type<tc>, window_params = [{transform_indices = @transform_0, window_bounds = array<i64: 128, 20>}, {pipeline_mode = #tpu.pipeline_mode<synchronous>, transform_indices = @transform_1, window_bounds = array<i64: 20, 512>}, {pipeline_mode = #tpu.pipeline_mode<synchronous>, transform_indices = @transform_2, window_bounds = array<i64: 1, 256>}, {pipeline_mode = #tpu.pipeline_mode<synchronous>, transform_indices = @transform_3, window_bounds = array<i64: 256, 256>}, {pipeline_mode = #tpu.pipeline_mode<synchronous>, transform_indices = @transform_4, window_bounds = array<i64: 1, 256>}, {pipeline_mode = #tpu.pipeline_mode<synchronous>, transform_indices = @transform_5, window_bounds = array<i64: 256, 256>}, {pipeline_mode = #tpu.pipeline_mode<synchronous>, transform_indices = @transform_6, window_bounds = array<i64: 1, 256>}, {pipeline_mode = #tpu.pipeline_mode<synchronous>, transform_indices = @transform_7, window_bounds = array<i64: 256, 128>}, {pipeline_mode = #tpu.pipeline_mode<synchronous>, transform_indices = @transform_8, window_bounds = array<i64: 256, 128>}, {pipeline_mode = #tpu.pipeline_mode<synchronous>, transform_indices = @transform_9, window_bounds = array<i64: 1, 128>}, {transform_indices = @transform_10, window_bounds = array<i64: 8, 128>}]} {
    %c0 = arith.constant 0 : index
    %c0_0 = arith.constant 0 : index
    %0 = vector.load %arg1[%c0, %c0_0] : memref<128x20xbf16, #tpu.memory_space<vmem>>, vector<128x20xbf16>
    %c0_1 = arith.constant 0 : index
    %c0_2 = arith.constant 0 : index
    %1 = vector.load %arg2[%c0_1, %c0_2] : memref<20x512xbf16, #tpu.memory_space<vmem>>, vector<20x512xbf16>
    %cst = arith.constant dense<0.000000e+00> : vector<128x512xf32>
    %2 = tpu.matmul %0, %1, %cst {dimension_numbers = #tpu.dot_dimension_numbers<[1], [0], [0], [1], [0, 0, 1, 1], [], []>} : vector<128x20xbf16>, vector<20x512xbf16>, vector<128x512xf32> -> vector<128x512xf32>
    %3 = vector.extract_strided_slice %2 {offsets = [0, 0], sizes = [128, 256], strides = [1, 1]} : vector<128x512xf32> to vector<128x256xf32>
    %c0_3 = arith.constant 0 : index
    %c0_4 = arith.constant 0 : index
    %4 = vector.load %arg3[%c0_3, %c0_4] : memref<1x256xf32, #tpu.memory_space<vmem>>, vector<1x256xf32>
    %5 = vector.broadcast %4 : vector<1x256xf32> to vector<128x256xf32>
    %6 = arith.addf %3, %5 : vector<128x256xf32>
    %cst_5 = arith.constant 0.000000e+00 : f32
    %7 = vector.broadcast %cst_5 : f32 to vector<128x256xf32>
    %8 = arith.maximumf %6, %7 : vector<128x256xf32>
    %9 = arith.truncf %8 : vector<128x256xf32> to vector<128x256xbf16>
    %c0_6 = arith.constant 0 : index
    %c0_7 = arith.constant 0 : index
    %10 = vector.load %arg4[%c0_6, %c0_7] : memref<256x256xbf16, #tpu.memory_space<vmem>>, vector<256x256xbf16>
    %cst_8 = arith.constant dense<0.000000e+00> : vector<128x256xf32>
    %11 = tpu.matmul %9, %10, %cst_8 {dimension_numbers = #tpu.dot_dimension_numbers<[1], [0], [0], [1], [0, 0, 1, 1], [], []>} : vector<128x256xbf16>, vector<256x256xbf16>, vector<128x256xf32> -> vector<128x256xf32>
    %c0_9 = arith.constant 0 : index
    %c0_10 = arith.constant 0 : index
    %12 = vector.load %arg5[%c0_9, %c0_10] : memref<1x256xf32, #tpu.memory_space<vmem>>, vector<1x256xf32>
    %13 = vector.broadcast %12 : vector<1x256xf32> to vector<128x256xf32>
    %14 = arith.addf %11, %13 : vector<128x256xf32>
    %cst_11 = arith.constant 0.000000e+00 : f32
    %15 = vector.broadcast %cst_11 : f32 to vector<128x256xf32>
    %16 = arith.maximumf %14, %15 : vector<128x256xf32>
    %17 = arith.truncf %16 : vector<128x256xf32> to vector<128x256xbf16>
    %c0_12 = arith.constant 0 : index
    %c0_13 = arith.constant 0 : index
    %18 = vector.load %arg6[%c0_12, %c0_13] : memref<256x256xbf16, #tpu.memory_space<vmem>>, vector<256x256xbf16>
    %cst_14 = arith.constant dense<0.000000e+00> : vector<128x256xf32>
    %19 = tpu.matmul %17, %18, %cst_14 {dimension_numbers = #tpu.dot_dimension_numbers<[1], [0], [0], [1], [0, 0, 1, 1], [], []>} : vector<128x256xbf16>, vector<256x256xbf16>, vector<128x256xf32> -> vector<128x256xf32>
    %20 = vector.extract_strided_slice %2 {offsets = [0, 256], sizes = [128, 256], strides = [1, 1]} : vector<128x512xf32> to vector<128x256xf32>
    %21 = arith.addf %19, %20 : vector<128x256xf32>
    %c0_15 = arith.constant 0 : index
    %c0_16 = arith.constant 0 : index
    %22 = vector.load %arg7[%c0_15, %c0_16] : memref<1x256xf32, #tpu.memory_space<vmem>>, vector<1x256xf32>
    %23 = vector.broadcast %22 : vector<1x256xf32> to vector<128x256xf32>
    %24 = arith.addf %21, %23 : vector<128x256xf32>
    %cst_17 = arith.constant 0.000000e+00 : f32
    %25 = vector.broadcast %cst_17 : f32 to vector<128x256xf32>
    %26 = arith.maximumf %24, %25 : vector<128x256xf32>
    %27 = arith.truncf %26 : vector<128x256xf32> to vector<128x256xbf16>
    %c0_18 = arith.constant 0 : index
    %c0_19 = arith.constant 0 : index
    %28 = vector.load %arg8[%c0_18, %c0_19] : memref<256x128xbf16, #tpu.memory_space<vmem>>, vector<256x128xbf16>
    %cst_20 = arith.constant dense<0.000000e+00> : vector<128x128xf32>
    %29 = tpu.matmul %17, %28, %cst_20 {dimension_numbers = #tpu.dot_dimension_numbers<[1], [0], [0], [1], [0, 0, 1, 1], [], []>} : vector<128x256xbf16>, vector<256x128xbf16>, vector<128x128xf32> -> vector<128x128xf32>
    %c0_21 = arith.constant 0 : index
    %c0_22 = arith.constant 0 : index
    %30 = vector.load %arg9[%c0_21, %c0_22] : memref<256x128xbf16, #tpu.memory_space<vmem>>, vector<256x128xbf16>
    %cst_23 = arith.constant dense<0.000000e+00> : vector<128x128xf32>
    %31 = tpu.matmul %27, %30, %cst_23 {dimension_numbers = #tpu.dot_dimension_numbers<[1], [0], [0], [1], [0, 0, 1, 1], [], []>} : vector<128x256xbf16>, vector<256x128xbf16>, vector<128x128xf32> -> vector<128x128xf32>
    %32 = arith.addf %29, %31 : vector<128x128xf32>
    %c0_24 = arith.constant 0 : index
    %c0_25 = arith.constant 0 : index
    %33 = vector.load %arg10[%c0_24, %c0_25] : memref<1x128xf32, #tpu.memory_space<vmem>>, vector<1x128xf32>
    %34 = vector.broadcast %33 : vector<1x128xf32> to vector<128x128xf32>
    %35 = arith.addf %32, %34 : vector<128x128xf32>
    %36 = tpu.transpose %35, [1, 0] : vector<128x128xf32> -> vector<128x128xf32>
    %37 = vector.extract_strided_slice %36 {offsets = [0, 0], sizes = [8, 128], strides = [1, 1]} : vector<128x128xf32> to vector<8x128xf32>
    %c0_26 = arith.constant 0 : index
    %c0_27 = arith.constant 0 : index
    %38 = vector.load %arg11[%c0_26, %c0_27] : memref<8x128xf32, #tpu.memory_space<vmem>>, vector<8x128xf32>
    tpu.vector_store %arg11[%c0_26, %c0_27], %37 {strides = array<i32>} : memref<8x128xf32, #tpu.memory_space<vmem>>, vector<8x128xf32>,
    return
  }
  func.func @transform_0(%arg0: i32) -> (i32, i32) {
    %c0_i32 = arith.constant 0 : i32
    %c0_i32_0 = arith.constant 0 : i32
    return %arg0, %c0_i32 : i32, i32
  }
  func.func @transform_1(%arg0: i32) -> (i32, i32) {
    %c0_i32 = arith.constant 0 : i32
    %c0_i32_0 = arith.constant 0 : i32
    %c0_i32_1 = arith.constant 0 : i32
    return %c0_i32, %c0_i32_0 : i32, i32
  }
  func.func @transform_2(%arg0: i32) -> (i32, i32) {
    %c0_i32 = arith.constant 0 : i32
    %c0_i32_0 = arith.constant 0 : i32
    %c0_i32_1 = arith.constant 0 : i32
    return %c0_i32, %c0_i32_0 : i32, i32
  }
  func.func @transform_3(%arg0: i32) -> (i32, i32) {
    %c0_i32 = arith.constant 0 : i32
    %c0_i32_0 = arith.constant 0 : i32
    %c0_i32_1 = arith.constant 0 : i32
    return %c0_i32, %c0_i32_0 : i32, i32
  }
  func.func @transform_4(%arg0: i32) -> (i32, i32) {
    %c0_i32 = arith.constant 0 : i32
    %c0_i32_0 = arith.constant 0 : i32
    %c0_i32_1 = arith.constant 0 : i32
    return %c0_i32, %c0_i32_0 : i32, i32
  }
  func.func @transform_5(%arg0: i32) -> (i32, i32) {
    %c0_i32 = arith.constant 0 : i32
    %c0_i32_0 = arith.constant 0 : i32
    %c0_i32_1 = arith.constant 0 : i32
    return %c0_i32, %c0_i32_0 : i32, i32
  }
  func.func @transform_6(%arg0: i32) -> (i32, i32) {
    %c0_i32 = arith.constant 0 : i32
    %c0_i32_0 = arith.constant 0 : i32
    %c0_i32_1 = arith.constant 0 : i32
    return %c0_i32, %c0_i32_0 : i32, i32
  }
  func.func @transform_7(%arg0: i32) -> (i32, i32) {
    %c0_i32 = arith.constant 0 : i32
    %c0_i32_0 = arith.constant 0 : i32
    %c0_i32_1 = arith.constant 0 : i32
    return %c0_i32, %c0_i32_0 : i32, i32
  }
  func.func @transform_8(%arg0: i32) -> (i32, i32) {
    %c0_i32 = arith.constant 0 : i32
    %c0_i32_0 = arith.constant 0 : i32
    %c0_i32_1 = arith.constant 0 : i32
    return %c0_i32, %c0_i32_0 : i32, i32
  }
  func.func @transform_9(%arg0: i32) -> (i32, i32) {
    %c0_i32 = arith.constant 0 : i32
    %c0_i32_0 = arith.constant 0 : i32
    %c0_i32_1 = arith.constant 0 : i32
    return %c0_i32, %c0_i32_0 : i32, i32
  }
  func.func @transform_10(%arg0: i32) -> (i32, i32) {
    %c0_i32 = arith.constant 0 : i32
    %c0_i32_0 = arith.constant 0 : i32
    return %c0_i32, %arg0 : i32, i32
  }
}

module attributes {stable_mosaic.version = 11 : i64} {
  func.func @_kernel_wide(%arg0: i32, %arg1: memref<128x20xbf16, #tpu.memory_space<vmem>>, %arg2: memref<20x512xbf16, #tpu.memory_space<vmem>>, %arg3: memref<1x256xf32, #tpu.memory_space<vmem>>, %arg4: memref<256x256xbf16, #tpu.memory_space<vmem>>, %arg5: memref<1x256xf32, #tpu.memory_space<vmem>>, %arg6: memref<256x256xbf16, #tpu.memory_space<vmem>>, %arg7: memref<1x256xf32, #tpu.memory_space<vmem>>, %arg8: memref<256x128xbf16, #tpu.memory_space<vmem>>, %arg9: memref<256x128xbf16, #tpu.memory_space<vmem>>, %arg10: memref<1x128xf32, #tpu.memory_space<vmem>>, %arg11: memref<128x128xf32, #tpu.memory_space<vmem>>) attributes {dimension_semantics = [#tpu.dimension_semantics<parallel>], iteration_bounds = array<i64: 1>, scalar_prefetch = 0 : i64, scratch_operands = 0 : i64, tpu.core_type = #tpu.core_type<tc>, window_params = [{transform_indices = @transform_0, window_bounds = array<i64: 128, 20>}, {pipeline_mode = #tpu.pipeline_mode<synchronous>, transform_indices = @transform_1, window_bounds = array<i64: 20, 512>}, {pipeline_mode = #tpu.pipeline_mode<synchronous>, transform_indices = @transform_2, window_bounds = array<i64: 1, 256>}, {pipeline_mode = #tpu.pipeline_mode<synchronous>, transform_indices = @transform_3, window_bounds = array<i64: 256, 256>}, {pipeline_mode = #tpu.pipeline_mode<synchronous>, transform_indices = @transform_4, window_bounds = array<i64: 1, 256>}, {pipeline_mode = #tpu.pipeline_mode<synchronous>, transform_indices = @transform_5, window_bounds = array<i64: 256, 256>}, {pipeline_mode = #tpu.pipeline_mode<synchronous>, transform_indices = @transform_6, window_bounds = array<i64: 1, 256>}, {pipeline_mode = #tpu.pipeline_mode<synchronous>, transform_indices = @transform_7, window_bounds = array<i64: 256, 128>}, {pipeline_mode = #tpu.pipeline_mode<synchronous>, transform_indices = @transform_8, window_bounds = array<i64: 256, 128>}, {pipeline_mode = #tpu.pipeline_mode<synchronous>, transform_indices = @transform_9, window_bounds = array<i64: 1, 128>}, {transform_indices = @transform_10, window_bounds = array<i64: 128, 128>}]} {
    %c0 = arith.constant 0 : index
    %c0_0 = arith.constant 0 : index
    %0 = vector.load %arg1[%c0, %c0_0] : memref<128x20xbf16, #tpu.memory_space<vmem>>, vector<128x20xbf16>
    %c0_1 = arith.constant 0 : index
    %c0_2 = arith.constant 0 : index
    %1 = vector.load %arg2[%c0_1, %c0_2] : memref<20x512xbf16, #tpu.memory_space<vmem>>, vector<20x512xbf16>
    %cst = arith.constant dense<0.000000e+00> : vector<128x512xf32>
    %2 = tpu.matmul %0, %1, %cst {dimension_numbers = #tpu.dot_dimension_numbers<[1], [0], [0], [1], [0, 0, 1, 1], [], []>} : vector<128x20xbf16>, vector<20x512xbf16>, vector<128x512xf32> -> vector<128x512xf32>
    %3 = vector.extract_strided_slice %2 {offsets = [0, 0], sizes = [128, 256], strides = [1, 1]} : vector<128x512xf32> to vector<128x256xf32>
    %c0_3 = arith.constant 0 : index
    %c0_4 = arith.constant 0 : index
    %4 = vector.load %arg3[%c0_3, %c0_4] : memref<1x256xf32, #tpu.memory_space<vmem>>, vector<1x256xf32>
    %5 = vector.broadcast %4 : vector<1x256xf32> to vector<128x256xf32>
    %6 = arith.addf %3, %5 : vector<128x256xf32>
    %cst_5 = arith.constant 0.000000e+00 : f32
    %7 = vector.broadcast %cst_5 : f32 to vector<128x256xf32>
    %8 = arith.maximumf %6, %7 : vector<128x256xf32>
    %9 = arith.truncf %8 : vector<128x256xf32> to vector<128x256xbf16>
    %c0_6 = arith.constant 0 : index
    %c0_7 = arith.constant 0 : index
    %10 = vector.load %arg4[%c0_6, %c0_7] : memref<256x256xbf16, #tpu.memory_space<vmem>>, vector<256x256xbf16>
    %cst_8 = arith.constant dense<0.000000e+00> : vector<128x256xf32>
    %11 = tpu.matmul %9, %10, %cst_8 {dimension_numbers = #tpu.dot_dimension_numbers<[1], [0], [0], [1], [0, 0, 1, 1], [], []>} : vector<128x256xbf16>, vector<256x256xbf16>, vector<128x256xf32> -> vector<128x256xf32>
    %c0_9 = arith.constant 0 : index
    %c0_10 = arith.constant 0 : index
    %12 = vector.load %arg5[%c0_9, %c0_10] : memref<1x256xf32, #tpu.memory_space<vmem>>, vector<1x256xf32>
    %13 = vector.broadcast %12 : vector<1x256xf32> to vector<128x256xf32>
    %14 = arith.addf %11, %13 : vector<128x256xf32>
    %cst_11 = arith.constant 0.000000e+00 : f32
    %15 = vector.broadcast %cst_11 : f32 to vector<128x256xf32>
    %16 = arith.maximumf %14, %15 : vector<128x256xf32>
    %17 = arith.truncf %16 : vector<128x256xf32> to vector<128x256xbf16>
    %c0_12 = arith.constant 0 : index
    %c0_13 = arith.constant 0 : index
    %18 = vector.load %arg6[%c0_12, %c0_13] : memref<256x256xbf16, #tpu.memory_space<vmem>>, vector<256x256xbf16>
    %cst_14 = arith.constant dense<0.000000e+00> : vector<128x256xf32>
    %19 = tpu.matmul %17, %18, %cst_14 {dimension_numbers = #tpu.dot_dimension_numbers<[1], [0], [0], [1], [0, 0, 1, 1], [], []>} : vector<128x256xbf16>, vector<256x256xbf16>, vector<128x256xf32> -> vector<128x256xf32>
    %20 = vector.extract_strided_slice %2 {offsets = [0, 256], sizes = [128, 256], strides = [1, 1]} : vector<128x512xf32> to vector<128x256xf32>
    %21 = arith.addf %19, %20 : vector<128x256xf32>
    %c0_15 = arith.constant 0 : index
    %c0_16 = arith.constant 0 : index
    %22 = vector.load %arg7[%c0_15, %c0_16] : memref<1x256xf32, #tpu.memory_space<vmem>>, vector<1x256xf32>
    %23 = vector.broadcast %22 : vector<1x256xf32> to vector<128x256xf32>
    %24 = arith.addf %21, %23 : vector<128x256xf32>
    %cst_17 = arith.constant 0.000000e+00 : f32
    %25 = vector.broadcast %cst_17 : f32 to vector<128x256xf32>
    %26 = arith.maximumf %24, %25 : vector<128x256xf32>
    %27 = arith.truncf %26 : vector<128x256xf32> to vector<128x256xbf16>
    %c0_18 = arith.constant 0 : index
    %c0_19 = arith.constant 0 : index
    %28 = vector.load %arg8[%c0_18, %c0_19] : memref<256x128xbf16, #tpu.memory_space<vmem>>, vector<256x128xbf16>
    %cst_20 = arith.constant dense<0.000000e+00> : vector<128x128xf32>
    %29 = tpu.matmul %17, %28, %cst_20 {dimension_numbers = #tpu.dot_dimension_numbers<[1], [0], [0], [1], [0, 0, 1, 1], [], []>} : vector<128x256xbf16>, vector<256x128xbf16>, vector<128x128xf32> -> vector<128x128xf32>
    %c0_21 = arith.constant 0 : index
    %c0_22 = arith.constant 0 : index
    %30 = vector.load %arg9[%c0_21, %c0_22] : memref<256x128xbf16, #tpu.memory_space<vmem>>, vector<256x128xbf16>
    %cst_23 = arith.constant dense<0.000000e+00> : vector<128x128xf32>
    %31 = tpu.matmul %27, %30, %cst_23 {dimension_numbers = #tpu.dot_dimension_numbers<[1], [0], [0], [1], [0, 0, 1, 1], [], []>} : vector<128x256xbf16>, vector<256x128xbf16>, vector<128x128xf32> -> vector<128x128xf32>
    %32 = arith.addf %29, %31 : vector<128x128xf32>
    %c0_24 = arith.constant 0 : index
    %c0_25 = arith.constant 0 : index
    %33 = vector.load %arg10[%c0_24, %c0_25] : memref<1x128xf32, #tpu.memory_space<vmem>>, vector<1x128xf32>
    %34 = vector.broadcast %33 : vector<1x128xf32> to vector<128x128xf32>
    %35 = arith.addf %32, %34 : vector<128x128xf32>
    %c0_26 = arith.constant 0 : index
    %c0_27 = arith.constant 0 : index
    %36 = vector.load %arg11[%c0_26, %c0_27] : memref<128x128xf32, #tpu.memory_space<vmem>>, vector<128x128xf32>
    tpu.vector_store %arg11[%c0_26, %c0_27], %35 {strides = array<i32>} : memref<128x128xf32, #tpu.memory_space<vmem>>, vector<128x128xf32>,
    return
  }
  func.func @transform_0(%arg0: i32) -> (i32, i32) {
    %c0_i32 = arith.constant 0 : i32
    %c0_i32_0 = arith.constant 0 : i32
    return %arg0, %c0_i32 : i32, i32
  }
  func.func @transform_1(%arg0: i32) -> (i32, i32) {
    %c0_i32 = arith.constant 0 : i32
    %c0_i32_0 = arith.constant 0 : i32
    %c0_i32_1 = arith.constant 0 : i32
    return %c0_i32, %c0_i32_0 : i32, i32
  }
  func.func @transform_2(%arg0: i32) -> (i32, i32) {
    %c0_i32 = arith.constant 0 : i32
    %c0_i32_0 = arith.constant 0 : i32
    %c0_i32_1 = arith.constant 0 : i32
    return %c0_i32, %c0_i32_0 : i32, i32
  }
  func.func @transform_3(%arg0: i32) -> (i32, i32) {
    %c0_i32 = arith.constant 0 : i32
    %c0_i32_0 = arith.constant 0 : i32
    %c0_i32_1 = arith.constant 0 : i32
    return %c0_i32, %c0_i32_0 : i32, i32
  }
  func.func @transform_4(%arg0: i32) -> (i32, i32) {
    %c0_i32 = arith.constant 0 : i32
    %c0_i32_0 = arith.constant 0 : i32
    %c0_i32_1 = arith.constant 0 : i32
    return %c0_i32, %c0_i32_0 : i32, i32
  }
  func.func @transform_5(%arg0: i32) -> (i32, i32) {
    %c0_i32 = arith.constant 0 : i32
    %c0_i32_0 = arith.constant 0 : i32
    %c0_i32_1 = arith.constant 0 : i32
    return %c0_i32, %c0_i32_0 : i32, i32
  }
  func.func @transform_6(%arg0: i32) -> (i32, i32) {
    %c0_i32 = arith.constant 0 : i32
    %c0_i32_0 = arith.constant 0 : i32
    %c0_i32_1 = arith.constant 0 : i32
    return %c0_i32, %c0_i32_0 : i32, i32
  }
  func.func @transform_7(%arg0: i32) -> (i32, i32) {
    %c0_i32 = arith.constant 0 : i32
    %c0_i32_0 = arith.constant 0 : i32
    %c0_i32_1 = arith.constant 0 : i32
    return %c0_i32, %c0_i32_0 : i32, i32
  }
  func.func @transform_8(%arg0: i32) -> (i32, i32) {
    %c0_i32 = arith.constant 0 : i32
    %c0_i32_0 = arith.constant 0 : i32
    %c0_i32_1 = arith.constant 0 : i32
    return %c0_i32, %c0_i32_0 : i32, i32
  }
  func.func @transform_9(%arg0: i32) -> (i32, i32) {
    %c0_i32 = arith.constant 0 : i32
    %c0_i32_0 = arith.constant 0 : i32
    %c0_i32_1 = arith.constant 0 : i32
    return %c0_i32, %c0_i32_0 : i32, i32
  }
  func.func @transform_10(%arg0: i32) -> (i32, i32) {
    %c0_i32 = arith.constant 0 : i32
    %c0_i32_0 = arith.constant 0 : i32
    return %arg0, %c0_i32 : i32, i32
  }
}

</mosaic_0001>

<bundles_post_ra>
// kernel: tpu_custom_call.1
= control target key start
LH: loop header
LB: loop body
LE: loop exit
PB: predicated region body
PF: predicated region fallthrough
CT: control target
= control target key end

     0   :  { %15 = vsyncpa [#allocation3], 0  ;;  %s3145_s0 = inlined_call_operand.vmem [shape: bf16[128,20], index: 0, kind: input, shape index: {}]   ;;  %s3146_s1 = inlined_call_operand.vmem [shape: bf16[20,512], index: 1, kind: input, shape index: {}]   ;;  %s3147_s2 = inlined_call_operand.vmem [shape: f32[1,256], index: 2, kind: input, shape index: {}]   ;;  %s3148_s3 = inlined_call_operand.hbm [shape: bf16[256,256], index: 3, kind: input, shape index: {}]   ;;  %s3149_s4 = inlined_call_operand.vmem [shape: f32[1,256], index: 4, kind: input, shape index: {}]   ;;  %s3150_s5 = inlined_call_operand.hbm [shape: bf16[256,256], index: 5, kind: input, shape index: {}]   ;;  %s3151_s6 = inlined_call_operand.vmem [shape: f32[1,256], index: 6, kind: input, shape index: {}]   ;;  %s3152_s7 = inlined_call_operand.hbm [shape: bf16[256,128], index: 7, kind: input, shape index: {}]   ;;  %s3153_s8 = inlined_call_operand.hbm [shape: bf16[256,128], index: 8, kind: input, shape index: {}]   ;;  %s3154_s9 = inlined_call_operand.vmem [shape: f32[1,128], index: 9, kind: input, shape index: {}]   ;;  %s3155_s10 = inlined_call_operand.hbm [shape: f32[8,128], index: 10, kind: output, shape index: {}]  }
   0x1   :  { %16 = vsyncpa [#allocation6], 0 }
   0x2   :  { %17 = vsyncpa [#allocation9], 0 }
   0x3   :  { %18 = vsyncpa [#allocation4], 0  ;;  %s44_s15 = sshll.u32 %s3150_s5, 4  ;;  %s2662_s16 = smov [#allocation5]   ;;  %s45_s15 = int_to_ptr.hbm [resolvable:$true] %s44_s15 }
   0x4   :  { %s46_s17 = sshll.u32 %s2662_s16, 4  ;;  %s29_s20 = sshll.u32 %s3148_s3, 4  ;;  %s47_s17 = int_to_ptr.vmem [resolvable:$true] %s46_s17  ;;  %s30_s20 = int_to_ptr.hbm [resolvable:$true] %s29_s20 }
   0x5   :  { %s2663_s21 = smov 128   ;;  %s2664_s22 = smov 8  }
   0x6   :  { %52 = dma.hbm_to_vmem [thread:$0]  %s45_s15, 4096, %s47_s17, [#allocation6], %s2663_s21, %s2663_s21, %s2664_s22  }
   0x7   :  { %s2665_s23 = smov [#allocation2]   ;;  %s59_s27 = sshll.u32 %s3152_s7, 4  ;;  %s60_s27 = int_to_ptr.hbm [resolvable:$true] %s59_s27 }
   0x8   :  { %s31_s24 = sshll.u32 %s2665_s23, 4  ;;  %s2666_s5 = smov [#allocation7]   ;;  %s32_s24 = int_to_ptr.vmem [resolvable:$true] %s31_s24 }
   0x9   :  { %37 = dma.hbm_to_vmem [thread:$0]  %s30_s20, 4096, %s32_s24, [#allocation3], %s2663_s21, %s2663_s21, %s2664_s22  }
   0xa   :  { %s61_s28 = sshll.u32 %s2666_s5, 4  ;;  %s72_s3 = sshll.u32 %s3153_s8, 4  ;;  %s62_s28 = int_to_ptr.vmem [resolvable:$true] %s61_s28  ;;  %s73_s3 = int_to_ptr.hbm [resolvable:$true] %s72_s3 }
   0xb   :  { %s2667_s11 = smov 64   ;;  %s2668_s12 = smov 4  }
   0xc   :  { %67 = dma.hbm_to_vmem [thread:$0]  %s60_s27, 2048, %s62_s28, [#allocation6], %s2667_s11, %s2667_s11, %s2668_s12  }
   0xd   :  { %s2669_s13 = smov [#allocation8]  }
   0xe   :  { %s74_s14 = sshll.u32 %s2669_s13, 4  ;;  %s75_s14 = int_to_ptr.vmem [resolvable:$true] %s74_s14 }
   0xf   :  { %80 = dma.hbm_to_vmem [thread:$0]  %s73_s3, 2048, %s75_s14, [#allocation9], %s2667_s11, %s2667_s11, %s2668_s12  }
  0x10   :  { %2654 = dma.done.wait [#allocation3], 4096  }
  0x11   :  { %2655 = vsyncadd [#allocation3], 4294963200 }
  0x12   :  { %2656 = dma.done.wait [#allocation6], 6144  }
  0x13   :  { %2657 = vsyncadd [#allocation6], 4294961152 }
  0x14   :  { %2658 = dma.done.wait [#allocation9], 2048  }
  0x15   :  { %2659 = vsyncadd [#allocation9], 4294965248  ;;  %v120_v0 = vld [vmem:[%s3146_s1 + $0x20] sm:$0x33]  ;;  %vm217_vm0 = vcmask 1041408   ;;  %vm192_vm1 = vcmask 162816  }
  0x16   :  { %v176_v1 = vunpack.c.l.b16 %v120_v0  ;;  %v177_v2 = vunpack.c.h.b16 %v120_v0  ;;  %v1986_v3 = vld [vmem:[%s3146_s1] sm:$0xf]  ;;  %v121_v4 = vld [vmem:[%s3146_s1 + $0x28] sm:$0x33]  ;;  %v2426_v5 = vld [vmem:[%s3146_s1 + $0xc] sm:$0xf0] }
  0x17   :  { %v2424_v6 = vld [vmem:[%s3146_s1 + $0x4] sm:$0xf]  ;;  %v1988_v7 = vld [vmem:[%s3146_s1 + $0x10] sm:$0xf0]  ;;  %v178_v8 = vunpack.c.l.b16 %v121_v4  ;;  %v179_v9 = vunpack.c.h.b16 %v121_v4  ;;  %v1994_v12 = vld [vmem:[%s3146_s1 + $0x8] sm:$0xf]  ;;  %v1987_v24 = vor.u32 %v2426_v5, %v1986_v3 }
  0x18   :  { %v184_v10 = vpack.c.b16 %v176_v1, %v176_v1  ;;  %v185_v11 = vpack.c.b16 %v177_v2, %v177_v2  ;;  %v2427_v13 = vld [vmem:[%s3146_s1 + $0x14] sm:$0xf0]  ;;  %v2425_v14 = vld [vmem:[%s3146_s1 + $0xc] sm:$0xf]  ;;  %v1996_v17 = vld [vmem:[%s3146_s1 + $0x18] sm:$0xf0]  ;;  %v1991_v25 = vor.u32 %v2424_v6, %v1988_v7 }
  0x19   :  { %v186_v15 = vpack.c.b16 %v178_v8, %v178_v8  ;;  %v187_v16 = vpack.c.b16 %v179_v9, %v179_v9  ;;  %v2442_v18 = vld [vmem:[#allocation2 + $0x74] sm:$0xf]  ;;  %v2092_v19 = vld [vmem:[#allocation2 + $0x78] sm:$0xf0]  ;;  %v2416_v28 = vld [vmem:[%s3145_s0] sm:$0xff]  ;;  %v1995_v29 = vor.u32 %v2427_v13, %v1994_v12  ;;  %v1999_v30 = vor.u32 %v2425_v14, %v1996_v17  ;;  %s1940_s30 = sshll.u32 %s3155_s10, 4  ;;  %s1941_s30 = int_to_ptr.hbm [resolvable:$true] %s1940_s30 }
  0x1a   :  { %v219_v20 = vsel %vm217_vm0, %v184_v10, 0  ;;  %v222_v21 = vsel %vm217_vm0, %v185_v11, 0  ;;  %v2458_v22 = vld [vmem:[#allocation2 + $0xf4] sm:$0xf]  ;;  %v2156_v23 = vld [vmem:[#allocation2 + $0xf8] sm:$0xf0]  ;;  %v2095_v34 = vor.u32 %v2442_v18, %v2092_v19 }
  0x1b   :  { %236 = vmatpush.bf16.msra.mxu0 %v219_v20  ;;  %285 = vmatpush.bf16.msra.mxu1 %v222_v21  ;;  %v225_v26 = vsel %vm217_vm0, %v186_v15, 0  ;;  %v228_v27 = vsel %vm217_vm0, %v187_v16, 0  ;;  %v2090_v31 = vld [vmem:[#allocation2 + $0x70] sm:$0xf]  ;;  %v2443_v32 = vld [vmem:[#allocation2 + $0x74] sm:$0xf0]  ;;  %v2159_v35 = vor.u32 %v2458_v22, %v2156_v23 }
  0x1c   :  { %334 = vmatpush.bf16.msra.mxu2 %v225_v26  ;;  %383 = vmatpush.bf16.msra.mxu3 %v228_v27  ;;  %v2154_v33 = vld [vmem:[#allocation2 + $0xf0] sm:$0xf]  ;;  %v2459_v36 = vld [vmem:[#allocation2 + $0xf4] sm:$0xf0]  ;;  %v2440_v37 = vld [vmem:[#allocation2 + $0x64] sm:$0xf]  ;;  %v2091_v41 = vor.u32 %v2443_v32, %v2090_v31 }
  0x1d   :  { %v2084_v38 = vld [vmem:[#allocation2 + $0x68] sm:$0xf0]  ;;  %v2456_v39 = vld [vmem:[#allocation2 + $0xe4] sm:$0xf]  ;;  %v2155_v42 = vor.u32 %v2459_v36, %v2154_v33  ;;  %v2082_v45 = vld [vmem:[#allocation2 + $0x60] sm:$0xf] }
  0x1e   :  { %v2148_v40 = vld [vmem:[#allocation2 + $0xe8] sm:$0xf0]  ;;  %v2087_v43 = vor.u32 %v2440_v37, %v2084_v38  ;;  %v2441_v46 = vld [vmem:[#allocation2 + $0x64] sm:$0xf0]  ;;  %v2146_v47 = vld [vmem:[#allocation2 + $0xe0] sm:$0xf] }
  0x1f   :  { %237 = vmatpush.bf16.msra.mxu0 %v1987_v24  ;;  %286 = vmatpush.bf16.msra.mxu1 %v1991_v25  ;;  %v2151_v44 = vor.u32 %v2456_v39, %v2148_v40  ;;  %v2457_v48 = vld [vmem:[#allocation2 + $0xe4] sm:$0xf0]  ;;  %v2438_v49 = vld [vmem:[#allocation2 + $0x54] sm:$0xf]  ;;  %v2076_v50 = vld [vmem:[#allocation2 + $0x58] sm:$0xf0]  ;;  %v2083_v51 = vor.u32 %v2441_v46, %v2082_v45 }
  0x20   :  { %335 = vmatpush.bf16.msra.mxu2 %v1995_v29  ;;  %384 = vmatpush.bf16.msra.mxu3 %v1999_v30  ;;  %v2147_v52 = vor.u32 %v2457_v48, %v2146_v47  ;;  %v2454_v53 = vld [vmem:[#allocation2 + $0xd4] sm:$0xf]  ;;  %v2140_v54 = vld [vmem:[#allocation2 + $0xd8] sm:$0xf0]  ;;  %v2079_v55 = vor.u32 %v2438_v49, %v2076_v50  ;;  %v2417_v57 = vld [vmem:[%s3145_s0 + $0x8] sm:$0xff] }
  0x21   :  { %v2143_v56 = vor.u32 %v2454_v53, %v2140_v54  ;;  %v2074_v58 = vld [vmem:[#allocation2 + $0x50] sm:$0xf]  ;;  %v2439_v59 = vld [vmem:[#allocation2 + $0x54] sm:$0xf0]  ;;  %v2436_v63 = vld [vmem:[#allocation2 + $0x44] sm:$0xf] }
  0x22   :  { %2000 = vmatmul.msk.bf16.vlgmr.msra.gmra.mxu0 %vm192_vm1, %v2416_v28  ;;  %2008 = vmatmul.msk.bf16.vlgmr.msra.gmra.mxu1 %vm192_vm1, %v2416_v28  ;;  %v2138_v60 = vld [vmem:[#allocation2 + $0xd0] sm:$0xf]  ;;  %v2075_v61 = vor.u32 %v2439_v59, %v2074_v58  ;;  %v2455_v62 = vld [vmem:[#allocation2 + $0xd4] sm:$0xf0]  ;;  %v2068_v0 = vld [vmem:[#allocation2 + $0x48] sm:$0xf0] }
  0x23   :  { %2016 = vmatmul.msk.bf16.vlgmr.msra.gmra.mxu2 %vm192_vm1, %v2416_v28  ;;  %2024 = vmatmul.msk.bf16.vlgmr.msra.gmra.mxu3 %vm192_vm1, %v2416_v28  ;;  %v2139_v1 = vor.u32 %v2455_v62, %v2138_v60  ;;  %v2071_v2 = vor.u32 %v2436_v63, %v2068_v0  ;;  %v2452_v3 = vld [vmem:[#allocation2 + $0xc4] sm:$0xf]  ;;  %v2132_v4 = vld [vmem:[#allocation2 + $0xc8] sm:$0xf0]  ;;  %v2418_v6 = vld [vmem:[%s3145_s0 + $0x10] sm:$0xff] }
  0x24   :  { %808 = vmatpush.bf16.msrb.mxu2 %v2095_v34  ;;  %857 = vmatpush.bf16.msrb.mxu3 %v2159_v35  ;;  %v2135_v5 = vor.u32 %v2452_v3, %v2132_v4  ;;  %v2066_v7 = vld [vmem:[#allocation2 + $0x40] sm:$0xf]  ;;  %v2437_v8 = vld [vmem:[#allocation2 + $0x44] sm:$0xf0]  ;;  %v2434_v12 = vld [vmem:[#allocation2 + $0x34] sm:$0xf] }
  0x25   :  { %710 = vmatpush.bf16.msrb.mxu0 %v2091_v41  ;;  %759 = vmatpush.bf16.msrb.mxu1 %v2155_v42  ;;  %v2130_v9 = vld [vmem:[#allocation2 + $0xc0] sm:$0xf]  ;;  %v2067_v10 = vor.u32 %v2437_v8, %v2066_v7  ;;  %v2453_v11 = vld [vmem:[#allocation2 + $0xc4] sm:$0xf0]  ;;  %v2060_v13 = vld [vmem:[#allocation2 + $0x38] sm:$0xf0] }
  0x26   :  { %v2131_v14 = vor.u32 %v2453_v11, %v2130_v9  ;;  %v2063_v15 = vor.u32 %v2434_v12, %v2060_v13  ;;  %v2450_v16 = vld [vmem:[#allocation2 + $0xb4] sm:$0xf]  ;;  %v2124_v17 = vld [vmem:[#allocation2 + $0xb8] sm:$0xf0]  ;;  %v2058_v20 = vld [vmem:[#allocation2 + $0x30] sm:$0xf] }
  0x27   :  { %v2127_v18 = vor.u32 %v2450_v16, %v2124_v17  ;;  %v2419_v19 = vld [vmem:[%s3145_s0 + $0x18] sm:$0xff]  ;;  %v2122_v22 = vld [vmem:[#allocation2 + $0xb0] sm:$0xf]  ;;  %v2432_v25 = vld [vmem:[#allocation2 + $0x24] sm:$0xf] }
  0x28   :  { %809 = vmatpush.bf16.msrb.mxu2 %v2087_v43  ;;  %858 = vmatpush.bf16.msrb.mxu3 %v2151_v44  ;;  %v2435_v21 = vld [vmem:[#allocation2 + $0x34] sm:$0xf0]  ;;  %v2052_v26 = vld [vmem:[#allocation2 + $0x28] sm:$0xf0]  ;;  %v2448_v29 = vld [vmem:[#allocation2 + $0xa4] sm:$0xf] }
  0x29   :  { %711 = vmatpush.bf16.msrb.mxu0 %v2083_v51  ;;  %760 = vmatpush.bf16.msrb.mxu1 %v2147_v52  ;;  %v2059_v23 = vor.u32 %v2435_v21, %v2058_v20  ;;  %v2451_v24 = vld [vmem:[#allocation2 + $0xb4] sm:$0xf0]  ;;  %v2055_v28 = vor.u32 %v2432_v25, %v2052_v26  ;;  %v2116_v30 = vld [vmem:[#allocation2 + $0xa8] sm:$0xf0]  ;;  %v2420_v32 = vld [vmem:[%s3145_s0 + $0x20] sm:$0xff] }
  0x2a   :  { %v2123_v27 = vor.u32 %v2451_v24, %v2122_v22  ;;  %v2119_v31 = vor.u32 %v2448_v29, %v2116_v30  ;;  %v2050_v33 = vld [vmem:[#allocation2 + $0x20] sm:$0xf]  ;;  %v2433_v34 = vld [vmem:[#allocation2 + $0x24] sm:$0xf0]  ;;  %v2430_v38 = vld [vmem:[#allocation2 + $0x14] sm:$0xf] }
  0x2b   :  { %v2114_v35 = vld [vmem:[#allocation2 + $0xa0] sm:$0xf]  ;;  %v2051_v36 = vor.u32 %v2433_v34, %v2050_v33  ;;  %v2449_v37 = vld [vmem:[#allocation2 + $0xa4] sm:$0xf0]  ;;  %v2044_v39 = vld [vmem:[#allocation2 + $0x18] sm:$0xf0] }
  0x2c   :  { %810 = vmatpush.bf16.msrb.mxu2 %v2079_v55  ;;  %859 = vmatpush.bf16.msrb.mxu3 %v2143_v56  ;;  %v2115_v40 = vor.u32 %v2449_v37, %v2114_v35  ;;  %v2047_v41 = vor.u32 %v2430_v38, %v2044_v39  ;;  %v2446_v42 = vld [vmem:[#allocation2 + $0x94] sm:$0xf]  ;;  %v2108_v43 = vld [vmem:[#allocation2 + $0x98] sm:$0xf0]  ;;  %v2421_v45 = vld [vmem:[%s3145_s0 + $0x28] sm:$0xff] }
  0x2d   :  { %712 = vmatpush.bf16.msrb.mxu0 %v2075_v61  ;;  %761 = vmatpush.bf16.msrb.mxu1 %v2139_v1  ;;  %v2111_v44 = vor.u32 %v2446_v42, %v2108_v43  ;;  %v2042_v46 = vld [vmem:[#allocation2 + $0x10] sm:$0xf]  ;;  %v2431_v47 = vld [vmem:[#allocation2 + $0x14] sm:$0xf0]  ;;  %v2428_v51 = vld [vmem:[#allocation2 + $0x4] sm:$0xf] }
  0x2e   :  { %v2106_v48 = vld [vmem:[#allocation2 + $0x90] sm:$0xf]  ;;  %v2043_v49 = vor.u32 %v2431_v47, %v2042_v46  ;;  %v2447_v50 = vld [vmem:[#allocation2 + $0x94] sm:$0xf0]  ;;  %v2036_v52 = vld [vmem:[#allocation2 + $0x8] sm:$0xf0] }
  0x2f   :  { %v2107_v53 = vor.u32 %v2447_v50, %v2106_v48  ;;  %v2039_v54 = vor.u32 %v2428_v51, %v2036_v52  ;;  %v2422_v55 = vld [vmem:[%s3145_s0 + $0x30] sm:$0xff]  ;;  %v2444_v56 = vld [vmem:[#allocation2 + $0x84] sm:$0xf]  ;;  %v2034_v58 = vld [vmem:[#allocation2] sm:$0xf] }
  0x30   :  { %811 = vmatpush.bf16.msrb.mxu2 %v2071_v2  ;;  %860 = vmatpush.bf16.msrb.mxu3 %v2135_v5  ;;  %v2429_v60 = vld [vmem:[#allocation2 + $0x4] sm:$0xf0]  ;;  %v2098_v61 = vld [vmem:[#allocation2 + $0x80] sm:$0xf]  ;;  %v2423_v1 = vld [vmem:[%s3145_s0 + $0x38] sm:$0xff] }
  0x31   :  { %713 = vmatpush.bf16.msrb.mxu0 %v2067_v10  ;;  %762 = vmatpush.bf16.msrb.mxu1 %v2131_v14  ;;  %v2445_v62 = vld [vmem:[#allocation2 + $0x84] sm:$0xf0]  ;;  %v2035_v63 = vor.u32 %v2429_v60, %v2034_v58  ;;  %v426_v2 = vld [vmem:[%s3147_s2] sm:$0x3]  ;;  %v2474_v7 = vld [vmem:[#allocation5 + $0x74] sm:$0xf] }
  0x32   :  { %2001 = vmatmul.msk.bf16.gmra.mxu0 %vm192_vm1, %v2417_v57  ;;  %2009 = vmatmul.msk.bf16.gmra.mxu1 %vm192_vm1, %v2417_v57  ;;  %v2099_v0 = vor.u32 %v2445_v62, %v2098_v61  ;;  %v2831_v5 = vperm.slane %v426_v2, 0  ;;  %v2220_v8 = vld [vmem:[#allocation5 + $0x78] sm:$0xf0]  ;;  %v2490_v10 = vld [vmem:[#allocation5 + $0xf4] sm:$0xf] }
  0x33   :  { %2017 = vmatmul.msk.bf16.gmra.mxu2 %vm192_vm1, %v2417_v57  ;;  %2025 = vmatmul.msk.bf16.gmra.mxu3 %vm192_vm1, %v2417_v57  ;;  %v2100_v57 = vld [vmem:[#allocation2 + $0x88] sm:$0xf0]  ;;  %v2223_v9 = vor.u32 %v2474_v7, %v2220_v8  ;;  %v2284_v11 = vld [vmem:[#allocation5 + $0xf8] sm:$0xf0]  ;;  %v2218_v12 = vld [vmem:[#allocation5 + $0x70] sm:$0xf] }
  0x34   :  { %812 = vmatpush.bf16.msrb.mxu2 %v2063_v15  ;;  %861 = vmatpush.bf16.msrb.mxu3 %v2127_v18  ;;  %v2103_v59 = vor.u32 %v2444_v56, %v2100_v57  ;;  %v2287_v13 = vor.u32 %v2490_v10, %v2284_v11  ;;  %v2475_v14 = vld [vmem:[#allocation5 + $0x74] sm:$0xf0]  ;;  %v2472_v37 = vld [vmem:[#allocation5 + $0x64] sm:$0xf]  ;;  %v2212_v38 = vld [vmem:[#allocation5 + $0x68] sm:$0xf0] }
  0x35   :  { %714 = vmatpush.bf16.msrb.mxu0 %v2059_v23  ;;  %763 = vmatpush.bf16.msrb.mxu1 %v2123_v27  ;;  %v2219_v17 = vor.u32 %v2475_v14, %v2218_v12  ;;  %v2491_v29 = vld [vmem:[#allocation5 + $0xf4] sm:$0xf0]  ;;  %v2215_v39 = vor.u32 %v2472_v37, %v2212_v38  ;;  %v2210_v42 = vld [vmem:[#allocation5 + $0x60] sm:$0xf]  ;;  %v2486_v8 = vld [vmem:[#allocation5 + $0xd4] sm:$0xf] }
  0x36   :  { %v2274_v58 = vld [vmem:[#allocation5 + $0xe0] sm:$0xf]  ;;  %v2202_v10 = vld [vmem:[#allocation5 + $0x50] sm:$0xf]  ;;  %v2471_v12 = vld [vmem:[#allocation5 + $0x54] sm:$0xf0] }
  0x38   :  { %813 = vmatpush.bf16.msrb.mxu2 %v2055_v28  ;;  %862 = vmatpush.bf16.msrb.mxu3 %v2119_v31  ;;  %v2282_v28 = vld [vmem:[#allocation5 + $0xf0] sm:$0xf] }
  0x39   :  { %715 = vmatpush.bf16.msrb.mxu0 %v2051_v36  ;;  %764 = vmatpush.bf16.msrb.mxu1 %v2115_v40  ;;  %v2283_v30 = vor.u32 %v2491_v29, %v2282_v28  ;;  %v2488_v40 = vld [vmem:[#allocation5 + $0xe4] sm:$0xf]  ;;  %v2266_v28 = vld [vmem:[#allocation5 + $0xd0] sm:$0xf]  ;;  %v2487_v29 = vld [vmem:[#allocation5 + $0xd4] sm:$0xf0] }
  0x3c   :  { %814 = vmatpush.bf16.msrb.mxu2 %v2047_v41  ;;  %863 = vmatpush.bf16.msrb.mxu3 %v2111_v44  ;;  %v2276_v41 = vld [vmem:[#allocation5 + $0xe8] sm:$0xf0]  ;;  %v2473_v44 = vld [vmem:[#allocation5 + $0x64] sm:$0xf0] }
  0x3d   :  { %716 = vmatpush.bf16.msrb.mxu0 %v2043_v49  ;;  %765 = vmatpush.bf16.msrb.mxu1 %v2107_v53  ;;  %v2279_v43 = vor.u32 %v2488_v40, %v2276_v41  ;;  %v2211_v47 = vor.u32 %v2473_v44, %v2210_v42  ;;  %v2196_v40 = vld [vmem:[#allocation5 + $0x48] sm:$0xf0]  ;;  %v2484_v42 = vld [vmem:[#allocation5 + $0xc4] sm:$0xf]  ;;  %v2194_v44 = vld [vmem:[#allocation5 + $0x40] sm:$0xf] }
  0x40   :  { %815 = vmatpush.bf16.msrb.mxu2 %v2039_v54  ;;  %864 = vmatpush.bf16.msrb.mxu3 %v2103_v59  ;;  %v2489_v59 = vld [vmem:[#allocation5 + $0xe4] sm:$0xf0] }
  0x41   :  { %717 = vmatpush.bf16.msrb.mxu0 %v2035_v63  ;;  %766 = vmatpush.bf16.msrb.mxu1 %v2099_v0  ;;  %v2275_v60 = vor.u32 %v2489_v59, %v2274_v58 }
  0x42   :  { %2002 = vmatmul.msk.bf16.gmra.mxu0 %vm192_vm1, %v2418_v6  ;;  %2010 = vmatmul.msk.bf16.gmra.mxu1 %vm192_vm1, %v2418_v6 }
  0x43   :  { %2018 = vmatmul.msk.bf16.gmra.mxu2 %vm192_vm1, %v2418_v6  ;;  %2026 = vmatmul.msk.bf16.gmra.mxu3 %vm192_vm1, %v2418_v6  ;;  %v2833_v6 = vperm.slane %v426_v2, 1 }
  0x44   :  { %1244 = vmatpush.bf16.msra.mxu2 %v2223_v9  ;;  %1293 = vmatpush.bf16.msra.mxu3 %v2287_v13  ;;  %v2268_v9 = vld [vmem:[#allocation5 + $0xd8] sm:$0xf0] }
  0x45   :  { %1146 = vmatpush.bf16.msra.mxu0 %v2219_v17  ;;  %1195 = vmatpush.bf16.msra.mxu1 %v2283_v30  ;;  %v2271_v11 = vor.u32 %v2486_v8, %v2268_v9  ;;  %v2267_v30 = vor.u32 %v2487_v29, %v2266_v28 }
  0x48   :  { %1245 = vmatpush.bf16.msra.mxu2 %v2215_v39  ;;  %1294 = vmatpush.bf16.msra.mxu3 %v2279_v43  ;;  %v2468_v39 = vld [vmem:[#allocation5 + $0x44] sm:$0xf]  ;;  %v2260_v43 = vld [vmem:[#allocation5 + $0xc8] sm:$0xf0] }
  0x49   :  { %1147 = vmatpush.bf16.msra.mxu0 %v2211_v47  ;;  %1196 = vmatpush.bf16.msra.mxu1 %v2275_v60  ;;  %v2199_v41 = vor.u32 %v2468_v39, %v2196_v40  ;;  %v2250_v40 = vld [vmem:[#allocation5 + $0xb0] sm:$0xf] }
  0x4c   :  { %1295 = vmatpush.bf16.msra.mxu3 %v2271_v11  ;;  %v2466_v11 = vld [vmem:[#allocation5 + $0x34] sm:$0xf] }
  0x4d   :  { %1197 = vmatpush.bf16.msra.mxu1 %v2267_v30 }
  0x52   :  { %2003 = vmatmul.msk.bf16.gmra.mxu0 %vm192_vm1, %v2419_v19  ;;  %2011 = vmatmul.msk.bf16.gmra.mxu1 %vm192_vm1, %v2419_v19 }
  0x53   :  { %2019 = vmatmul.msk.bf16.gmra.mxu2 %vm192_vm1, %v2419_v19  ;;  %2027 = vmatmul.msk.bf16.gmra.mxu3 %vm192_vm1, %v2419_v19 }
  0x62   :  { %2004 = vmatmul.msk.bf16.gmra.mxu0 %vm192_vm1, %v2420_v32  ;;  %2012 = vmatmul.msk.bf16.gmra.mxu1 %vm192_vm1, %v2420_v32 }
  0x63   :  { %2020 = vmatmul.msk.bf16.gmra.mxu2 %vm192_vm1, %v2420_v32  ;;  %2028 = vmatmul.msk.bf16.gmra.mxu3 %vm192_vm1, %v2420_v32 }
  0x72   :  { %2005 = vmatmul.msk.bf16.gmra.mxu0 %vm192_vm1, %v2421_v45  ;;  %2013 = vmatmul.msk.bf16.gmra.mxu1 %vm192_vm1, %v2421_v45 }
  0x73   :  { %2021 = vmatmul.msk.bf16.gmra.mxu2 %vm192_vm1, %v2421_v45  ;;  %2029 = vmatmul.msk.bf16.gmra.mxu3 %vm192_vm1, %v2421_v45 }
  0x82   :  { %2006 = vmatmul.msk.bf16.gmra.mxu0 %vm192_vm1, %v2422_v55  ;;  %2014 = vmatmul.msk.bf16.gmra.mxu1 %vm192_vm1, %v2422_v55 }
  0x83   :  { %2022 = vmatmul.msk.bf16.gmra.mxu2 %vm192_vm1, %v2422_v55  ;;  %2030 = vmatmul.msk.bf16.gmra.mxu3 %vm192_vm1, %v2422_v55 }
  0x92   :  { %2007 = vmatmul.msk.bf16.gmra.mxu0 %vm192_vm1, %v2423_v1  ;;  %2015 = vmatmul.msk.bf16.gmra.mxu1 %vm192_vm1, %v2423_v1 }
  0x93   :  { %2023 = vmatmul.msk.bf16.gmra.mxu2 %vm192_vm1, %v2423_v1  ;;  %2031 = vmatmul.msk.bf16.gmra.mxu3 %vm192_vm1, %v2423_v1 }
  0x9f   :  { %v239_v3 = vpop.f32.mrf.mxu0  ;;  %v288_v4 = vpop.f32.mrf.mxu1 }
  0xa0   :  { %v432_v15 = vadd.f32 %v2831_v5, %v239_v3  ;;  %v433_v16 = vadd.f32 %v2833_v6, %v288_v4  ;;  %v2470_v3 = vld [vmem:[#allocation5 + $0x54] sm:$0xf]  ;;  %v2204_v4 = vld [vmem:[#allocation5 + $0x58] sm:$0xf0] }
  0xa1   :  { %v2207_v7 = vor.u32 %v2470_v3, %v2204_v4 }
  0xa2   :  { %v464_v24 = vmax.f32 %v432_v15, 0.0  ;;  %v465_v25 = vmax.f32 %v433_v16, 0.0  ;;  %v2203_v15 = vor.u32 %v2471_v12, %v2202_v10  ;;  %v2188_v12 = vld [vmem:[#allocation5 + $0x38] sm:$0xf0] }
  0xa3   :  { %1246 = vmatpush.bf16.msra.mxu2 %v2207_v7 }
  0xa4   :  { %1148 = vmatpush.bf16.msra.mxu0 %v2203_v15  ;;  %v2252_v15 = vld [vmem:[#allocation5 + $0xb8] sm:$0xf0] }
  0xa6   :  { %v2837_v18 = vpop.f32.mrf.mxu2  ;;  %v2839_v19 = vpop.f32.mrf.mxu3 }
  0xa7   :  { %v241_v20 = vpop.f32.mrf.mxu0  ;;  %v290_v21 = vpop.f32.mrf.mxu1  ;;  %1247 = vmatpush.bf16.msra.mxu2 %v2199_v41  ;;  %v2483_v41 = vld [vmem:[#allocation5 + $0xb4] sm:$0xf0] }
  0xa8   :  { %v434_v22 = vadd.f32 %v2831_v5, %v241_v20  ;;  %v435_v23 = vadd.f32 %v2833_v6, %v290_v21 }
  0xaa   :  { %v466_v26 = vmax.f32 %v434_v22, 0.0  ;;  %v467_v27 = vmax.f32 %v435_v23, 0.0 }
  0xac   :  { %v496_v31 = vpack.c.bf16 %v466_v26, %v464_v24  ;;  %v497_v32 = vpack.c.bf16 %v467_v27, %v465_v25 }
  0xae   :  { %718 = vmatmul.bf16.vlgmr.msrb.gmra.mxu0 %v496_v31  ;;  %767 = vmatmul.bf16.vlgmr.msrb.gmra.mxu1 %v497_v32  ;;  %v2843_v33 = vpop.f32.mrf.mxu2  ;;  %v2845_v34 = vpop.f32.mrf.mxu3 }
  0xaf   :  { %816 = vmatmul.bf16.vlgmr.msrb.gmra.mxu2 %v496_v31  ;;  %865 = vmatmul.bf16.vlgmr.msrb.gmra.mxu3 %v497_v32  ;;  %v244_v35 = vpop.f32.mrf.mxu0  ;;  %v293_v36 = vpop.f32.mrf.mxu1 }
  0xb0   :  { %v436_v45 = vadd.f32 %v2831_v5, %v244_v35  ;;  %v437_v46 = vadd.f32 %v2833_v6, %v293_v36 }
  0xb2   :  { %v468_v54 = vmax.f32 %v436_v45, 0.0  ;;  %v469_v55 = vmax.f32 %v437_v46, 0.0  ;;  %v2263_v45 = vor.u32 %v2484_v42, %v2260_v43  ;;  %v2469_v46 = vld [vmem:[#allocation5 + $0x44] sm:$0xf0]  ;;  %v2251_v42 = vor.u32 %v2483_v41, %v2250_v40 }
  0xb4   :  { %1296 = vmatpush.bf16.msra.mxu3 %v2263_v45 }
  0xb6   :  { %v2849_v48 = vpop.f32.mrf.mxu2  ;;  %v2851_v49 = vpop.f32.mrf.mxu3 }
  0xb7   :  { %v246_v50 = vpop.f32.mrf.mxu0  ;;  %v295_v51 = vpop.f32.mrf.mxu1 }
  0xb8   :  { %v438_v52 = vadd.f32 %v2831_v5, %v246_v50  ;;  %v439_v53 = vadd.f32 %v2833_v6, %v295_v51  ;;  %v2195_v51 = vor.u32 %v2469_v46, %v2194_v44 }
  0xba   :  { %v470_v56 = vmax.f32 %v438_v52, 0.0  ;;  %v471_v57 = vmax.f32 %v439_v53, 0.0  ;;  %1149 = vmatpush.bf16.msra.mxu0 %v2195_v51  ;;  %v2464_v51 = vld [vmem:[#allocation5 + $0x24] sm:$0xf] }
  0xbc   :  { %v498_v61 = vpack.c.bf16 %v470_v56, %v468_v54  ;;  %v499_v62 = vpack.c.bf16 %v471_v57, %v469_v55 }
  0xbe   :  { %723 = vmatmul.bf16.gmra.mxu0 %v498_v61  ;;  %772 = vmatmul.bf16.gmra.mxu1 %v499_v62  ;;  %v2855_v63 = vpop.f32.mrf.mxu2  ;;  %v2857_v0 = vpop.f32.mrf.mxu3 }
  0xbf   :  { %821 = vmatmul.bf16.gmra.mxu2 %v498_v61  ;;  %870 = vmatmul.bf16.gmra.mxu3 %v499_v62  ;;  %v249_v1 = vpop.f32.mrf.mxu0  ;;  %v298_v2 = vpop.f32.mrf.mxu1  ;;  %v2258_v62 = vld [vmem:[#allocation5 + $0xc0] sm:$0xf] }
  0xc0   :  { %v440_v13 = vadd.f32 %v2831_v5, %v249_v1  ;;  %v441_v14 = vadd.f32 %v2833_v6, %v298_v2  ;;  %v2485_v1 = vld [vmem:[#allocation5 + $0xc4] sm:$0xf0] }
  0xc1   :  { %v2259_v2 = vor.u32 %v2485_v1, %v2258_v62 }
  0xc2   :  { %v472_v24 = vmax.f32 %v440_v13, 0.0  ;;  %v473_v25 = vmax.f32 %v441_v14, 0.0  ;;  %v2191_v13 = vor.u32 %v2466_v11, %v2188_v12  ;;  %v2482_v14 = vld [vmem:[#allocation5 + $0xb4] sm:$0xf] }
  0xc3   :  { %1198 = vmatpush.bf16.msra.mxu1 %v2259_v2 }
  0xc4   :  { %1248 = vmatpush.bf16.msra.mxu2 %v2191_v13 }
  0xc6   :  { %v2861_v16 = vpop.f32.mrf.mxu2  ;;  %v2863_v17 = vpop.f32.mrf.mxu3 }
  0xc7   :  { %v251_v20 = vpop.f32.mrf.mxu0  ;;  %v300_v21 = vpop.f32.mrf.mxu1  ;;  %1199 = vmatpush.bf16.msra.mxu1 %v2251_v42  ;;  %v2234_v42 = vld [vmem:[#allocation5 + $0x90] sm:$0xf] }
  0xc8   :  { %v442_v22 = vadd.f32 %v2831_v5, %v251_v20  ;;  %v443_v23 = vadd.f32 %v2833_v6, %v300_v21  ;;  %v2186_v20 = vld [vmem:[#allocation5 + $0x30] sm:$0xf]  ;;  %v2255_v21 = vor.u32 %v2482_v14, %v2252_v15 }
  0xca   :  { %v474_v26 = vmax.f32 %v442_v22, 0.0  ;;  %v475_v27 = vmax.f32 %v443_v23, 0.0  ;;  %v2467_v22 = vld [vmem:[#allocation5 + $0x34] sm:$0xf0]  ;;  %1297 = vmatpush.bf16.msra.mxu3 %v2255_v21  ;;  %v2481_v21 = vld [vmem:[#allocation5 + $0xa4] sm:$0xf0] }
  0xcc   :  { %v500_v31 = vpack.c.bf16 %v474_v26, %v472_v24  ;;  %v501_v32 = vpack.c.bf16 %v475_v27, %v473_v25  ;;  %v2187_v25 = vor.u32 %v2467_v22, %v2186_v20  ;;  %v2242_v20 = vld [vmem:[#allocation5 + $0xa0] sm:$0xf] }
  0xcd   :  { %v2243_v22 = vor.u32 %v2481_v21, %v2242_v20 }
  0xce   :  { %728 = vmatmul.bf16.gmra.mxu0 %v500_v31  ;;  %777 = vmatmul.bf16.gmra.mxu1 %v501_v32  ;;  %v2867_v35 = vpop.f32.mrf.mxu2  ;;  %v2869_v36 = vpop.f32.mrf.mxu3 }
  0xcf   :  { %826 = vmatmul.bf16.gmra.mxu2 %v500_v31  ;;  %875 = vmatmul.bf16.gmra.mxu3 %v501_v32  ;;  %v254_v37 = vpop.f32.mrf.mxu0  ;;  %v303_v38 = vpop.f32.mrf.mxu1 }
  0xd0   :  { %v444_v47 = vadd.f32 %v2831_v5, %v254_v37  ;;  %v445_v50 = vadd.f32 %v2833_v6, %v303_v38  ;;  %1150 = vmatpush.bf16.msra.mxu0 %v2187_v25  ;;  %1200 = vmatpush.bf16.msra.mxu1 %v2243_v22 }
  0xd2   :  { %v476_v58 = vmax.f32 %v444_v47, 0.0  ;;  %v477_v59 = vmax.f32 %v445_v50, 0.0 }
  0xd6   :  { %v2873_v52 = vpop.f32.mrf.mxu2  ;;  %v2875_v53 = vpop.f32.mrf.mxu3 }
  0xd7   :  { %v256_v54 = vpop.f32.mrf.mxu0  ;;  %v305_v55 = vpop.f32.mrf.mxu1 }
  0xd8   :  { %v446_v56 = vadd.f32 %v2831_v5, %v256_v54  ;;  %v447_v57 = vadd.f32 %v2833_v6, %v305_v55  ;;  %v2180_v54 = vld [vmem:[#allocation5 + $0x28] sm:$0xf0] }
  0xd9   :  { %v2183_v55 = vor.u32 %v2464_v51, %v2180_v54 }
  0xda   :  { %v478_v60 = vmax.f32 %v446_v56, 0.0  ;;  %v479_v61 = vmax.f32 %v447_v57, 0.0  ;;  %v2480_v56 = vld [vmem:[#allocation5 + $0xa4] sm:$0xf]  ;;  %v2244_v57 = vld [vmem:[#allocation5 + $0xa8] sm:$0xf0] }
  0xdb   :  { %1249 = vmatpush.bf16.msra.mxu2 %v2183_v55 }
  0xdc   :  { %v502_v3 = vpack.c.bf16 %v478_v60, %v476_v58  ;;  %v503_v4 = vpack.c.bf16 %v479_v61, %v477_v59  ;;  %v2178_v58 = vld [vmem:[#allocation5 + $0x20] sm:$0xf]  ;;  %v2247_v59 = vor.u32 %v2480_v56, %v2244_v57  ;;  %v2465_v60 = vld [vmem:[#allocation5 + $0x24] sm:$0xf0] }
  0xdd   :  { %v2179_v1 = vor.u32 %v2465_v60, %v2178_v58 }
  0xde   :  { %733 = vmatmul.bf16.gmra.mxu0 %v502_v3  ;;  %782 = vmatmul.bf16.gmra.mxu1 %v503_v4  ;;  %v2879_v7 = vpop.f32.mrf.mxu2  ;;  %v2881_v8 = vpop.f32.mrf.mxu3 }
  0xdf   :  { %831 = vmatmul.bf16.gmra.mxu2 %v502_v3  ;;  %880 = vmatmul.bf16.gmra.mxu3 %v503_v4  ;;  %v259_v9 = vpop.f32.mrf.mxu0  ;;  %v308_v10 = vpop.f32.mrf.mxu1 }
  0xe0   :  { %v448_v23 = vadd.f32 %v2831_v5, %v259_v9  ;;  %v449_v24 = vadd.f32 %v2833_v6, %v308_v10  ;;  %1298 = vmatpush.bf16.msra.mxu3 %v2247_v59  ;;  %1151 = vmatpush.bf16.msra.mxu0 %v2179_v1 }
  0xe2   :  { %v480_v32 = vmax.f32 %v448_v23, 0.0  ;;  %v481_v37 = vmax.f32 %v449_v24, 0.0 }
  0xe6   :  { %v2885_v26 = vpop.f32.mrf.mxu2  ;;  %v2887_v27 = vpop.f32.mrf.mxu3 }
  0xe7   :  { %v261_v28 = vpop.f32.mrf.mxu0  ;;  %v310_v29 = vpop.f32.mrf.mxu1 }
  0xe8   :  { %v450_v30 = vadd.f32 %v2831_v5, %v261_v28  ;;  %v451_v31 = vadd.f32 %v2833_v6, %v310_v29  ;;  %v2462_v29 = vld [vmem:[#allocation5 + $0x14] sm:$0xf] }
  0xea   :  { %v482_v38 = vmax.f32 %v450_v30, 0.0  ;;  %v483_v39 = vmax.f32 %v451_v31, 0.0  ;;  %v2172_v30 = vld [vmem:[#allocation5 + $0x18] sm:$0xf0]  ;;  %v2478_v31 = vld [vmem:[#allocation5 + $0x94] sm:$0xf] }
  0xec   :  { %v504_v43 = vpack.c.bf16 %v482_v38, %v480_v32  ;;  %v505_v44 = vpack.c.bf16 %v483_v39, %v481_v37  ;;  %v2175_v32 = vor.u32 %v2462_v29, %v2172_v30  ;;  %v2236_v37 = vld [vmem:[#allocation5 + $0x98] sm:$0xf0]  ;;  %v2170_v38 = vld [vmem:[#allocation5 + $0x10] sm:$0xf]  ;;  %v2463_v39 = vld [vmem:[#allocation5 + $0x14] sm:$0xf0] }
  0xed   :  { %v2239_v40 = vor.u32 %v2478_v31, %v2236_v37  ;;  %v2171_v41 = vor.u32 %v2463_v39, %v2170_v38  ;;  %v2228_v29 = vld [vmem:[#allocation5 + $0x88] sm:$0xf0]  ;;  %v2162_v30 = vld [vmem:[#allocation5] sm:$0xf]  ;;  %v2461_v38 = vld [vmem:[#allocation5 + $0x4] sm:$0xf0] }
  0xee   :  { %738 = vmatmul.bf16.gmra.mxu0 %v504_v43  ;;  %787 = vmatmul.bf16.gmra.mxu1 %v505_v44  ;;  %v2891_v45 = vpop.f32.mrf.mxu2  ;;  %v2893_v46 = vpop.f32.mrf.mxu3 }
  0xef   :  { %836 = vmatmul.bf16.gmra.mxu2 %v504_v43  ;;  %885 = vmatmul.bf16.gmra.mxu3 %v505_v44  ;;  %v264_v47 = vpop.f32.mrf.mxu0  ;;  %v313_v50 = vpop.f32.mrf.mxu1  ;;  %v2479_v43 = vld [vmem:[#allocation5 + $0x94] sm:$0xf0] }
  0xf0   :  { %v452_v61 = vadd.f32 %v2831_v5, %v264_v47  ;;  %v453_v62 = vadd.f32 %v2833_v6, %v313_v50  ;;  %1250 = vmatpush.bf16.msra.mxu2 %v2175_v32  ;;  %v2235_v50 = vor.u32 %v2479_v43, %v2234_v42  ;;  %1299 = vmatpush.bf16.msra.mxu3 %v2239_v40 }
  0xf1   :  { %1152 = vmatpush.bf16.msra.mxu0 %v2171_v41  ;;  %v2163_v41 = vor.u32 %v2461_v38, %v2162_v30  ;;  %v2507_v30 = vld [vmem:[#allocation7 + $0x78] sm:$0xff] }
  0xf2   :  { %v484_v12 = vmax.f32 %v452_v61, 0.0  ;;  %v485_v13 = vmax.f32 %v453_v62, 0.0  ;;  %1201 = vmatpush.bf16.msra.mxu1 %v2235_v50  ;;  %v2226_v50 = vld [vmem:[#allocation5 + $0x80] sm:$0xf] }
  0xf5   :  { %1153 = vmatpush.bf16.msra.mxu0 %v2163_v41 }
  0xf6   :  { %v2899_v10 = vpop.f32.mrf.mxu2  ;;  %v2901_v11 = vpop.f32.mrf.mxu3 }
  0xf7   :  { %v266_v2 = vpop.f32.mrf.mxu0  ;;  %v315_v3 = vpop.f32.mrf.mxu1 }
  0xf8   :  { %v454_v4 = vadd.f32 %v2831_v5, %v266_v2  ;;  %v455_v9 = vadd.f32 %v2833_v6, %v315_v3 }
  0xfa   :  { %v486_v14 = vmax.f32 %v454_v4, 0.0  ;;  %v487_v15 = vmax.f32 %v455_v9, 0.0 }
  0xfc   :  { %v506_v23 = vpack.c.bf16 %v486_v14, %v484_v12  ;;  %v507_v24 = vpack.c.bf16 %v487_v15, %v485_v13  ;;  %v2460_v13 = vld [vmem:[#allocation5 + $0x4] sm:$0xf]  ;;  %v2164_v14 = vld [vmem:[#allocation5 + $0x8] sm:$0xf0] }
  0xfd   :  { %v2167_v15 = vor.u32 %v2460_v13, %v2164_v14 }
  0xfe   :  { %743 = vmatmul.bf16.gmra.mxu0 %v506_v23  ;;  %792 = vmatmul.bf16.gmra.mxu1 %v507_v24  ;;  %v2903_v44 = vpop.f32.mrf.mxu2  ;;  %v2905_v47 = vpop.f32.mrf.mxu3 }
  0xff   :  { %841 = vmatmul.bf16.gmra.mxu2 %v506_v23  ;;  %890 = vmatmul.bf16.gmra.mxu3 %v507_v24  ;;  %v269_v25 = vpop.f32.mrf.mxu0  ;;  %v318_v28 = vpop.f32.mrf.mxu1 }
 0x100   :  { %v456_v51 = vadd.f32 %v2831_v5, %v269_v25  ;;  %v457_v54 = vadd.f32 %v2833_v6, %v318_v28  ;;  %1251 = vmatpush.bf16.msra.mxu2 %v2167_v15  ;;  %v2476_v28 = vld [vmem:[#allocation5 + $0x84] sm:$0xf] }
 0x101   :  { %v2231_v37 = vor.u32 %v2476_v28, %v2228_v29 }
 0x102   :  { %v488_v59 = vmax.f32 %v456_v51, 0.0  ;;  %v489_v60 = vmax.f32 %v457_v54, 0.0  ;;  %v2477_v51 = vld [vmem:[#allocation5 + $0x84] sm:$0xf0] }
 0x103   :  { %1300 = vmatpush.bf16.msra.mxu3 %v2231_v37  ;;  %v2227_v54 = vor.u32 %v2477_v51, %v2226_v50 }
 0x105   :  { %1202 = vmatpush.bf16.msra.mxu1 %v2227_v54 }
 0x106   :  { %v2911_v1 = vpop.f32.mrf.mxu2  ;;  %v2913_v2 = vpop.f32.mrf.mxu3 }
 0x107   :  { %v271_v55 = vpop.f32.mrf.mxu0  ;;  %v320_v56 = vpop.f32.mrf.mxu1  ;;  %1831 = vmatpush.bf16.msrb.mxu3 %v2507_v30 }
 0x108   :  { %v458_v57 = vadd.f32 %v2831_v5, %v271_v55  ;;  %v459_v58 = vadd.f32 %v2833_v6, %v320_v56 }
 0x10a   :  { %v490_v61 = vmax.f32 %v458_v57, 0.0  ;;  %v491_v62 = vmax.f32 %v459_v58, 0.0  ;;  %v544_v57 = vld [vmem:[%s3149_s4] sm:$0x3] }
 0x10c   :  { %v508_v3 = vpack.c.bf16 %v490_v61, %v488_v59  ;;  %v509_v4 = vpack.c.bf16 %v491_v62, %v489_v60  ;;  %v2934_v62 = vperm.slane %v544_v57, 0 }
 0x10e   :  { %748 = vmatmul.bf16.gmra.mxu0 %v508_v3  ;;  %797 = vmatmul.bf16.gmra.mxu1 %v509_v4  ;;  %v2917_v22 = vpop.f32.mrf.mxu2  ;;  %v2919_v23 = vpop.f32.mrf.mxu3 }
 0x10f   :  { %846 = vmatmul.bf16.gmra.mxu2 %v508_v3  ;;  %895 = vmatmul.bf16.gmra.mxu3 %v509_v4  ;;  %v274_v9 = vpop.f32.mrf.mxu0  ;;  %v323_v12 = vpop.f32.mrf.mxu1 }
 0x110   :  { %v460_v20 = vadd.f32 %v2831_v5, %v274_v9  ;;  %v461_v21 = vadd.f32 %v2833_v6, %v323_v12  ;;  %v2937_v12 = vperm.slane %v544_v57, 1 }
 0x112   :  { %v492_v39 = vmax.f32 %v460_v20, 0.0  ;;  %v493_v40 = vmax.f32 %v461_v21, 0.0 }
 0x117   :  { %v276_v24 = vpop.f32.mrf.mxu0  ;;  %v325_v25 = vpop.f32.mrf.mxu1 }
 0x118   :  { %v462_v31 = vadd.f32 %v2831_v5, %v276_v24  ;;  %v463_v32 = vadd.f32 %v2833_v6, %v325_v25  ;;  %v2923_v5 = vpop.f32.mrf.mxu2  ;;  %v2925_v6 = vpop.f32.mrf.mxu3  ;;  %v2499_v25 = vld [vmem:[#allocation7 + $0x38] sm:$0xff] }
 0x119   :  { %3156 = vst [vmem:[#allocation15_spill] sm:$0xff] %v2925_v6  ;;  %1782 = vmatpush.bf16.msrb.mxu2 %v2499_v25  ;;  %v2514_v25 = vld [vmem:[#allocation8 + $0x30] sm:$0xff] }
 0x11a   :  { %v494_v42 = vmax.f32 %v462_v31, 0.0  ;;  %v495_v43 = vmax.f32 %v463_v32, 0.0  ;;  %v2515_v31 = vld [vmem:[#allocation8 + $0x38] sm:$0xff] }
 0x11b   :  { %v2523_v32 = vld [vmem:[#allocation8 + $0x78] sm:$0xff]  ;;  %1588 = vmatpush.bf16.msrb.mxu0 %v2515_v31 }
 0x11c   :  { %v510_v55 = vpack.c.bf16 %v494_v42, %v492_v39  ;;  %v511_v56 = vpack.c.bf16 %v495_v43, %v493_v40  ;;  %1637 = vmatpush.bf16.msrb.mxu1 %v2523_v32 }
 0x11e   :  { %753 = vmatmul.bf16.gmra.mxu0 %v510_v55  ;;  %802 = vmatmul.bf16.gmra.mxu1 %v511_v56 }
 0x11f   :  { %851 = vmatmul.bf16.gmra.mxu2 %v510_v55  ;;  %900 = vmatmul.bf16.gmra.mxu3 %v511_v56 }
 0x120   :  { %v2930_v58 = vpop.f32.mrf.mxu2  ;;  %v2932_v59 = vpop.f32.mrf.mxu3  ;;  %1589 = vmatpush.bf16.msrb.mxu0 %v2514_v25 }
 0x121   :  { %3157 = vst [vmem:[#allocation16_spill] sm:$0xff] %v2930_v58 }
 0x122   :  { %3158 = vst [vmem:[#allocation17_spill] sm:$0xff] %v2932_v59 }
 0x12b   :  { %v719_v60 = vpop.f32.mrf.mxu0  ;;  %v768_v61 = vpop.f32.mrf.mxu1 }
 0x12c   :  { %v720_v3 = vadd.f32 %v719_v60, %v2934_v62 }
 0x12e   :  { %v769_v15 = vadd.f32 %v768_v61, %v720_v3 }
 0x130   :  { %v906_v28 = vmax.f32 %v769_v15, 0.0  ;;  %v2498_v15 = vld [vmem:[#allocation7 + $0x30] sm:$0xff] }
 0x131   :  { %1783 = vmatpush.bf16.msrb.mxu2 %v2498_v15 }
 0x132   :  { %v817_v4 = vpop.f32.mrf.mxu2  ;;  %v866_v9 = vpop.f32.mrf.mxu3 }
 0x133   :  { %v721_v13 = vpop.f32.mrf.mxu0  ;;  %v770_v14 = vpop.f32.mrf.mxu1  ;;  %v818_v24 = vadd.f32 %v817_v4, %v2937_v12 }
 0x134   :  { %v722_v20 = vadd.f32 %v721_v13, %v2934_v62 }
 0x135   :  { %v867_v40 = vadd.f32 %v866_v9, %v818_v24  ;;  %v2506_v24 = vld [vmem:[#allocation7 + $0x70] sm:$0xff] }
 0x136   :  { %v771_v21 = vadd.f32 %v770_v14, %v722_v20  ;;  %1832 = vmatpush.bf16.msrb.mxu3 %v2506_v24  ;;  %v2521_v24 = vld [vmem:[#allocation8 + $0x68] sm:$0xff] }
 0x137   :  { %v907_v51 = vmax.f32 %v867_v40, 0.0 }
 0x138   :  { %v908_v29 = vmax.f32 %v771_v21, 0.0 }
 0x13a   :  { %v2941_v37 = vpack.c.bf16 %v908_v29, %v906_v28  ;;  %v819_v38 = vpop.f32.mrf.mxu2  ;;  %v868_v39 = vpop.f32.mrf.mxu3  ;;  %v2522_v28 = vld [vmem:[#allocation8 + $0x70] sm:$0xff] }
 0x13b   :  { %v820_v41 = vadd.f32 %v819_v38, %v2937_v12  ;;  %v724_v42 = vpop.f32.mrf.mxu0  ;;  %v773_v43 = vpop.f32.mrf.mxu1  ;;  %1638 = vmatpush.bf16.msrb.mxu1 %v2522_v28 }
 0x13c   :  { %1154 = vmatmul.bf16.vlgmr.msra.gmra.mxu0 %v2941_v37  ;;  %1252 = vmatmul.bf16.vlgmr.msra.gmra.mxu2 %v2941_v37  ;;  %v725_v55 = vadd.f32 %v724_v42, %v2934_v62 }
 0x13d   :  { %v869_v50 = vadd.f32 %v868_v39, %v820_v41 }
 0x13e   :  { %v774_v4 = vadd.f32 %v773_v43, %v725_v55 }
 0x13f   :  { %v909_v54 = vmax.f32 %v869_v50, 0.0  ;;  %1639 = vmatpush.bf16.msrb.mxu1 %v2521_v24  ;;  %v2520_v24 = vld [vmem:[#allocation8 + $0x60] sm:$0xff] }
 0x140   :  { %v910_v20 = vmax.f32 %v774_v4, 0.0 }
 0x141   :  { %v2947_v56 = vpack.c.bf16 %v909_v54, %v907_v51 }
 0x142   :  { %v822_v57 = vpop.f32.mrf.mxu2  ;;  %v871_v60 = vpop.f32.mrf.mxu3 }
 0x143   :  { %1203 = vmatmul.bf16.vlgmr.msra.gmra.mxu1 %v2947_v56  ;;  %1301 = vmatmul.bf16.vlgmr.msra.gmra.mxu3 %v2947_v56  ;;  %v726_v61 = vpop.f32.mrf.mxu0  ;;  %v775_v3 = vpop.f32.mrf.mxu1  ;;  %v823_v14 = vadd.f32 %v822_v57, %v2937_v12 }
 0x144   :  { %v727_v9 = vadd.f32 %v726_v61, %v2934_v62  ;;  %1640 = vmatpush.bf16.msrb.mxu1 %v2520_v24  ;;  %v2503_v24 = vld [vmem:[#allocation7 + $0x58] sm:$0xff] }
 0x145   :  { %v872_v32 = vadd.f32 %v871_v60, %v823_v14 }
 0x146   :  { %v776_v13 = vadd.f32 %v775_v3, %v727_v9 }
 0x147   :  { %v911_v42 = vmax.f32 %v872_v32, 0.0 }
 0x148   :  { %v912_v21 = vmax.f32 %v776_v13, 0.0  ;;  %v2497_v13 = vld [vmem:[#allocation7 + $0x28] sm:$0xff] }
 0x149   :  { %1784 = vmatpush.bf16.msrb.mxu2 %v2497_v13  ;;  %v2496_v13 = vld [vmem:[#allocation7 + $0x20] sm:$0xff] }
 0x14a   :  { %v824_v29 = vpop.f32.mrf.mxu2  ;;  %v873_v30 = vpop.f32.mrf.mxu3  ;;  %v2953_v31 = vpack.c.bf16 %v912_v21, %v910_v20  ;;  %v2505_v20 = vld [vmem:[#allocation7 + $0x68] sm:$0xff] }
 0x14b   :  { %v825_v38 = vadd.f32 %v824_v29, %v2937_v12  ;;  %v729_v39 = vpop.f32.mrf.mxu0  ;;  %v778_v40 = vpop.f32.mrf.mxu1  ;;  %v2513_v21 = vld [vmem:[#allocation8 + $0x28] sm:$0xff]  ;;  %1833 = vmatpush.bf16.msrb.mxu3 %v2505_v20  ;;  %v2504_v20 = vld [vmem:[#allocation7 + $0x60] sm:$0xff] }
 0x14c   :  { %1159 = vmatmul.bf16.gmra.mxu0 %v2953_v31  ;;  %1257 = vmatmul.bf16.gmra.mxu2 %v2953_v31  ;;  %v730_v50 = vadd.f32 %v729_v39, %v2934_v62 }
 0x14d   :  { %v874_v41 = vadd.f32 %v873_v30, %v825_v38  ;;  %1590 = vmatpush.bf16.msrb.mxu0 %v2513_v21  ;;  %v2512_v21 = vld [vmem:[#allocation8 + $0x20] sm:$0xff]  ;;  %1785 = vmatpush.bf16.msrb.mxu2 %v2496_v13 }
 0x14e   :  { %v779_v61 = vadd.f32 %v778_v40, %v730_v50 }
 0x14f   :  { %v913_v43 = vmax.f32 %v874_v41, 0.0  ;;  %1834 = vmatpush.bf16.msrb.mxu3 %v2504_v20 }
 0x150   :  { %v914_v14 = vmax.f32 %v779_v61, 0.0 }
 0x151   :  { %v2959_v51 = vpack.c.bf16 %v913_v43, %v911_v42  ;;  %1591 = vmatpush.bf16.msrb.mxu0 %v2512_v21 }
 0x152   :  { %v827_v54 = vpop.f32.mrf.mxu2  ;;  %v876_v55 = vpop.f32.mrf.mxu3 }
 0x153   :  { %1208 = vmatmul.bf16.gmra.mxu1 %v2959_v51  ;;  %1306 = vmatmul.bf16.gmra.mxu3 %v2959_v51  ;;  %v731_v57 = vpop.f32.mrf.mxu0  ;;  %v780_v60 = vpop.f32.mrf.mxu1  ;;  %v828_v9 = vadd.f32 %v827_v54, %v2937_v12 }
 0x154   :  { %v732_v3 = vadd.f32 %v731_v57, %v2934_v62  ;;  %1835 = vmatpush.bf16.msrb.mxu3 %v2503_v24 }
 0x155   :  { %v877_v30 = vadd.f32 %v876_v55, %v828_v9 }
 0x156   :  { %v781_v4 = vadd.f32 %v780_v60, %v732_v3 }
 0x157   :  { %v915_v41 = vmax.f32 %v877_v30, 0.0 }
 0x158   :  { %v916_v15 = vmax.f32 %v781_v4, 0.0 }
 0x15a   :  { %v829_v25 = vpop.f32.mrf.mxu2  ;;  %v878_v28 = vpop.f32.mrf.mxu3  ;;  %v2965_v29 = vpack.c.bf16 %v916_v15, %v914_v14 }
 0x15b   :  { %v830_v32 = vadd.f32 %v829_v25, %v2937_v12  ;;  %v734_v38 = vpop.f32.mrf.mxu0  ;;  %v783_v39 = vpop.f32.mrf.mxu1 }
 0x15c   :  { %1164 = vmatmul.bf16.gmra.mxu0 %v2965_v29  ;;  %1262 = vmatmul.bf16.gmra.mxu2 %v2965_v29  ;;  %v735_v43 = vadd.f32 %v734_v38, %v2934_v62 }
 0x15d   :  { %v879_v40 = vadd.f32 %v878_v28, %v830_v32 }
 0x15e   :  { %v784_v61 = vadd.f32 %v783_v39, %v735_v43 }
 0x15f   :  { %v917_v42 = vmax.f32 %v879_v40, 0.0 }
 0x160   :  { %v918_v14 = vmax.f32 %v784_v61, 0.0 }
 0x161   :  { %v2971_v50 = vpack.c.bf16 %v917_v42, %v915_v41 }
 0x162   :  { %v832_v54 = vpop.f32.mrf.mxu2  ;;  %v881_v57 = vpop.f32.mrf.mxu3 }
 0x163   :  { %1213 = vmatmul.bf16.gmra.mxu1 %v2971_v50  ;;  %1311 = vmatmul.bf16.gmra.mxu3 %v2971_v50  ;;  %v736_v55 = vpop.f32.mrf.mxu0  ;;  %v785_v60 = vpop.f32.mrf.mxu1  ;;  %v833_v9 = vadd.f32 %v832_v54, %v2937_v12 }
 0x164   :  { %v737_v3 = vadd.f32 %v736_v55, %v2934_v62 }
 0x165   :  { %v882_v32 = vadd.f32 %v881_v57, %v833_v9 }
 0x166   :  { %v786_v4 = vadd.f32 %v785_v60, %v737_v3 }
 0x167   :  { %v919_v42 = vmax.f32 %v882_v32, 0.0 }
 0x168   :  { %v920_v15 = vmax.f32 %v786_v4, 0.0 }
 0x16a   :  { %v834_v25 = vpop.f32.mrf.mxu2  ;;  %v883_v28 = vpop.f32.mrf.mxu3  ;;  %v2977_v30 = vpack.c.bf16 %v920_v15, %v918_v14  ;;  %v2495_v15 = vld [vmem:[#allocation7 + $0x18] sm:$0xff] }
 0x16b   :  { %v835_v38 = vadd.f32 %v834_v25, %v2937_v12  ;;  %v739_v39 = vpop.f32.mrf.mxu0  ;;  %v788_v40 = vpop.f32.mrf.mxu1  ;;  %v2511_v25 = vld [vmem:[#allocation8 + $0x18] sm:$0xff]  ;;  %1786 = vmatpush.bf16.msrb.mxu2 %v2495_v15 }
 0x16c   :  { %1169 = vmatmul.bf16.gmra.mxu0 %v2977_v30  ;;  %1267 = vmatmul.bf16.gmra.mxu2 %v2977_v30  ;;  %v740_v54 = vadd.f32 %v739_v39, %v2934_v62 }
 0x16d   :  { %v884_v41 = vadd.f32 %v883_v28, %v835_v38  ;;  %v2519_v28 = vld [vmem:[#allocation8 + $0x58] sm:$0xff]  ;;  %1592 = vmatpush.bf16.msrb.mxu0 %v2511_v25  ;;  %v2494_v25 = vld [vmem:[#allocation7 + $0x10] sm:$0xff] }
 0x16e   :  { %v789_v4 = vadd.f32 %v788_v40, %v740_v54  ;;  %1641 = vmatpush.bf16.msrb.mxu1 %v2519_v28 }
 0x16f   :  { %v921_v43 = vmax.f32 %v884_v41, 0.0  ;;  %1787 = vmatpush.bf16.msrb.mxu2 %v2494_v25 }
 0x170   :  { %v922_v20 = vmax.f32 %v789_v4, 0.0 }
 0x171   :  { %v2983_v55 = vpack.c.bf16 %v921_v43, %v919_v42 }
 0x172   :  { %v837_v60 = vpop.f32.mrf.mxu2  ;;  %v886_v61 = vpop.f32.mrf.mxu3 }
 0x173   :  { %1218 = vmatmul.bf16.gmra.mxu1 %v2983_v55  ;;  %1316 = vmatmul.bf16.gmra.mxu3 %v2983_v55  ;;  %v741_v57 = vpop.f32.mrf.mxu0  ;;  %v790_v3 = vpop.f32.mrf.mxu1  ;;  %v838_v14 = vadd.f32 %v837_v60, %v2937_v12 }
 0x174   :  { %v742_v9 = vadd.f32 %v741_v57, %v2934_v62 }
 0x175   :  { %v887_v41 = vadd.f32 %v886_v61, %v838_v14 }
 0x176   :  { %v791_v13 = vadd.f32 %v790_v3, %v742_v9 }
 0x177   :  { %v923_v60 = vmax.f32 %v887_v41, 0.0  ;;  %v2510_v41 = vld [vmem:[#allocation8 + $0x10] sm:$0xff] }
 0x178   :  { %v924_v21 = vmax.f32 %v791_v13, 0.0  ;;  %1593 = vmatpush.bf16.msrb.mxu0 %v2510_v41  ;;  %v2509_v41 = vld [vmem:[#allocation8 + $0x8] sm:$0xff] }
 0x17a   :  { %v839_v32 = vpop.f32.mrf.mxu2  ;;  %v888_v38 = vpop.f32.mrf.mxu3  ;;  %v2989_v39 = vpack.c.bf16 %v924_v21, %v922_v20 }
 0x17b   :  { %v840_v40 = vadd.f32 %v839_v32, %v2937_v12  ;;  %v744_v42 = vpop.f32.mrf.mxu0  ;;  %v793_v43 = vpop.f32.mrf.mxu1 }
 0x17c   :  { %1174 = vmatmul.bf16.gmra.mxu0 %v2989_v39  ;;  %1272 = vmatmul.bf16.gmra.mxu2 %v2989_v39  ;;  %v745_v3 = vadd.f32 %v744_v42, %v2934_v62 }
 0x17d   :  { %v889_v54 = vadd.f32 %v888_v38, %v840_v40  ;;  %v2502_v38 = vld [vmem:[#allocation7 + $0x50] sm:$0xff]  ;;  %1594 = vmatpush.bf16.msrb.mxu0 %v2509_v41 }
 0x17e   :  { %v794_v15 = vadd.f32 %v793_v43, %v745_v3  ;;  %v2518_v40 = vld [vmem:[#allocation8 + $0x50] sm:$0xff]  ;;  %1836 = vmatpush.bf16.msrb.mxu3 %v2502_v38  ;;  %v2501_v38 = vld [vmem:[#allocation7 + $0x48] sm:$0xff] }
 0x17f   :  { %v925_v57 = vmax.f32 %v889_v54, 0.0  ;;  %1642 = vmatpush.bf16.msrb.mxu1 %v2518_v40 }
 0x180   :  { %v926_v28 = vmax.f32 %v794_v15, 0.0 }
 0x181   :  { %v2995_v4 = vpack.c.bf16 %v925_v57, %v923_v60 }
 0x182   :  { %v842_v9 = vpop.f32.mrf.mxu2  ;;  %v891_v13 = vpop.f32.mrf.mxu3  ;;  %1837 = vmatpush.bf16.msrb.mxu3 %v2501_v38 }
 0x183   :  { %1223 = vmatmul.bf16.gmra.mxu1 %v2995_v4  ;;  %1321 = vmatmul.bf16.gmra.mxu3 %v2995_v4  ;;  %v746_v61 = vpop.f32.mrf.mxu0  ;;  %v795_v14 = vpop.f32.mrf.mxu1  ;;  %v843_v24 = vadd.f32 %v842_v9, %v2937_v12 }
 0x184   :  { %v747_v20 = vadd.f32 %v746_v61, %v2934_v62 }
 0x185   :  { %v892_v57 = vadd.f32 %v891_v13, %v843_v24 }
 0x186   :  { %v796_v21 = vadd.f32 %v795_v14, %v747_v20 }
 0x187   :  { %v927_v14 = vmax.f32 %v892_v57, 0.0 }
 0x188   :  { %v928_v32 = vmax.f32 %v796_v21, 0.0 }
 0x18a   :  { %v844_v42 = vpop.f32.mrf.mxu2  ;;  %v893_v54 = vpop.f32.mrf.mxu3  ;;  %v3001_v60 = vpack.c.bf16 %v928_v32, %v926_v28  ;;  %v2493_v32 = vld [vmem:[#allocation7 + $0x8] sm:$0xff] }
 0x18b   :  { %v845_v43 = vadd.f32 %v844_v42, %v2937_v12  ;;  %v749_v3 = vpop.f32.mrf.mxu0  ;;  %v798_v61 = vpop.f32.mrf.mxu1  ;;  %1788 = vmatpush.bf16.msrb.mxu2 %v2493_v32  ;;  %v2500_v32 = vld [vmem:[#allocation7 + $0x40] sm:$0xff] }
 0x18c   :  { %1179 = vmatmul.bf16.gmra.mxu0 %v3001_v60  ;;  %1277 = vmatmul.bf16.gmra.mxu2 %v3001_v60  ;;  %v750_v20 = vadd.f32 %v749_v3, %v2934_v62 }
 0x18d   :  { %v894_v9 = vadd.f32 %v893_v54, %v845_v43  ;;  %v2517_v54 = vld [vmem:[#allocation8 + $0x48] sm:$0xff]  ;;  %1838 = vmatpush.bf16.msrb.mxu3 %v2500_v32  ;;  %v2508_v32 = vld [vmem:[#allocation8] sm:$0xff] }
 0x18e   :  { %v799_v40 = vadd.f32 %v798_v61, %v750_v20  ;;  %1643 = vmatpush.bf16.msrb.mxu1 %v2517_v54  ;;  %1595 = vmatpush.bf16.msrb.mxu0 %v2508_v32 }
 0x18f   :  { %v929_v15 = vmax.f32 %v894_v9, 0.0 }
 0x190   :  { %v930_v3 = vmax.f32 %v799_v40, 0.0 }
 0x191   :  { %v3007_v21 = vpack.c.bf16 %v929_v15, %v927_v14  ;;  %v2492_v14 = vld [vmem:[#allocation7] sm:$0xff] }
 0x192   :  { %v847_v25 = vpop.f32.mrf.mxu2  ;;  %v896_v28 = vpop.f32.mrf.mxu3  ;;  %1789 = vmatpush.bf16.msrb.mxu2 %v2492_v14 }
 0x193   :  { %1228 = vmatmul.bf16.gmra.mxu1 %v3007_v21  ;;  %1326 = vmatmul.bf16.gmra.mxu3 %v3007_v21  ;;  %v751_v13 = vpop.f32.mrf.mxu0  ;;  %v800_v24 = vpop.f32.mrf.mxu1  ;;  %v848_v43 = vadd.f32 %v847_v25, %v2937_v12 }
 0x194   :  { %v752_v42 = vadd.f32 %v751_v13, %v2934_v62 }
 0x195   :  { %v897_v58 = vadd.f32 %v896_v28, %v848_v43 }
 0x196   :  { %v801_v57 = vadd.f32 %v800_v24, %v752_v42 }
 0x197   :  { %v931_v25 = vmax.f32 %v897_v58, 0.0 }
 0x198   :  { %v932_v9 = vmax.f32 %v801_v57, 0.0 }
 0x19a   :  { %v849_v15 = vpop.f32.mrf.mxu2  ;;  %v898_v59 = vpop.f32.mrf.mxu3  ;;  %v3013_v6 = vpack.c.bf16 %v932_v9, %v930_v3 }
 0x19b   :  { %v850_v61 = vadd.f32 %v849_v15, %v2937_v12  ;;  %v754_v20 = vpop.f32.mrf.mxu0  ;;  %v803_v13 = vpop.f32.mrf.mxu1 }
 0x19c   :  { %1184 = vmatmul.bf16.gmra.mxu0 %v3013_v6  ;;  %1282 = vmatmul.bf16.gmra.mxu2 %v3013_v6  ;;  %v755_v41 = vadd.f32 %v754_v20, %v2934_v62 }
 0x19d   :  { %v899_v24 = vadd.f32 %v898_v59, %v850_v61 }
 0x19e   :  { %v804_v57 = vadd.f32 %v803_v13, %v755_v41 }
 0x19f   :  { %v933_v38 = vmax.f32 %v899_v24, 0.0 }
 0x1a0   :  { %v934_v9 = vmax.f32 %v804_v57, 0.0 }
 0x1a1   :  { %v3019_v40 = vpack.c.bf16 %v933_v38, %v931_v25  ;;  %v2516_v25 = vld [vmem:[#allocation8 + $0x40] sm:$0xff] }
 0x1a2   :  { %v852_v42 = vpop.f32.mrf.mxu2  ;;  %v901_v54 = vpop.f32.mrf.mxu3  ;;  %1644 = vmatpush.bf16.msrb.mxu1 %v2516_v25 }
 0x1a3   :  { %1233 = vmatmul.bf16.gmra.mxu1 %v3019_v40  ;;  %1331 = vmatmul.bf16.gmra.mxu3 %v3019_v40  ;;  %v756_v28 = vpop.f32.mrf.mxu0  ;;  %v805_v3 = vpop.f32.mrf.mxu1  ;;  %v853_v58 = vadd.f32 %v852_v42, %v2937_v12 }
 0x1a4   :  { %v757_v43 = vadd.f32 %v756_v28, %v2934_v62 }
 0x1a5   :  { %v902_v20 = vadd.f32 %v901_v54, %v853_v58 }
 0x1a6   :  { %v806_v59 = vadd.f32 %v805_v3, %v757_v43  ;;  %v1342_v43 = vld [vmem:[%s3151_s6] sm:$0x3] }
 0x1a7   :  { %v935_v13 = vmax.f32 %v902_v20, 0.0  ;;  %v3040_v58 = vperm.slane %v1342_v43, 0 }
 0x1a8   :  { %v936_v14 = vmax.f32 %v806_v59, 0.0 }
 0x1aa   :  { %v854_v15 = vpop.f32.mrf.mxu2  ;;  %v3025_v61 = vpack.c.bf16 %v936_v14, %v934_v9  ;;  %v903_v38 = vpop.f32.mrf.mxu3 }
 0x1ab   :  { %v855_v24 = vadd.f32 %v854_v15, %v2937_v12 }
 0x1ac   :  { %1189 = vmatmul.bf16.gmra.mxu0 %v3025_v61  ;;  %1287 = vmatmul.bf16.gmra.mxu2 %v3025_v61 }
 0x1ad   :  { %v904_v62 = vadd.f32 %v903_v38, %v855_v24 }
 0x1af   :  { %v937_v41 = vmax.f32 %v904_v62, 0.0  ;;  %v3045_v62 = vperm.slane %v1342_v43, 1 }
 0x1b1   :  { %v3030_v42 = vpack.c.bf16 %v937_v41, %v935_v13 }
 0x1b3   :  { %1238 = vmatmul.bf16.gmra.mxu1 %v3030_v42  ;;  %1336 = vmatmul.bf16.gmra.mxu3 %v3030_v42 }
 0x1b9   :  { %v1155_v54 = vpop.f32.mrf.mxu0 }
 0x1ba   :  { %v1156_v3 = vadd.f32 %v1155_v54, %v2837_v18 }
 0x1bc   :  { %1790 = vmatmul.bf16.vlgmr.msrb.gmra.mxu2 %v2941_v37 }
 0x1bf   :  { %v1253_v12 = vpop.f32.mrf.mxu2 }
 0x1c0   :  { %v1204_v28 = vpop.f32.mrf.mxu1  ;;  %v1254_v24 = vadd.f32 %v1253_v12, %v2839_v19 }
 0x1c1   :  { %v1157_v57 = vpop.f32.mrf.mxu0  ;;  %v1205_v59 = vadd.f32 %v1204_v28, %v1156_v3 }
 0x1c2   :  { %v1158_v14 = vadd.f32 %v1157_v57, %v2843_v33 }
 0x1c3   :  { %1839 = vmatmul.bf16.vlgmr.msrb.gmra.mxu3 %v2947_v56  ;;  %v1348_v37 = vadd.f32 %v3040_v58, %v1205_v59 }
 0x1c5   :  { %v1380_v56 = vmax.f32 %v1348_v37, 0.0 }
 0x1c6   :  { %v1302_v9 = vpop.f32.mrf.mxu3 }
 0x1c7   :  { %v1255_v15 = vpop.f32.mrf.mxu2  ;;  %v1303_v38 = vadd.f32 %v1302_v9, %v1254_v24 }
 0x1c8   :  { %v1206_v20 = vpop.f32.mrf.mxu1  ;;  %v1256_v41 = vadd.f32 %v1255_v15, %v2845_v34 }
 0x1c9   :  { %v1207_v32 = vadd.f32 %v1206_v20, %v1158_v14  ;;  %v1160_v25 = vpop.f32.mrf.mxu0  ;;  %v1349_v54 = vadd.f32 %v3045_v62, %v1303_v38 }
 0x1ca   :  { %v1161_v9 = vadd.f32 %v1160_v25, %v2849_v48 }
 0x1cb   :  { %v1350_v18 = vadd.f32 %v3040_v58, %v1207_v32  ;;  %v1381_v59 = vmax.f32 %v1349_v54, 0.0 }
 0x1cc   :  { %1795 = vmatmul.bf16.gmra.mxu2 %v2953_v31 }
 0x1cd   :  { %v1382_v13 = vmax.f32 %v1350_v18, 0.0 }
 0x1ce   :  { %v1304_v33 = vpop.f32.mrf.mxu3 }
 0x1cf   :  { %v1412_v28 = vpack.c.bf16 %v1382_v13, %v1380_v56  ;;  %v1305_v57 = vadd.f32 %v1304_v33, %v1256_v41  ;;  %v1258_v3 = vpop.f32.mrf.mxu2 }
 0x1d0   :  { %v1209_v19 = vpop.f32.mrf.mxu1  ;;  %v1259_v38 = vadd.f32 %v1258_v3, %v2851_v49 }
 0x1d1   :  { %v1351_v12 = vadd.f32 %v3045_v62, %v1305_v57  ;;  %1596 = vmatmul.bf16.vlgmr.msrb.gmra.mxu0 %v1412_v28  ;;  %v1162_v43 = vpop.f32.mrf.mxu0  ;;  %v1210_v20 = vadd.f32 %v1209_v19, %v1161_v9 }
 0x1d2   :  { %v1163_v15 = vadd.f32 %v1162_v43, %v2855_v63 }
 0x1d3   :  { %v1383_v14 = vmax.f32 %v1351_v12, 0.0  ;;  %1844 = vmatmul.bf16.gmra.mxu3 %v2959_v51  ;;  %v1352_v32 = vadd.f32 %v3040_v58, %v1210_v20 }
 0x1d5   :  { %v1413_v31 = vpack.c.bf16 %v1383_v14, %v1381_v59  ;;  %v1384_v51 = vmax.f32 %v1352_v32, 0.0 }
 0x1d6   :  { %v1307_v34 = vpop.f32.mrf.mxu3 }
 0x1d7   :  { %1645 = vmatmul.bf16.vlgmr.msrb.gmra.mxu1 %v1413_v31  ;;  %v1260_v37 = vpop.f32.mrf.mxu2  ;;  %v1308_v13 = vadd.f32 %v1307_v34, %v1259_v38 }
 0x1d8   :  { %v1211_v24 = vpop.f32.mrf.mxu1  ;;  %v1261_v41 = vadd.f32 %v1260_v37, %v2857_v0 }
 0x1d9   :  { %v1212_v18 = vadd.f32 %v1211_v24, %v1163_v15  ;;  %v1165_v56 = vpop.f32.mrf.mxu0  ;;  %v1353_v63 = vadd.f32 %v3045_v62, %v1308_v13 }
 0x1da   :  { %v1166_v43 = vadd.f32 %v1165_v56, %v2861_v16 }
 0x1db   :  { %v1354_v48 = vadd.f32 %v3040_v58, %v1212_v18  ;;  %v1385_v12 = vmax.f32 %v1353_v63, 0.0 }
 0x1dc   :  { %1800 = vmatmul.bf16.gmra.mxu2 %v2965_v29 }
 0x1dd   :  { %v1386_v25 = vmax.f32 %v1354_v48, 0.0 }
 0x1de   :  { %v1309_v33 = vpop.f32.mrf.mxu3 }
 0x1df   :  { %v1310_v54 = vadd.f32 %v1309_v33, %v1261_v41  ;;  %v1263_v28 = vpop.f32.mrf.mxu2  ;;  %v1414_v57 = vpack.c.bf16 %v1386_v25, %v1384_v51 }
 0x1e0   :  { %v1214_v19 = vpop.f32.mrf.mxu1  ;;  %v1264_v15 = vadd.f32 %v1263_v28, %v2863_v17 }
 0x1e1   :  { %v1355_v49 = vadd.f32 %v3045_v62, %v1310_v54  ;;  %1601 = vmatmul.bf16.gmra.mxu0 %v1414_v57  ;;  %v1167_v3 = vpop.f32.mrf.mxu0  ;;  %v1215_v29 = vadd.f32 %v1214_v19, %v1166_v43 }
 0x1e2   :  { %v1168_v14 = vadd.f32 %v1167_v3, %v2867_v35 }
 0x1e3   :  { %v1387_v59 = vmax.f32 %v1355_v49, 0.0  ;;  %1849 = vmatmul.bf16.gmra.mxu3 %v2971_v50  ;;  %v1356_v34 = vadd.f32 %v3040_v58, %v1215_v29 }
 0x1e5   :  { %v1415_v9 = vpack.c.bf16 %v1387_v59, %v1385_v12  ;;  %v1388_v50 = vmax.f32 %v1356_v34, 0.0 }
 0x1e6   :  { %v1312_v0 = vpop.f32.mrf.mxu3 }
 0x1e7   :  { %1650 = vmatmul.bf16.gmra.mxu1 %v1415_v9  ;;  %v1265_v31 = vpop.f32.mrf.mxu2  ;;  %v1313_v32 = vadd.f32 %v1312_v0, %v1264_v15 }
 0x1e8   :  { %v1216_v20 = vpop.f32.mrf.mxu1  ;;  %v1266_v18 = vadd.f32 %v1265_v31, %v2869_v36 }
 0x1e9   :  { %v1217_v37 = vadd.f32 %v1216_v20, %v1168_v14  ;;  %v1170_v24 = vpop.f32.mrf.mxu0  ;;  %v1357_v35 = vadd.f32 %v3045_v62, %v1313_v32 }
 0x1ea   :  { %v1171_v63 = vadd.f32 %v1170_v24, %v2873_v52 }
 0x1eb   :  { %v1358_v16 = vadd.f32 %v3040_v58, %v1217_v37  ;;  %v1389_v33 = vmax.f32 %v1357_v35, 0.0 }
 0x1ec   :  { %1805 = vmatmul.bf16.gmra.mxu2 %v2977_v30 }
 0x1ed   :  { %v1390_v38 = vmax.f32 %v1358_v16, 0.0 }
 0x1ee   :  { %v1314_v56 = vpop.f32.mrf.mxu3 }
 0x1ef   :  { %v1315_v13 = vadd.f32 %v1314_v56, %v1266_v18  ;;  %v1268_v48 = vpop.f32.mrf.mxu2  ;;  %v1416_v51 = vpack.c.bf16 %v1390_v38, %v1388_v50 }
 0x1f0   :  { %v1219_v25 = vpop.f32.mrf.mxu1  ;;  %v1269_v12 = vadd.f32 %v1268_v48, %v2875_v53 }
 0x1f1   :  { %v1359_v17 = vadd.f32 %v3045_v62, %v1315_v13  ;;  %1606 = vmatmul.bf16.gmra.mxu0 %v1416_v51  ;;  %v1172_v41 = vpop.f32.mrf.mxu0  ;;  %v1220_v30 = vadd.f32 %v1219_v25, %v1171_v63 }
 0x1f2   :  { %v1173_v57 = vadd.f32 %v1172_v41, %v2879_v7 }
 0x1f3   :  { %v1391_v54 = vmax.f32 %v1359_v17, 0.0  ;;  %1854 = vmatmul.bf16.gmra.mxu3 %v2983_v55  ;;  %v1360_v3 = vadd.f32 %v3040_v58, %v1220_v30 }
 0x1f5   :  { %v1417_v28 = vpack.c.bf16 %v1391_v54, %v1389_v33  ;;  %v1392_v55 = vmax.f32 %v1360_v3, 0.0 }
 0x1f6   :  { %v1317_v36 = vpop.f32.mrf.mxu3 }
 0x1f7   :  { %1655 = vmatmul.bf16.gmra.mxu1 %v1417_v28  ;;  %v1270_v19 = vpop.f32.mrf.mxu2  ;;  %v1318_v29 = vadd.f32 %v1317_v36, %v1269_v12 }
 0x1f8   :  { %v1221_v49 = vpop.f32.mrf.mxu1  ;;  %v1271_v0 = vadd.f32 %v1270_v19, %v2881_v8 }
 0x1f9   :  { %v1222_v43 = vadd.f32 %v1221_v49, %v1173_v57  ;;  %v1175_v59 = vpop.f32.mrf.mxu0  ;;  %v1361_v7 = vadd.f32 %v3045_v62, %v1318_v29 }
 0x1fa   :  { %v1176_v32 = vadd.f32 %v1175_v59, %v2885_v26 }
 0x1fb   :  { %v1362_v52 = vadd.f32 %v3040_v58, %v1222_v43  ;;  %v1393_v24 = vmax.f32 %v1361_v7, 0.0 }
 0x1fc   :  { %1810 = vmatmul.bf16.gmra.mxu2 %v2989_v39 }
 0x1fd   :  { %v1394_v9 = vmax.f32 %v1362_v52, 0.0 }
 0x1fe   :  { %v1319_v14 = vpop.f32.mrf.mxu3 }
 0x1ff   :  { %v1320_v31 = vadd.f32 %v1319_v14, %v1271_v0  ;;  %v1273_v20 = vpop.f32.mrf.mxu2  ;;  %v1418_v34 = vpack.c.bf16 %v1394_v9, %v1392_v55 }
 0x200   :  { %v1224_v15 = vpop.f32.mrf.mxu1  ;;  %v1274_v13 = vadd.f32 %v1273_v20, %v2887_v27 }
 0x201   :  { %v1363_v53 = vadd.f32 %v3045_v62, %v1320_v31  ;;  %1611 = vmatmul.bf16.gmra.mxu0 %v1418_v34  ;;  %v1177_v37 = vpop.f32.mrf.mxu0  ;;  %v1225_v39 = vadd.f32 %v1224_v15, %v1176_v32 }
 0x202   :  { %v1178_v38 = vadd.f32 %v1177_v37, %v2891_v45 }
 0x203   :  { %v1395_v16 = vmax.f32 %v1363_v53, 0.0  ;;  %1859 = vmatmul.bf16.gmra.mxu3 %v2995_v4  ;;  %v1364_v35 = vadd.f32 %v3040_v58, %v1225_v39 }
 0x205   :  { %v1419_v50 = vpack.c.bf16 %v1395_v16, %v1393_v24  ;;  %v1396_v4 = vmax.f32 %v1364_v35, 0.0 }
 0x206   :  { %v1322_v8 = vpop.f32.mrf.mxu3 }
 0x207   :  { %1660 = vmatmul.bf16.gmra.mxu1 %v1419_v50  ;;  %v1275_v18 = vpop.f32.mrf.mxu2  ;;  %v1323_v25 = vadd.f32 %v1322_v8, %v1274_v13 }
 0x208   :  { %v1226_v56 = vpop.f32.mrf.mxu1  ;;  %v1276_v41 = vadd.f32 %v1275_v18, %v2893_v46 }
 0x209   :  { %v1227_v48 = vadd.f32 %v1226_v56, %v1178_v38  ;;  %v1180_v51 = vpop.f32.mrf.mxu0  ;;  %v1365_v45 = vadd.f32 %v3045_v62, %v1323_v25 }
 0x20a   :  { %v1181_v19 = vadd.f32 %v1180_v51, %v2899_v10 }
 0x20b   :  { %v1366_v26 = vadd.f32 %v3040_v58, %v1227_v48  ;;  %v1397_v57 = vmax.f32 %v1365_v45, 0.0 }
 0x20c   :  { %1815 = vmatmul.bf16.gmra.mxu2 %v3001_v60 }
 0x20d   :  { %v1398_v17 = vmax.f32 %v1366_v26, 0.0 }
 0x20e   :  { %v1324_v33 = vpop.f32.mrf.mxu3 }
 0x20f   :  { %v1325_v63 = vadd.f32 %v1324_v33, %v1276_v41  ;;  %v1278_v54 = vpop.f32.mrf.mxu2  ;;  %v1420_v30 = vpack.c.bf16 %v1398_v17, %v1396_v4 }
 0x210   :  { %v1229_v28 = vpop.f32.mrf.mxu1  ;;  %v1279_v52 = vadd.f32 %v1278_v54, %v2901_v11 }
 0x211   :  { %v1367_v27 = vadd.f32 %v3045_v62, %v1325_v63  ;;  %1616 = vmatmul.bf16.gmra.mxu0 %v1420_v30  ;;  %v1182_v36 = vpop.f32.mrf.mxu0  ;;  %v1230_v60 = vadd.f32 %v1229_v28, %v1181_v19 }
 0x212   :  { %v1183_v12 = vadd.f32 %v1182_v36, %v2903_v44 }
 0x213   :  { %v1399_v49 = vmax.f32 %v1367_v27, 0.0  ;;  %1864 = vmatmul.bf16.gmra.mxu3 %v3007_v21  ;;  %v1368_v29 = vadd.f32 %v3040_v58, %v1230_v60  ;;  %v3159_v27 = vld [vmem:[#allocation16_spill] sm:$0xff]  ;;  %v3160_v60 = vld [vmem:[#allocation15_spill] sm:$0xff] }
 0x215   :  { %v1421_v3 = vpack.c.bf16 %v1399_v49, %v1397_v57  ;;  %v1400_v21 = vmax.f32 %v1368_v29, 0.0 }
 0x216   :  { %v1327_v46 = vpop.f32.mrf.mxu3 }
 0x217   :  { %1665 = vmatmul.bf16.gmra.mxu1 %v1421_v3  ;;  %v1280_v43 = vpop.f32.mrf.mxu2  ;;  %v1328_v0 = vadd.f32 %v1327_v46, %v1279_v52 }
 0x218   :  { %v1231_v59 = vpop.f32.mrf.mxu1  ;;  %v1281_v7 = vadd.f32 %v1280_v43, %v2905_v47 }
 0x219   :  { %v1232_v55 = vadd.f32 %v1231_v59, %v1183_v12  ;;  %v1185_v9 = vpop.f32.mrf.mxu0  ;;  %v1369_v44 = vadd.f32 %v3045_v62, %v1328_v0 }
 0x21a   :  { %v1186_v32 = vadd.f32 %v1185_v9, %v2911_v1 }
 0x21b   :  { %v1370_v10 = vadd.f32 %v3040_v58, %v1232_v55  ;;  %v1401_v24 = vmax.f32 %v1369_v44, 0.0 }
 0x21c   :  { %1820 = vmatmul.bf16.gmra.mxu2 %v3013_v6 }
 0x21d   :  { %v1402_v14 = vmax.f32 %v1370_v10, 0.0 }
 0x21e   :  { %v1329_v31 = vpop.f32.mrf.mxu3 }
 0x21f   :  { %v1330_v20 = vadd.f32 %v1329_v31, %v1281_v7  ;;  %v1283_v34 = vpop.f32.mrf.mxu2  ;;  %v1422_v15 = vpack.c.bf16 %v1402_v14, %v1400_v21 }
 0x220   :  { %v1234_v53 = vpop.f32.mrf.mxu1  ;;  %v1284_v56 = vadd.f32 %v1283_v34, %v2913_v2 }
 0x221   :  { %v1371_v11 = vadd.f32 %v3045_v62, %v1330_v20  ;;  %1621 = vmatmul.bf16.gmra.mxu0 %v1422_v15  ;;  %v1187_v37 = vpop.f32.mrf.mxu0  ;;  %v1235_v6 = vadd.f32 %v1234_v53, %v1186_v32 }
 0x222   :  { %v1188_v50 = vadd.f32 %v1187_v37, %v2917_v22 }
 0x223   :  { %v1403_v16 = vmax.f32 %v1371_v11, 0.0  ;;  %1869 = vmatmul.bf16.gmra.mxu3 %v3019_v40  ;;  %v1372_v18 = vadd.f32 %v3040_v58, %v1235_v6 }
 0x225   :  { %v1423_v39 = vpack.c.bf16 %v1403_v16, %v1401_v24  ;;  %v1404_v40 = vmax.f32 %v1372_v18, 0.0 }
 0x226   :  { %v1332_v47 = vpop.f32.mrf.mxu3 }
 0x227   :  { %1670 = vmatmul.bf16.gmra.mxu1 %v1423_v39  ;;  %v1285_v8 = vpop.f32.mrf.mxu2  ;;  %v1333_v48 = vadd.f32 %v1332_v47, %v1284_v56 }
 0x228   :  { %v1236_v38 = vpop.f32.mrf.mxu1  ;;  %v1286_v25 = vadd.f32 %v1285_v8, %v2919_v23 }
 0x229   :  { %v1237_v35 = vadd.f32 %v1236_v38, %v1188_v50  ;;  %v1190_v13 = vpop.f32.mrf.mxu0  ;;  %v1373_v22 = vadd.f32 %v3045_v62, %v1333_v48 }
 0x22a   :  { %v1191_v63 = vadd.f32 %v1190_v13, %v2923_v5 }
 0x22b   :  { %v1374_v1 = vadd.f32 %v3040_v58, %v1237_v35  ;;  %v1405_v45 = vmax.f32 %v1373_v22, 0.0 }
 0x22c   :  { %1825 = vmatmul.bf16.gmra.mxu2 %v3025_v61 }
 0x22d   :  { %v1406_v51 = vmax.f32 %v1374_v1, 0.0 }
 0x22e   :  { %v1334_v26 = vpop.f32.mrf.mxu3 }
 0x22f   :  { %v1335_v4 = vadd.f32 %v1334_v26, %v1286_v25  ;;  %v1288_v17 = vpop.f32.mrf.mxu2  ;;  %v1424_v41 = vpack.c.bf16 %v1406_v51, %v1404_v40 }
 0x230   :  { %v1239_v33 = vpop.f32.mrf.mxu1  ;;  %v1289_v3 = vadd.f32 %v1288_v17, %v3160_v60 }
 0x231   :  { %v1375_v2 = vadd.f32 %v3045_v62, %v1335_v4  ;;  %1626 = vmatmul.bf16.gmra.mxu0 %v1424_v41  ;;  %v1192_v61 = vpop.f32.mrf.mxu0  ;;  %v1240_v30 = vadd.f32 %v1239_v33, %v1191_v63 }
 0x232   :  { %v1193_v36 = vadd.f32 %v1192_v61, %v3159_v27 }
 0x233   :  { %v1407_v54 = vmax.f32 %v1375_v2, 0.0  ;;  %1874 = vmatmul.bf16.gmra.mxu3 %v3030_v42  ;;  %v1376_v49 = vadd.f32 %v3040_v58, %v1240_v30  ;;  %v3161_v42 = vld [vmem:[#allocation17_spill] sm:$0xff] }
 0x235   :  { %v1425_v28 = vpack.c.bf16 %v1407_v54, %v1405_v45  ;;  %v1408_v43 = vmax.f32 %v1376_v49, 0.0 }
 0x236   :  { %v1337_v23 = vpop.f32.mrf.mxu3 }
 0x237   :  { %1675 = vmatmul.bf16.gmra.mxu1 %v1425_v28  ;;  %v1290_v57 = vpop.f32.mrf.mxu2  ;;  %v1338_v12 = vadd.f32 %v1337_v23, %v1289_v3 }
 0x238   :  { %v1241_v19 = vpop.f32.mrf.mxu1  ;;  %v1291_v29 = vadd.f32 %v1290_v57, %v3161_v42 }
 0x239   :  { %v1242_v46 = vadd.f32 %v1241_v19, %v1193_v36  ;;  %v1377_v55 = vadd.f32 %v3045_v62, %v1338_v12 }
 0x23b   :  { %v1378_v5 = vadd.f32 %v3040_v58, %v1242_v46  ;;  %v1409_v14 = vmax.f32 %v1377_v55, 0.0 }
 0x23d   :  { %v1410_v59 = vmax.f32 %v1378_v5, 0.0 }
 0x23e   :  { %v1339_v52 = vpop.f32.mrf.mxu3 }
 0x23f   :  { %v1340_v9 = vadd.f32 %v1339_v52, %v1291_v29  ;;  %v1791_v0 = vpop.f32.mrf.mxu2  ;;  %v1426_v10 = vpack.c.bf16 %v1410_v59, %v1408_v43 }
 0x241   :  { %v1379_v21 = vadd.f32 %v3045_v62, %v1340_v9  ;;  %1631 = vmatmul.bf16.gmra.mxu0 %v1426_v10  ;;  %v3124_v62 = vld [vmem:[%s3154_s9] ss:$0 sm:$0xff]  ;;  %s2670_s9 = smov [#allocation10]  }
 0x242   :  { %s1938_s5 = sshll.u32 %s2670_s9, 4  ;;  %s1939_s5 = int_to_ptr.vmem [resolvable:$true] %s1938_s5 }
 0x243   :  { %v1411_v7 = vmax.f32 %v1379_v21, 0.0 }
 0x245   :  { %v1427_v31 = vpack.c.bf16 %v1411_v7, %v1409_v14 }
 0x246   :  { %v1840_v44 = vpop.f32.mrf.mxu3 }
 0x247   :  { %1680 = vmatmul.bf16.gmra.mxu1 %v1427_v31  ;;  %v1793_v20 = vpop.f32.mrf.mxu2 }
 0x24e   :  { %v1597_v58 = vpop.f32.mrf.mxu0  ;;  %v1842_v34 = vpop.f32.mrf.mxu3 }
 0x24f   :  { %v1796_v15 = vpop.f32.mrf.mxu2 }
 0x254   :  { %v1646_v53 = vpop.f32.mrf.mxu1 }
 0x255   :  { %v1647_v11 = vadd.f32 %v1646_v53, %v1597_v58 }
 0x256   :  { %v1599_v37 = vpop.f32.mrf.mxu0  ;;  %v1845_v24 = vpop.f32.mrf.mxu3 }
 0x257   :  { %v1792_v32 = vadd.f32 %v1791_v0, %v1647_v11  ;;  %v1798_v16 = vpop.f32.mrf.mxu2 }
 0x259   :  { %v1841_v6 = vadd.f32 %v1840_v44, %v1792_v32 }
 0x25b   :  { %v1884_v39 = vadd.f32 %v3124_v62, %v1841_v6 }
 0x25c   :  { %v1648_v47 = vpop.f32.mrf.mxu1 }
 0x25d   :  { %v1649_v50 = vadd.f32 %v1648_v47, %v1599_v37  ;;  %1900 = vxpose.xlu0.b32.start [1/16] (narrow) %v1884_v39, 8 }
 0x25e   :  { %v1602_v8 = vpop.f32.mrf.mxu0  ;;  %v1847_v38 = vpop.f32.mrf.mxu3 }
 0x25f   :  { %v1794_v18 = vadd.f32 %v1793_v20, %v1649_v50  ;;  %v1801_v56 = vpop.f32.mrf.mxu2 }
 0x261   :  { %v1843_v35 = vadd.f32 %v1842_v34, %v1794_v18 }
 0x263   :  { %v1885_v13 = vadd.f32 %v3124_v62, %v1843_v35 }
 0x264   :  { %v1651_v48 = vpop.f32.mrf.mxu1 }
 0x265   :  { %v1652_v1 = vadd.f32 %v1651_v48, %v1602_v8  ;;  %1901 = vxpose.xlu0.b32.cont [2/16] (narrow) %v1885_v13, 8 }
 0x266   :  { %v1604_v40 = vpop.f32.mrf.mxu0  ;;  %v1850_v51 = vpop.f32.mrf.mxu3 }
 0x267   :  { %v1797_v25 = vadd.f32 %v1796_v15, %v1652_v1  ;;  %v1803_v22 = vpop.f32.mrf.mxu2 }
 0x269   :  { %v1846_v26 = vadd.f32 %v1845_v24, %v1797_v25 }
 0x26b   :  { %v1886_v4 = vadd.f32 %v3124_v62, %v1846_v26 }
 0x26c   :  { %v1653_v17 = vpop.f32.mrf.mxu1 }
 0x26d   :  { %v1654_v41 = vadd.f32 %v1653_v17, %v1604_v40  ;;  %1902 = vxpose.xlu0.b32.cont [3/16] (narrow) %v1886_v4, 8 }
 0x26e   :  { %v1607_v33 = vpop.f32.mrf.mxu0  ;;  %v1852_v2 = vpop.f32.mrf.mxu3 }
 0x26f   :  { %v1799_v45 = vadd.f32 %v1798_v16, %v1654_v41  ;;  %v1806_v61 = vpop.f32.mrf.mxu2 }
 0x271   :  { %v1848_v63 = vadd.f32 %v1847_v38, %v1799_v45 }
 0x273   :  { %v1887_v54 = vadd.f32 %v3124_v62, %v1848_v63 }
 0x274   :  { %v1656_v30 = vpop.f32.mrf.mxu1 }
 0x275   :  { %v1657_v28 = vadd.f32 %v1656_v30, %v1607_v33  ;;  %1903 = vxpose.xlu0.b32.cont [4/16] (narrow) %v1887_v54, 8 }
 0x276   :  { %v1609_v23 = vpop.f32.mrf.mxu0  ;;  %v1855_v27 = vpop.f32.mrf.mxu3 }
 0x277   :  { %v1802_v36 = vadd.f32 %v1801_v56, %v1657_v28  ;;  %v1808_v3 = vpop.f32.mrf.mxu2 }
 0x279   :  { %v1851_v57 = vadd.f32 %v1850_v51, %v1802_v36 }
 0x27b   :  { %v1888_v19 = vadd.f32 %v3124_v62, %v1851_v57 }
 0x27c   :  { %v1658_v49 = vpop.f32.mrf.mxu1 }
 0x27d   :  { %v1659_v60 = vadd.f32 %v1658_v49, %v1609_v23  ;;  %1904 = vxpose.xlu0.b32.cont [5/16] (narrow) %v1888_v19, 8 }
 0x27e   :  { %v1612_v46 = vpop.f32.mrf.mxu0  ;;  %v1857_v5 = vpop.f32.mrf.mxu3 }
 0x27f   :  { %v1804_v12 = vadd.f32 %v1803_v22, %v1659_v60  ;;  %v1811_v9 = vpop.f32.mrf.mxu2 }
 0x281   :  { %v1853_v43 = vadd.f32 %v1852_v2, %v1804_v12 }
 0x283   :  { %v1889_v59 = vadd.f32 %v3124_v62, %v1853_v43 }
 0x284   :  { %v1661_v42 = vpop.f32.mrf.mxu1 }
 0x285   :  { %v1662_v29 = vadd.f32 %v1661_v42, %v1612_v46  ;;  %1905 = vxpose.xlu0.b32.cont [6/16] (narrow) %v1889_v59, 8 }
 0x286   :  { %v1614_v52 = vpop.f32.mrf.mxu0  ;;  %v1860_v10 = vpop.f32.mrf.mxu3 }
 0x287   :  { %v1807_v55 = vadd.f32 %v1806_v61, %v1662_v29  ;;  %v1813_v58 = vpop.f32.mrf.mxu2 }
 0x289   :  { %v1856_v0 = vadd.f32 %v1855_v27, %v1807_v55 }
 0x28b   :  { %v1890_v21 = vadd.f32 %v3124_v62, %v1856_v0 }
 0x28c   :  { %v1663_v14 = vpop.f32.mrf.mxu1 }
 0x28d   :  { %v1664_v7 = vadd.f32 %v1663_v14, %v1614_v52  ;;  %1906 = vxpose.xlu0.b32.cont [7/16] (narrow) %v1890_v21, 8 }
 0x28e   :  { %v1617_v31 = vpop.f32.mrf.mxu0  ;;  %v1862_v15 = vpop.f32.mrf.mxu3 }
 0x28f   :  { %v1809_v44 = vadd.f32 %v1808_v3, %v1664_v7  ;;  %v1816_v6 = vpop.f32.mrf.mxu2 }
 0x291   :  { %v1858_v20 = vadd.f32 %v1857_v5, %v1809_v44 }
 0x293   :  { %v1891_v34 = vadd.f32 %v3124_v62, %v1858_v20 }
 0x294   :  { %v1666_v53 = vpop.f32.mrf.mxu1 }
 0x295   :  { %v1667_v11 = vadd.f32 %v1666_v53, %v1617_v31  ;;  %1907 = vxpose.xlu0.b32.cont [8/16] (narrow) %v1891_v34, 8 }
 0x296   :  { %v1619_v37 = vpop.f32.mrf.mxu0  ;;  %v1865_v50 = vpop.f32.mrf.mxu3 }
 0x297   :  { %v1812_v24 = vadd.f32 %v1811_v9, %v1667_v11  ;;  %v1818_v48 = vpop.f32.mrf.mxu2 }
 0x299   :  { %v1861_v32 = vadd.f32 %v1860_v10, %v1812_v24 }
 0x29b   :  { %v1892_v16 = vadd.f32 %v3124_v62, %v1861_v32 }
 0x29c   :  { %v1668_v39 = vpop.f32.mrf.mxu1 }
 0x29d   :  { %v1669_v47 = vadd.f32 %v1668_v39, %v1619_v37  ;;  %1908 = vxpose.xlu0.b32.cont [9/16] (narrow) %v1892_v16, 8 }
 0x29e   :  { %v1622_v8 = vpop.f32.mrf.mxu0  ;;  %v1867_v51 = vpop.f32.mrf.mxu3 }
 0x29f   :  { %v1814_v38 = vadd.f32 %v1813_v58, %v1669_v47  ;;  %v1821_v33 = vpop.f32.mrf.mxu2 }
 0x2a1   :  { %v1863_v18 = vadd.f32 %v1862_v15, %v1814_v38 }
 0x2a3   :  { %v1893_v56 = vadd.f32 %v3124_v62, %v1863_v18 }
 0x2a4   :  { %v1671_v35 = vpop.f32.mrf.mxu1 }
 0x2a5   :  { %v1672_v13 = vadd.f32 %v1671_v35, %v1622_v8  ;;  %1909 = vxpose.xlu0.b32.cont [10/16] (narrow) %v1893_v56, 8 }
 0x2a6   :  { %v1624_v1 = vpop.f32.mrf.mxu0  ;;  %v1870_v45 = vpop.f32.mrf.mxu3 }
 0x2a7   :  { %v1817_v40 = vadd.f32 %v1816_v6, %v1672_v13  ;;  %v1823_v27 = vpop.f32.mrf.mxu2 }
 0x2a9   :  { %v1866_v25 = vadd.f32 %v1865_v50, %v1817_v40 }
 0x2ab   :  { %v1894_v26 = vadd.f32 %v3124_v62, %v1866_v25 }
 0x2ac   :  { %v1673_v22 = vpop.f32.mrf.mxu1 }
 0x2ad   :  { %v1674_v4 = vadd.f32 %v1673_v22, %v1624_v1  ;;  %1910 = vxpose.xlu0.b32.cont [11/16] (narrow) %v1894_v26, 8 }
 0x2ae   :  { %v1627_v17 = vpop.f32.mrf.mxu0  ;;  %v1872_v57 = vpop.f32.mrf.mxu3 }
 0x2af   :  { %v1819_v41 = vadd.f32 %v1818_v48, %v1674_v4  ;;  %v1826_v5 = vpop.f32.mrf.mxu2 }
 0x2b1   :  { %v1868_v2 = vadd.f32 %v1867_v51, %v1819_v41 }
 0x2b3   :  { %v1895_v63 = vadd.f32 %v3124_v62, %v1868_v2 }
 0x2b4   :  { %v1676_v54 = vpop.f32.mrf.mxu1 }
 0x2b5   :  { %v1677_v61 = vadd.f32 %v1676_v54, %v1627_v17  ;;  %1911 = vxpose.xlu0.b32.cont [12/16] (narrow) %v1895_v63, 8 }
 0x2b6   :  { %v1629_v28 = vpop.f32.mrf.mxu0  ;;  %v1875_v42 = vpop.f32.mrf.mxu3 }
 0x2b7   :  { %v1822_v30 = vadd.f32 %v1821_v33, %v1677_v61  ;;  %v1828_v21 = vpop.f32.mrf.mxu2 }
 0x2b9   :  { %v1871_v23 = vadd.f32 %v1870_v45, %v1822_v30 }
 0x2bb   :  { %v1896_v36 = vadd.f32 %v3124_v62, %v1871_v23 }
 0x2bc   :  { %v1678_v19 = vpop.f32.mrf.mxu1 }
 0x2bd   :  { %v1679_v49 = vadd.f32 %v1678_v19, %v1629_v28  ;;  %1912 = vxpose.xlu0.b32.cont [13/16] (narrow) %v1896_v36, 8 }
 0x2be   :  { %v1632_v46 = vpop.f32.mrf.mxu0  ;;  %v1877_v7 = vpop.f32.mrf.mxu3 }
 0x2bf   :  { %v1824_v60 = vadd.f32 %v1823_v27, %v1679_v49 }
 0x2c1   :  { %v1873_v3 = vadd.f32 %v1872_v57, %v1824_v60 }
 0x2c3   :  { %v1897_v12 = vadd.f32 %v3124_v62, %v1873_v3 }
 0x2c4   :  { %v1681_v43 = vpop.f32.mrf.mxu1 }
 0x2c5   :  { %v1682_v59 = vadd.f32 %v1681_v43, %v1632_v46  ;;  %1913 = vxpose.xlu0.b32.cont [14/16] (narrow) %v1897_v12, 8 }
 0x2c6   :  { %v1634_v9 = vpop.f32.mrf.mxu0 }
 0x2c7   :  { %v1827_v29 = vadd.f32 %v1826_v5, %v1682_v59 }
 0x2c9   :  { %v1876_v52 = vadd.f32 %v1875_v42, %v1827_v29 }
 0x2cb   :  { %v1898_v55 = vadd.f32 %v3124_v62, %v1876_v52 }
 0x2cc   :  { %v1683_v0 = vpop.f32.mrf.mxu1 }
 0x2cd   :  { %v1684_v10 = vadd.f32 %v1683_v0, %v1634_v9  ;;  %1914 = vxpose.xlu0.b32.cont [15/16] (narrow) %v1898_v55, 8 }
 0x2cf   :  { %v1829_v14 = vadd.f32 %v1828_v21, %v1684_v10 }
 0x2d1   :  { %v1878_v31 = vadd.f32 %v1877_v7, %v1829_v14 }
 0x2d3   :  { %v1899_v44 = vadd.f32 %v3124_v62, %v1878_v31 }
 0x2d5   :  { %1915 = vxpose.xlu0.b32.end [16/16] (narrow) %v1899_v44, 8 }
 0x301   :  { %v1916_v20 = vpop.trf.xlu0 }
 0x302   :  { %1932 = vst [vmem:[#allocation10] sm:$0xff] %v1916_v20 }
 0x303   :  { %1943 = dma.vmem_to_hbm [thread:$0]  %s1939_s5, 128, %s1941_s30, [#allocation4]  }
 0x304   :  { %2660 = dma.done.wait [#allocation4], 128  }
 0x305   :  { %2661 = vsyncadd [#allocation4], 4294967168 }
 0x306   :  { %1948 = vsyncpa [#allocation3], 1 }
 0x307   :  { %1949 = vsyncpa [#allocation6], 1 }
 0x308   :  { %1950 = vsyncpa [#allocation9], 1 }
 0x309   :  { %1951 = vsyncpa [#allocation4], 1 }

// kernel: tpu_custom_call.1
= control target key start
LH: loop header
LB: loop body
LE: loop exit
PB: predicated region body
PF: predicated region fallthrough
CT: control target
= control target key end

     0   :  { %15 = vsyncpa [#allocation3], 0  ;;  %s3139_s0 = inlined_call_operand.vmem [shape: bf16[128,20], index: 0, kind: input, shape index: {}]   ;;  %s3140_s1 = inlined_call_operand.vmem [shape: bf16[20,512], index: 1, kind: input, shape index: {}]   ;;  %s3141_s2 = inlined_call_operand.vmem [shape: f32[1,256], index: 2, kind: input, shape index: {}]   ;;  %s3142_s3 = inlined_call_operand.hbm [shape: bf16[256,256], index: 3, kind: input, shape index: {}]   ;;  %s3143_s4 = inlined_call_operand.vmem [shape: f32[1,256], index: 4, kind: input, shape index: {}]   ;;  %s3144_s5 = inlined_call_operand.hbm [shape: bf16[256,256], index: 5, kind: input, shape index: {}]   ;;  %s3145_s6 = inlined_call_operand.vmem [shape: f32[1,256], index: 6, kind: input, shape index: {}]   ;;  %s3146_s7 = inlined_call_operand.hbm [shape: bf16[256,128], index: 7, kind: input, shape index: {}]   ;;  %s3147_s8 = inlined_call_operand.hbm [shape: bf16[256,128], index: 8, kind: input, shape index: {}]   ;;  %s3148_s9 = inlined_call_operand.vmem [shape: f32[1,128], index: 9, kind: input, shape index: {}]   ;;  %s3149_s10 = inlined_call_operand.hbm [shape: f32[128,128], index: 10, kind: output, shape index: {}]  }
   0x1   :  { %16 = vsyncpa [#allocation6], 0 }
   0x2   :  { %17 = vsyncpa [#allocation9], 0 }
   0x3   :  { %18 = vsyncpa [#allocation4], 0  ;;  %s44_s15 = sshll.u32 %s3144_s5, 4  ;;  %s2647_s16 = smov [#allocation5]   ;;  %s45_s15 = int_to_ptr.hbm [resolvable:$true] %s44_s15 }
   0x4   :  { %s46_s17 = sshll.u32 %s2647_s16, 4  ;;  %s29_s20 = sshll.u32 %s3142_s3, 4  ;;  %s47_s17 = int_to_ptr.vmem [resolvable:$true] %s46_s17  ;;  %s30_s20 = int_to_ptr.hbm [resolvable:$true] %s29_s20 }
   0x5   :  { %s2648_s21 = smov 128   ;;  %s2649_s22 = smov 8  }
   0x6   :  { %52 = dma.hbm_to_vmem [thread:$0]  %s45_s15, 4096, %s47_s17, [#allocation6], %s2648_s21, %s2648_s21, %s2649_s22  }
   0x7   :  { %s2650_s23 = smov [#allocation2]   ;;  %s59_s5 = sshll.u32 %s3146_s7, 4  ;;  %s60_s5 = int_to_ptr.hbm [resolvable:$true] %s59_s5 }
   0x8   :  { %s31_s24 = sshll.u32 %s2650_s23, 4  ;;  %s2651_s3 = smov [#allocation7]   ;;  %s32_s24 = int_to_ptr.vmem [resolvable:$true] %s31_s24 }
   0x9   :  { %37 = dma.hbm_to_vmem [thread:$0]  %s30_s20, 4096, %s32_s24, [#allocation3], %s2648_s21, %s2648_s21, %s2649_s22  }
   0xa   :  { %s61_s27 = sshll.u32 %s2651_s3, 4  ;;  %s72_s30 = sshll.u32 %s3147_s8, 4  ;;  %s62_s27 = int_to_ptr.vmem [resolvable:$true] %s61_s27  ;;  %s73_s30 = int_to_ptr.hbm [resolvable:$true] %s72_s30 }
   0xb   :  { %s2652_s11 = smov 64   ;;  %s2653_s12 = smov 4  }
   0xc   :  { %67 = dma.hbm_to_vmem [thread:$0]  %s60_s5, 2048, %s62_s27, [#allocation6], %s2652_s11, %s2652_s11, %s2653_s12  }
   0xd   :  { %s2654_s13 = smov [#allocation8]  }
   0xe   :  { %s74_s14 = sshll.u32 %s2654_s13, 4  ;;  %s75_s14 = int_to_ptr.vmem [resolvable:$true] %s74_s14 }
   0xf   :  { %80 = dma.hbm_to_vmem [thread:$0]  %s73_s30, 2048, %s75_s14, [#allocation9], %s2652_s11, %s2652_s11, %s2653_s12  }
  0x10   :  { %2639 = dma.done.wait [#allocation3], 4096  }
  0x11   :  { %2640 = vsyncadd [#allocation3], 4294963200 }
  0x12   :  { %2641 = dma.done.wait [#allocation6], 6144  }
  0x13   :  { %2642 = vsyncadd [#allocation6], 4294961152 }
  0x14   :  { %2643 = dma.done.wait [#allocation9], 2048  }
  0x15   :  { %2644 = vsyncadd [#allocation9], 4294965248  ;;  %v120_v0 = vld [vmem:[%s3140_s1 + $0x20] sm:$0x33]  ;;  %vm217_vm0 = vcmask 1041408   ;;  %vm192_vm1 = vcmask 162816  }
  0x16   :  { %v176_v1 = vunpack.c.l.b16 %v120_v0  ;;  %v177_v2 = vunpack.c.h.b16 %v120_v0  ;;  %v1971_v3 = vld [vmem:[%s3140_s1] sm:$0xf]  ;;  %v121_v4 = vld [vmem:[%s3140_s1 + $0x28] sm:$0x33]  ;;  %v2411_v5 = vld [vmem:[%s3140_s1 + $0xc] sm:$0xf0] }
  0x17   :  { %v2409_v6 = vld [vmem:[%s3140_s1 + $0x4] sm:$0xf]  ;;  %v1973_v7 = vld [vmem:[%s3140_s1 + $0x10] sm:$0xf0]  ;;  %v178_v8 = vunpack.c.l.b16 %v121_v4  ;;  %v179_v9 = vunpack.c.h.b16 %v121_v4  ;;  %v1979_v12 = vld [vmem:[%s3140_s1 + $0x8] sm:$0xf]  ;;  %v1972_v24 = vor.u32 %v2411_v5, %v1971_v3 }
  0x18   :  { %v184_v10 = vpack.c.b16 %v176_v1, %v176_v1  ;;  %v185_v11 = vpack.c.b16 %v177_v2, %v177_v2  ;;  %v2412_v13 = vld [vmem:[%s3140_s1 + $0x14] sm:$0xf0]  ;;  %v2410_v14 = vld [vmem:[%s3140_s1 + $0xc] sm:$0xf]  ;;  %v1981_v17 = vld [vmem:[%s3140_s1 + $0x18] sm:$0xf0]  ;;  %v1976_v25 = vor.u32 %v2409_v6, %v1973_v7 }
  0x19   :  { %v186_v15 = vpack.c.b16 %v178_v8, %v178_v8  ;;  %v187_v16 = vpack.c.b16 %v179_v9, %v179_v9  ;;  %v2427_v18 = vld [vmem:[#allocation2 + $0x74] sm:$0xf]  ;;  %v2077_v19 = vld [vmem:[#allocation2 + $0x78] sm:$0xf0]  ;;  %v2401_v28 = vld [vmem:[%s3139_s0] sm:$0xff]  ;;  %v1980_v29 = vor.u32 %v2412_v13, %v1979_v12  ;;  %v1984_v30 = vor.u32 %v2410_v14, %v1981_v17  ;;  %s1922_s13 = sshll.u32 %s3149_s10, 4  ;;  %s1923_s13 = int_to_ptr.hbm [resolvable:$true] %s1922_s13 }
  0x1a   :  { %v219_v20 = vsel %vm217_vm0, %v184_v10, 0  ;;  %v222_v21 = vsel %vm217_vm0, %v185_v11, 0  ;;  %v2443_v22 = vld [vmem:[#allocation2 + $0xf4] sm:$0xf]  ;;  %v2141_v23 = vld [vmem:[#allocation2 + $0xf8] sm:$0xf0]  ;;  %v2080_v34 = vor.u32 %v2427_v18, %v2077_v19 }
  0x1b   :  { %236 = vmatpush.bf16.msra.mxu0 %v219_v20  ;;  %285 = vmatpush.bf16.msra.mxu1 %v222_v21  ;;  %v225_v26 = vsel %vm217_vm0, %v186_v15, 0  ;;  %v228_v27 = vsel %vm217_vm0, %v187_v16, 0  ;;  %v2075_v31 = vld [vmem:[#allocation2 + $0x70] sm:$0xf]  ;;  %v2428_v32 = vld [vmem:[#allocation2 + $0x74] sm:$0xf0]  ;;  %v2144_v35 = vor.u32 %v2443_v22, %v2141_v23 }
  0x1c   :  { %334 = vmatpush.bf16.msra.mxu2 %v225_v26  ;;  %383 = vmatpush.bf16.msra.mxu3 %v228_v27  ;;  %v2139_v33 = vld [vmem:[#allocation2 + $0xf0] sm:$0xf]  ;;  %v2444_v36 = vld [vmem:[#allocation2 + $0xf4] sm:$0xf0]  ;;  %v2425_v37 = vld [vmem:[#allocation2 + $0x64] sm:$0xf]  ;;  %v2076_v41 = vor.u32 %v2428_v32, %v2075_v31 }
  0x1d   :  { %v2069_v38 = vld [vmem:[#allocation2 + $0x68] sm:$0xf0]  ;;  %v2441_v39 = vld [vmem:[#allocation2 + $0xe4] sm:$0xf]  ;;  %v2140_v42 = vor.u32 %v2444_v36, %v2139_v33  ;;  %v2067_v45 = vld [vmem:[#allocation2 + $0x60] sm:$0xf] }
  0x1e   :  { %v2133_v40 = vld [vmem:[#allocation2 + $0xe8] sm:$0xf0]  ;;  %v2072_v43 = vor.u32 %v2425_v37, %v2069_v38  ;;  %v2426_v46 = vld [vmem:[#allocation2 + $0x64] sm:$0xf0]  ;;  %v2131_v47 = vld [vmem:[#allocation2 + $0xe0] sm:$0xf] }
  0x1f   :  { %237 = vmatpush.bf16.msra.mxu0 %v1972_v24  ;;  %286 = vmatpush.bf16.msra.mxu1 %v1976_v25  ;;  %v2136_v44 = vor.u32 %v2441_v39, %v2133_v40  ;;  %v2442_v48 = vld [vmem:[#allocation2 + $0xe4] sm:$0xf0]  ;;  %v2423_v49 = vld [vmem:[#allocation2 + $0x54] sm:$0xf]  ;;  %v2061_v50 = vld [vmem:[#allocation2 + $0x58] sm:$0xf0]  ;;  %v2068_v51 = vor.u32 %v2426_v46, %v2067_v45 }
  0x20   :  { %335 = vmatpush.bf16.msra.mxu2 %v1980_v29  ;;  %384 = vmatpush.bf16.msra.mxu3 %v1984_v30  ;;  %v2132_v52 = vor.u32 %v2442_v48, %v2131_v47  ;;  %v2439_v53 = vld [vmem:[#allocation2 + $0xd4] sm:$0xf]  ;;  %v2125_v54 = vld [vmem:[#allocation2 + $0xd8] sm:$0xf0]  ;;  %v2064_v55 = vor.u32 %v2423_v49, %v2061_v50  ;;  %v2402_v57 = vld [vmem:[%s3139_s0 + $0x8] sm:$0xff] }
  0x21   :  { %v2128_v56 = vor.u32 %v2439_v53, %v2125_v54  ;;  %v2059_v58 = vld [vmem:[#allocation2 + $0x50] sm:$0xf]  ;;  %v2424_v59 = vld [vmem:[#allocation2 + $0x54] sm:$0xf0]  ;;  %v2421_v63 = vld [vmem:[#allocation2 + $0x44] sm:$0xf] }
  0x22   :  { %1985 = vmatmul.msk.bf16.vlgmr.msra.gmra.mxu0 %vm192_vm1, %v2401_v28  ;;  %1993 = vmatmul.msk.bf16.vlgmr.msra.gmra.mxu1 %vm192_vm1, %v2401_v28  ;;  %v2123_v60 = vld [vmem:[#allocation2 + $0xd0] sm:$0xf]  ;;  %v2060_v61 = vor.u32 %v2424_v59, %v2059_v58  ;;  %v2440_v62 = vld [vmem:[#allocation2 + $0xd4] sm:$0xf0]  ;;  %v2053_v0 = vld [vmem:[#allocation2 + $0x48] sm:$0xf0] }
  0x23   :  { %2001 = vmatmul.msk.bf16.vlgmr.msra.gmra.mxu2 %vm192_vm1, %v2401_v28  ;;  %2009 = vmatmul.msk.bf16.vlgmr.msra.gmra.mxu3 %vm192_vm1, %v2401_v28  ;;  %v2124_v1 = vor.u32 %v2440_v62, %v2123_v60  ;;  %v2056_v2 = vor.u32 %v2421_v63, %v2053_v0  ;;  %v2437_v3 = vld [vmem:[#allocation2 + $0xc4] sm:$0xf]  ;;  %v2117_v4 = vld [vmem:[#allocation2 + $0xc8] sm:$0xf0]  ;;  %v2403_v6 = vld [vmem:[%s3139_s0 + $0x10] sm:$0xff] }
  0x24   :  { %808 = vmatpush.bf16.msrb.mxu2 %v2080_v34  ;;  %857 = vmatpush.bf16.msrb.mxu3 %v2144_v35  ;;  %v2120_v5 = vor.u32 %v2437_v3, %v2117_v4  ;;  %v2051_v7 = vld [vmem:[#allocation2 + $0x40] sm:$0xf]  ;;  %v2422_v8 = vld [vmem:[#allocation2 + $0x44] sm:$0xf0]  ;;  %v2419_v12 = vld [vmem:[#allocation2 + $0x34] sm:$0xf] }
  0x25   :  { %710 = vmatpush.bf16.msrb.mxu0 %v2076_v41  ;;  %759 = vmatpush.bf16.msrb.mxu1 %v2140_v42  ;;  %v2115_v9 = vld [vmem:[#allocation2 + $0xc0] sm:$0xf]  ;;  %v2052_v10 = vor.u32 %v2422_v8, %v2051_v7  ;;  %v2438_v11 = vld [vmem:[#allocation2 + $0xc4] sm:$0xf0]  ;;  %v2045_v13 = vld [vmem:[#allocation2 + $0x38] sm:$0xf0] }
  0x26   :  { %v2116_v14 = vor.u32 %v2438_v11, %v2115_v9  ;;  %v2048_v15 = vor.u32 %v2419_v12, %v2045_v13  ;;  %v2435_v16 = vld [vmem:[#allocation2 + $0xb4] sm:$0xf]  ;;  %v2109_v17 = vld [vmem:[#allocation2 + $0xb8] sm:$0xf0]  ;;  %v2043_v20 = vld [vmem:[#allocation2 + $0x30] sm:$0xf] }
  0x27   :  { %v2112_v18 = vor.u32 %v2435_v16, %v2109_v17  ;;  %v2404_v19 = vld [vmem:[%s3139_s0 + $0x18] sm:$0xff]  ;;  %v2107_v22 = vld [vmem:[#allocation2 + $0xb0] sm:$0xf]  ;;  %v2417_v25 = vld [vmem:[#allocation2 + $0x24] sm:$0xf] }
  0x28   :  { %809 = vmatpush.bf16.msrb.mxu2 %v2072_v43  ;;  %858 = vmatpush.bf16.msrb.mxu3 %v2136_v44  ;;  %v2420_v21 = vld [vmem:[#allocation2 + $0x34] sm:$0xf0]  ;;  %v2037_v26 = vld [vmem:[#allocation2 + $0x28] sm:$0xf0]  ;;  %v2433_v29 = vld [vmem:[#allocation2 + $0xa4] sm:$0xf] }
  0x29   :  { %711 = vmatpush.bf16.msrb.mxu0 %v2068_v51  ;;  %760 = vmatpush.bf16.msrb.mxu1 %v2132_v52  ;;  %v2044_v23 = vor.u32 %v2420_v21, %v2043_v20  ;;  %v2436_v24 = vld [vmem:[#allocation2 + $0xb4] sm:$0xf0]  ;;  %v2040_v28 = vor.u32 %v2417_v25, %v2037_v26  ;;  %v2101_v30 = vld [vmem:[#allocation2 + $0xa8] sm:$0xf0]  ;;  %v2405_v32 = vld [vmem:[%s3139_s0 + $0x20] sm:$0xff] }
  0x2a   :  { %v2108_v27 = vor.u32 %v2436_v24, %v2107_v22  ;;  %v2104_v31 = vor.u32 %v2433_v29, %v2101_v30  ;;  %v2035_v33 = vld [vmem:[#allocation2 + $0x20] sm:$0xf]  ;;  %v2418_v34 = vld [vmem:[#allocation2 + $0x24] sm:$0xf0]  ;;  %v2415_v38 = vld [vmem:[#allocation2 + $0x14] sm:$0xf] }
  0x2b   :  { %v2099_v35 = vld [vmem:[#allocation2 + $0xa0] sm:$0xf]  ;;  %v2036_v36 = vor.u32 %v2418_v34, %v2035_v33  ;;  %v2434_v37 = vld [vmem:[#allocation2 + $0xa4] sm:$0xf0]  ;;  %v2029_v39 = vld [vmem:[#allocation2 + $0x18] sm:$0xf0] }
  0x2c   :  { %810 = vmatpush.bf16.msrb.mxu2 %v2064_v55  ;;  %859 = vmatpush.bf16.msrb.mxu3 %v2128_v56  ;;  %v2100_v40 = vor.u32 %v2434_v37, %v2099_v35  ;;  %v2032_v41 = vor.u32 %v2415_v38, %v2029_v39  ;;  %v2431_v42 = vld [vmem:[#allocation2 + $0x94] sm:$0xf]  ;;  %v2093_v43 = vld [vmem:[#allocation2 + $0x98] sm:$0xf0]  ;;  %v2406_v45 = vld [vmem:[%s3139_s0 + $0x28] sm:$0xff] }
  0x2d   :  { %712 = vmatpush.bf16.msrb.mxu0 %v2060_v61  ;;  %761 = vmatpush.bf16.msrb.mxu1 %v2124_v1  ;;  %v2096_v44 = vor.u32 %v2431_v42, %v2093_v43  ;;  %v2027_v46 = vld [vmem:[#allocation2 + $0x10] sm:$0xf]  ;;  %v2416_v47 = vld [vmem:[#allocation2 + $0x14] sm:$0xf0]  ;;  %v2413_v51 = vld [vmem:[#allocation2 + $0x4] sm:$0xf] }
  0x2e   :  { %v2091_v48 = vld [vmem:[#allocation2 + $0x90] sm:$0xf]  ;;  %v2028_v49 = vor.u32 %v2416_v47, %v2027_v46  ;;  %v2432_v50 = vld [vmem:[#allocation2 + $0x94] sm:$0xf0]  ;;  %v2021_v52 = vld [vmem:[#allocation2 + $0x8] sm:$0xf0] }
  0x2f   :  { %v2092_v53 = vor.u32 %v2432_v50, %v2091_v48  ;;  %v2024_v54 = vor.u32 %v2413_v51, %v2021_v52  ;;  %v2407_v55 = vld [vmem:[%s3139_s0 + $0x30] sm:$0xff]  ;;  %v2429_v56 = vld [vmem:[#allocation2 + $0x84] sm:$0xf]  ;;  %v2019_v58 = vld [vmem:[#allocation2] sm:$0xf] }
  0x30   :  { %811 = vmatpush.bf16.msrb.mxu2 %v2056_v2  ;;  %860 = vmatpush.bf16.msrb.mxu3 %v2120_v5  ;;  %v2414_v60 = vld [vmem:[#allocation2 + $0x4] sm:$0xf0]  ;;  %v2083_v61 = vld [vmem:[#allocation2 + $0x80] sm:$0xf]  ;;  %v2408_v1 = vld [vmem:[%s3139_s0 + $0x38] sm:$0xff] }
  0x31   :  { %713 = vmatpush.bf16.msrb.mxu0 %v2052_v10  ;;  %762 = vmatpush.bf16.msrb.mxu1 %v2116_v14  ;;  %v2430_v62 = vld [vmem:[#allocation2 + $0x84] sm:$0xf0]  ;;  %v2020_v63 = vor.u32 %v2414_v60, %v2019_v58  ;;  %v426_v2 = vld [vmem:[%s3141_s2] sm:$0x3]  ;;  %v2459_v7 = vld [vmem:[#allocation5 + $0x74] sm:$0xf] }
  0x32   :  { %1986 = vmatmul.msk.bf16.gmra.mxu0 %vm192_vm1, %v2402_v57  ;;  %1994 = vmatmul.msk.bf16.gmra.mxu1 %vm192_vm1, %v2402_v57  ;;  %v2084_v0 = vor.u32 %v2430_v62, %v2083_v61  ;;  %v2822_v5 = vperm.slane %v426_v2, 0  ;;  %v2205_v8 = vld [vmem:[#allocation5 + $0x78] sm:$0xf0]  ;;  %v2475_v10 = vld [vmem:[#allocation5 + $0xf4] sm:$0xf] }
  0x33   :  { %2002 = vmatmul.msk.bf16.gmra.mxu2 %vm192_vm1, %v2402_v57  ;;  %2010 = vmatmul.msk.bf16.gmra.mxu3 %vm192_vm1, %v2402_v57  ;;  %v2085_v57 = vld [vmem:[#allocation2 + $0x88] sm:$0xf0]  ;;  %v2208_v9 = vor.u32 %v2459_v7, %v2205_v8  ;;  %v2269_v11 = vld [vmem:[#allocation5 + $0xf8] sm:$0xf0]  ;;  %v2203_v12 = vld [vmem:[#allocation5 + $0x70] sm:$0xf] }
  0x34   :  { %812 = vmatpush.bf16.msrb.mxu2 %v2048_v15  ;;  %861 = vmatpush.bf16.msrb.mxu3 %v2112_v18  ;;  %v2088_v59 = vor.u32 %v2429_v56, %v2085_v57  ;;  %v2272_v13 = vor.u32 %v2475_v10, %v2269_v11  ;;  %v2460_v14 = vld [vmem:[#allocation5 + $0x74] sm:$0xf0]  ;;  %v2457_v37 = vld [vmem:[#allocation5 + $0x64] sm:$0xf]  ;;  %v2197_v38 = vld [vmem:[#allocation5 + $0x68] sm:$0xf0] }
  0x35   :  { %714 = vmatpush.bf16.msrb.mxu0 %v2044_v23  ;;  %763 = vmatpush.bf16.msrb.mxu1 %v2108_v27  ;;  %v2204_v17 = vor.u32 %v2460_v14, %v2203_v12  ;;  %v2476_v29 = vld [vmem:[#allocation5 + $0xf4] sm:$0xf0]  ;;  %v2200_v39 = vor.u32 %v2457_v37, %v2197_v38  ;;  %v2195_v42 = vld [vmem:[#allocation5 + $0x60] sm:$0xf]  ;;  %v2471_v8 = vld [vmem:[#allocation5 + $0xd4] sm:$0xf] }
  0x36   :  { %v2259_v58 = vld [vmem:[#allocation5 + $0xe0] sm:$0xf]  ;;  %v2187_v10 = vld [vmem:[#allocation5 + $0x50] sm:$0xf]  ;;  %v2456_v12 = vld [vmem:[#allocation5 + $0x54] sm:$0xf0] }
  0x38   :  { %813 = vmatpush.bf16.msrb.mxu2 %v2040_v28  ;;  %862 = vmatpush.bf16.msrb.mxu3 %v2104_v31  ;;  %v2267_v28 = vld [vmem:[#allocation5 + $0xf0] sm:$0xf] }
  0x39   :  { %715 = vmatpush.bf16.msrb.mxu0 %v2036_v36  ;;  %764 = vmatpush.bf16.msrb.mxu1 %v2100_v40  ;;  %v2268_v30 = vor.u32 %v2476_v29, %v2267_v28  ;;  %v2473_v40 = vld [vmem:[#allocation5 + $0xe4] sm:$0xf]  ;;  %v2251_v28 = vld [vmem:[#allocation5 + $0xd0] sm:$0xf]  ;;  %v2472_v29 = vld [vmem:[#allocation5 + $0xd4] sm:$0xf0] }
  0x3c   :  { %814 = vmatpush.bf16.msrb.mxu2 %v2032_v41  ;;  %863 = vmatpush.bf16.msrb.mxu3 %v2096_v44  ;;  %v2261_v41 = vld [vmem:[#allocation5 + $0xe8] sm:$0xf0]  ;;  %v2458_v44 = vld [vmem:[#allocation5 + $0x64] sm:$0xf0] }
  0x3d   :  { %716 = vmatpush.bf16.msrb.mxu0 %v2028_v49  ;;  %765 = vmatpush.bf16.msrb.mxu1 %v2092_v53  ;;  %v2264_v43 = vor.u32 %v2473_v40, %v2261_v41  ;;  %v2196_v47 = vor.u32 %v2458_v44, %v2195_v42  ;;  %v2181_v40 = vld [vmem:[#allocation5 + $0x48] sm:$0xf0]  ;;  %v2469_v42 = vld [vmem:[#allocation5 + $0xc4] sm:$0xf]  ;;  %v2179_v44 = vld [vmem:[#allocation5 + $0x40] sm:$0xf] }
  0x40   :  { %815 = vmatpush.bf16.msrb.mxu2 %v2024_v54  ;;  %864 = vmatpush.bf16.msrb.mxu3 %v2088_v59  ;;  %v2474_v59 = vld [vmem:[#allocation5 + $0xe4] sm:$0xf0] }
  0x41   :  { %717 = vmatpush.bf16.msrb.mxu0 %v2020_v63  ;;  %766 = vmatpush.bf16.msrb.mxu1 %v2084_v0  ;;  %v2260_v60 = vor.u32 %v2474_v59, %v2259_v58 }
  0x42   :  { %1987 = vmatmul.msk.bf16.gmra.mxu0 %vm192_vm1, %v2403_v6  ;;  %1995 = vmatmul.msk.bf16.gmra.mxu1 %vm192_vm1, %v2403_v6 }
  0x43   :  { %2003 = vmatmul.msk.bf16.gmra.mxu2 %vm192_vm1, %v2403_v6  ;;  %2011 = vmatmul.msk.bf16.gmra.mxu3 %vm192_vm1, %v2403_v6  ;;  %v2824_v6 = vperm.slane %v426_v2, 1 }
  0x44   :  { %1244 = vmatpush.bf16.msra.mxu2 %v2208_v9  ;;  %1293 = vmatpush.bf16.msra.mxu3 %v2272_v13  ;;  %v2253_v9 = vld [vmem:[#allocation5 + $0xd8] sm:$0xf0] }
  0x45   :  { %1146 = vmatpush.bf16.msra.mxu0 %v2204_v17  ;;  %1195 = vmatpush.bf16.msra.mxu1 %v2268_v30  ;;  %v2256_v11 = vor.u32 %v2471_v8, %v2253_v9  ;;  %v2252_v30 = vor.u32 %v2472_v29, %v2251_v28 }
  0x48   :  { %1245 = vmatpush.bf16.msra.mxu2 %v2200_v39  ;;  %1294 = vmatpush.bf16.msra.mxu3 %v2264_v43  ;;  %v2453_v39 = vld [vmem:[#allocation5 + $0x44] sm:$0xf]  ;;  %v2245_v43 = vld [vmem:[#allocation5 + $0xc8] sm:$0xf0] }
  0x49   :  { %1147 = vmatpush.bf16.msra.mxu0 %v2196_v47  ;;  %1196 = vmatpush.bf16.msra.mxu1 %v2260_v60  ;;  %v2184_v41 = vor.u32 %v2453_v39, %v2181_v40  ;;  %v2235_v40 = vld [vmem:[#allocation5 + $0xb0] sm:$0xf] }
  0x4c   :  { %1295 = vmatpush.bf16.msra.mxu3 %v2256_v11  ;;  %v2451_v11 = vld [vmem:[#allocation5 + $0x34] sm:$0xf] }
  0x4d   :  { %1197 = vmatpush.bf16.msra.mxu1 %v2252_v30 }
  0x52   :  { %1988 = vmatmul.msk.bf16.gmra.mxu0 %vm192_vm1, %v2404_v19  ;;  %1996 = vmatmul.msk.bf16.gmra.mxu1 %vm192_vm1, %v2404_v19 }
  0x53   :  { %2004 = vmatmul.msk.bf16.gmra.mxu2 %vm192_vm1, %v2404_v19  ;;  %2012 = vmatmul.msk.bf16.gmra.mxu3 %vm192_vm1, %v2404_v19 }
  0x62   :  { %1989 = vmatmul.msk.bf16.gmra.mxu0 %vm192_vm1, %v2405_v32  ;;  %1997 = vmatmul.msk.bf16.gmra.mxu1 %vm192_vm1, %v2405_v32 }
  0x63   :  { %2005 = vmatmul.msk.bf16.gmra.mxu2 %vm192_vm1, %v2405_v32  ;;  %2013 = vmatmul.msk.bf16.gmra.mxu3 %vm192_vm1, %v2405_v32 }
  0x72   :  { %1990 = vmatmul.msk.bf16.gmra.mxu0 %vm192_vm1, %v2406_v45  ;;  %1998 = vmatmul.msk.bf16.gmra.mxu1 %vm192_vm1, %v2406_v45 }
  0x73   :  { %2006 = vmatmul.msk.bf16.gmra.mxu2 %vm192_vm1, %v2406_v45  ;;  %2014 = vmatmul.msk.bf16.gmra.mxu3 %vm192_vm1, %v2406_v45 }
  0x82   :  { %1991 = vmatmul.msk.bf16.gmra.mxu0 %vm192_vm1, %v2407_v55  ;;  %1999 = vmatmul.msk.bf16.gmra.mxu1 %vm192_vm1, %v2407_v55 }
  0x83   :  { %2007 = vmatmul.msk.bf16.gmra.mxu2 %vm192_vm1, %v2407_v55  ;;  %2015 = vmatmul.msk.bf16.gmra.mxu3 %vm192_vm1, %v2407_v55 }
  0x92   :  { %1992 = vmatmul.msk.bf16.gmra.mxu0 %vm192_vm1, %v2408_v1  ;;  %2000 = vmatmul.msk.bf16.gmra.mxu1 %vm192_vm1, %v2408_v1 }
  0x93   :  { %2008 = vmatmul.msk.bf16.gmra.mxu2 %vm192_vm1, %v2408_v1  ;;  %2016 = vmatmul.msk.bf16.gmra.mxu3 %vm192_vm1, %v2408_v1 }
  0x9f   :  { %v239_v3 = vpop.f32.mrf.mxu0  ;;  %v288_v4 = vpop.f32.mrf.mxu1 }
  0xa0   :  { %v432_v15 = vadd.f32 %v2822_v5, %v239_v3  ;;  %v433_v16 = vadd.f32 %v2824_v6, %v288_v4  ;;  %v2455_v3 = vld [vmem:[#allocation5 + $0x54] sm:$0xf]  ;;  %v2189_v4 = vld [vmem:[#allocation5 + $0x58] sm:$0xf0] }
  0xa1   :  { %v2192_v7 = vor.u32 %v2455_v3, %v2189_v4 }
  0xa2   :  { %v464_v24 = vmax.f32 %v432_v15, 0.0  ;;  %v465_v25 = vmax.f32 %v433_v16, 0.0  ;;  %v2188_v15 = vor.u32 %v2456_v12, %v2187_v10  ;;  %v2173_v12 = vld [vmem:[#allocation5 + $0x38] sm:$0xf0] }
  0xa3   :  { %1246 = vmatpush.bf16.msra.mxu2 %v2192_v7 }
  0xa4   :  { %1148 = vmatpush.bf16.msra.mxu0 %v2188_v15  ;;  %v2237_v15 = vld [vmem:[#allocation5 + $0xb8] sm:$0xf0] }
  0xa6   :  { %v2828_v18 = vpop.f32.mrf.mxu2  ;;  %v2830_v19 = vpop.f32.mrf.mxu3 }
  0xa7   :  { %v241_v20 = vpop.f32.mrf.mxu0  ;;  %v290_v21 = vpop.f32.mrf.mxu1  ;;  %1247 = vmatpush.bf16.msra.mxu2 %v2184_v41  ;;  %v2468_v41 = vld [vmem:[#allocation5 + $0xb4] sm:$0xf0] }
  0xa8   :  { %v434_v22 = vadd.f32 %v2822_v5, %v241_v20  ;;  %v435_v23 = vadd.f32 %v2824_v6, %v290_v21 }
  0xaa   :  { %v466_v26 = vmax.f32 %v434_v22, 0.0  ;;  %v467_v27 = vmax.f32 %v435_v23, 0.0 }
  0xac   :  { %v496_v31 = vpack.c.bf16 %v466_v26, %v464_v24  ;;  %v497_v32 = vpack.c.bf16 %v467_v27, %v465_v25 }
  0xae   :  { %718 = vmatmul.bf16.vlgmr.msrb.gmra.mxu0 %v496_v31  ;;  %767 = vmatmul.bf16.vlgmr.msrb.gmra.mxu1 %v497_v32  ;;  %v2834_v33 = vpop.f32.mrf.mxu2  ;;  %v2836_v34 = vpop.f32.mrf.mxu3 }
  0xaf   :  { %816 = vmatmul.bf16.vlgmr.msrb.gmra.mxu2 %v496_v31  ;;  %865 = vmatmul.bf16.vlgmr.msrb.gmra.mxu3 %v497_v32  ;;  %v244_v35 = vpop.f32.mrf.mxu0  ;;  %v293_v36 = vpop.f32.mrf.mxu1 }
  0xb0   :  { %v436_v45 = vadd.f32 %v2822_v5, %v244_v35  ;;  %v437_v46 = vadd.f32 %v2824_v6, %v293_v36 }
  0xb2   :  { %v468_v54 = vmax.f32 %v436_v45, 0.0  ;;  %v469_v55 = vmax.f32 %v437_v46, 0.0  ;;  %v2248_v45 = vor.u32 %v2469_v42, %v2245_v43  ;;  %v2454_v46 = vld [vmem:[#allocation5 + $0x44] sm:$0xf0]  ;;  %v2236_v42 = vor.u32 %v2468_v41, %v2235_v40 }
  0xb4   :  { %1296 = vmatpush.bf16.msra.mxu3 %v2248_v45 }
  0xb6   :  { %v2840_v48 = vpop.f32.mrf.mxu2  ;;  %v2842_v49 = vpop.f32.mrf.mxu3 }
  0xb7   :  { %v246_v50 = vpop.f32.mrf.mxu0  ;;  %v295_v51 = vpop.f32.mrf.mxu1 }
  0xb8   :  { %v438_v52 = vadd.f32 %v2822_v5, %v246_v50  ;;  %v439_v53 = vadd.f32 %v2824_v6, %v295_v51  ;;  %v2180_v51 = vor.u32 %v2454_v46, %v2179_v44 }
  0xba   :  { %v470_v56 = vmax.f32 %v438_v52, 0.0  ;;  %v471_v57 = vmax.f32 %v439_v53, 0.0  ;;  %1149 = vmatpush.bf16.msra.mxu0 %v2180_v51  ;;  %v2449_v51 = vld [vmem:[#allocation5 + $0x24] sm:$0xf] }
  0xbc   :  { %v498_v61 = vpack.c.bf16 %v470_v56, %v468_v54  ;;  %v499_v62 = vpack.c.bf16 %v471_v57, %v469_v55 }
  0xbe   :  { %723 = vmatmul.bf16.gmra.mxu0 %v498_v61  ;;  %772 = vmatmul.bf16.gmra.mxu1 %v499_v62  ;;  %v2846_v63 = vpop.f32.mrf.mxu2  ;;  %v2848_v0 = vpop.f32.mrf.mxu3 }
  0xbf   :  { %821 = vmatmul.bf16.gmra.mxu2 %v498_v61  ;;  %870 = vmatmul.bf16.gmra.mxu3 %v499_v62  ;;  %v249_v1 = vpop.f32.mrf.mxu0  ;;  %v298_v2 = vpop.f32.mrf.mxu1  ;;  %v2243_v62 = vld [vmem:[#allocation5 + $0xc0] sm:$0xf] }
  0xc0   :  { %v440_v13 = vadd.f32 %v2822_v5, %v249_v1  ;;  %v441_v14 = vadd.f32 %v2824_v6, %v298_v2  ;;  %v2470_v1 = vld [vmem:[#allocation5 + $0xc4] sm:$0xf0] }
  0xc1   :  { %v2244_v2 = vor.u32 %v2470_v1, %v2243_v62 }
  0xc2   :  { %v472_v24 = vmax.f32 %v440_v13, 0.0  ;;  %v473_v25 = vmax.f32 %v441_v14, 0.0  ;;  %v2176_v13 = vor.u32 %v2451_v11, %v2173_v12  ;;  %v2467_v14 = vld [vmem:[#allocation5 + $0xb4] sm:$0xf] }
  0xc3   :  { %1198 = vmatpush.bf16.msra.mxu1 %v2244_v2 }
  0xc4   :  { %1248 = vmatpush.bf16.msra.mxu2 %v2176_v13 }
  0xc6   :  { %v2852_v16 = vpop.f32.mrf.mxu2  ;;  %v2854_v17 = vpop.f32.mrf.mxu3 }
  0xc7   :  { %v251_v20 = vpop.f32.mrf.mxu0  ;;  %v300_v21 = vpop.f32.mrf.mxu1  ;;  %1199 = vmatpush.bf16.msra.mxu1 %v2236_v42  ;;  %v2219_v42 = vld [vmem:[#allocation5 + $0x90] sm:$0xf] }
  0xc8   :  { %v442_v22 = vadd.f32 %v2822_v5, %v251_v20  ;;  %v443_v23 = vadd.f32 %v2824_v6, %v300_v21  ;;  %v2171_v20 = vld [vmem:[#allocation5 + $0x30] sm:$0xf]  ;;  %v2240_v21 = vor.u32 %v2467_v14, %v2237_v15 }
  0xca   :  { %v474_v26 = vmax.f32 %v442_v22, 0.0  ;;  %v475_v27 = vmax.f32 %v443_v23, 0.0  ;;  %v2452_v22 = vld [vmem:[#allocation5 + $0x34] sm:$0xf0]  ;;  %1297 = vmatpush.bf16.msra.mxu3 %v2240_v21  ;;  %v2466_v21 = vld [vmem:[#allocation5 + $0xa4] sm:$0xf0] }
  0xcc   :  { %v500_v31 = vpack.c.bf16 %v474_v26, %v472_v24  ;;  %v501_v32 = vpack.c.bf16 %v475_v27, %v473_v25  ;;  %v2172_v25 = vor.u32 %v2452_v22, %v2171_v20  ;;  %v2227_v20 = vld [vmem:[#allocation5 + $0xa0] sm:$0xf] }
  0xcd   :  { %v2228_v22 = vor.u32 %v2466_v21, %v2227_v20 }
  0xce   :  { %728 = vmatmul.bf16.gmra.mxu0 %v500_v31  ;;  %777 = vmatmul.bf16.gmra.mxu1 %v501_v32  ;;  %v2858_v35 = vpop.f32.mrf.mxu2  ;;  %v2860_v36 = vpop.f32.mrf.mxu3 }
  0xcf   :  { %826 = vmatmul.bf16.gmra.mxu2 %v500_v31  ;;  %875 = vmatmul.bf16.gmra.mxu3 %v501_v32  ;;  %v254_v37 = vpop.f32.mrf.mxu0  ;;  %v303_v38 = vpop.f32.mrf.mxu1 }
  0xd0   :  { %v444_v47 = vadd.f32 %v2822_v5, %v254_v37  ;;  %v445_v50 = vadd.f32 %v2824_v6, %v303_v38  ;;  %1150 = vmatpush.bf16.msra.mxu0 %v2172_v25  ;;  %1200 = vmatpush.bf16.msra.mxu1 %v2228_v22 }
  0xd2   :  { %v476_v58 = vmax.f32 %v444_v47, 0.0  ;;  %v477_v59 = vmax.f32 %v445_v50, 0.0 }
  0xd6   :  { %v2864_v52 = vpop.f32.mrf.mxu2  ;;  %v2866_v53 = vpop.f32.mrf.mxu3 }
  0xd7   :  { %v256_v54 = vpop.f32.mrf.mxu0  ;;  %v305_v55 = vpop.f32.mrf.mxu1 }
  0xd8   :  { %v446_v56 = vadd.f32 %v2822_v5, %v256_v54  ;;  %v447_v57 = vadd.f32 %v2824_v6, %v305_v55  ;;  %v2165_v54 = vld [vmem:[#allocation5 + $0x28] sm:$0xf0] }
  0xd9   :  { %v2168_v55 = vor.u32 %v2449_v51, %v2165_v54 }
  0xda   :  { %v478_v60 = vmax.f32 %v446_v56, 0.0  ;;  %v479_v61 = vmax.f32 %v447_v57, 0.0  ;;  %v2465_v56 = vld [vmem:[#allocation5 + $0xa4] sm:$0xf]  ;;  %v2229_v57 = vld [vmem:[#allocation5 + $0xa8] sm:$0xf0] }
  0xdb   :  { %1249 = vmatpush.bf16.msra.mxu2 %v2168_v55 }
  0xdc   :  { %v502_v3 = vpack.c.bf16 %v478_v60, %v476_v58  ;;  %v503_v4 = vpack.c.bf16 %v479_v61, %v477_v59  ;;  %v2163_v58 = vld [vmem:[#allocation5 + $0x20] sm:$0xf]  ;;  %v2232_v59 = vor.u32 %v2465_v56, %v2229_v57  ;;  %v2450_v60 = vld [vmem:[#allocation5 + $0x24] sm:$0xf0] }
  0xdd   :  { %v2164_v1 = vor.u32 %v2450_v60, %v2163_v58 }
  0xde   :  { %733 = vmatmul.bf16.gmra.mxu0 %v502_v3  ;;  %782 = vmatmul.bf16.gmra.mxu1 %v503_v4  ;;  %v2870_v7 = vpop.f32.mrf.mxu2  ;;  %v2872_v8 = vpop.f32.mrf.mxu3 }
  0xdf   :  { %831 = vmatmul.bf16.gmra.mxu2 %v502_v3  ;;  %880 = vmatmul.bf16.gmra.mxu3 %v503_v4  ;;  %v259_v9 = vpop.f32.mrf.mxu0  ;;  %v308_v10 = vpop.f32.mrf.mxu1 }
  0xe0   :  { %v448_v23 = vadd.f32 %v2822_v5, %v259_v9  ;;  %v449_v24 = vadd.f32 %v2824_v6, %v308_v10  ;;  %1298 = vmatpush.bf16.msra.mxu3 %v2232_v59  ;;  %1151 = vmatpush.bf16.msra.mxu0 %v2164_v1 }
  0xe2   :  { %v480_v32 = vmax.f32 %v448_v23, 0.0  ;;  %v481_v37 = vmax.f32 %v449_v24, 0.0 }
  0xe6   :  { %v2876_v26 = vpop.f32.mrf.mxu2  ;;  %v2878_v27 = vpop.f32.mrf.mxu3 }
  0xe7   :  { %v261_v28 = vpop.f32.mrf.mxu0  ;;  %v310_v29 = vpop.f32.mrf.mxu1 }
  0xe8   :  { %v450_v30 = vadd.f32 %v2822_v5, %v261_v28  ;;  %v451_v31 = vadd.f32 %v2824_v6, %v310_v29  ;;  %v2447_v29 = vld [vmem:[#allocation5 + $0x14] sm:$0xf] }
  0xea   :  { %v482_v38 = vmax.f32 %v450_v30, 0.0  ;;  %v483_v39 = vmax.f32 %v451_v31, 0.0  ;;  %v2157_v30 = vld [vmem:[#allocation5 + $0x18] sm:$0xf0]  ;;  %v2463_v31 = vld [vmem:[#allocation5 + $0x94] sm:$0xf] }
  0xec   :  { %v504_v43 = vpack.c.bf16 %v482_v38, %v480_v32  ;;  %v505_v44 = vpack.c.bf16 %v483_v39, %v481_v37  ;;  %v2160_v32 = vor.u32 %v2447_v29, %v2157_v30  ;;  %v2221_v37 = vld [vmem:[#allocation5 + $0x98] sm:$0xf0]  ;;  %v2155_v38 = vld [vmem:[#allocation5 + $0x10] sm:$0xf]  ;;  %v2448_v39 = vld [vmem:[#allocation5 + $0x14] sm:$0xf0] }
  0xed   :  { %v2224_v40 = vor.u32 %v2463_v31, %v2221_v37  ;;  %v2156_v41 = vor.u32 %v2448_v39, %v2155_v38  ;;  %v2213_v29 = vld [vmem:[#allocation5 + $0x88] sm:$0xf0]  ;;  %v2147_v30 = vld [vmem:[#allocation5] sm:$0xf]  ;;  %v2446_v38 = vld [vmem:[#allocation5 + $0x4] sm:$0xf0] }
  0xee   :  { %738 = vmatmul.bf16.gmra.mxu0 %v504_v43  ;;  %787 = vmatmul.bf16.gmra.mxu1 %v505_v44  ;;  %v2882_v45 = vpop.f32.mrf.mxu2  ;;  %v2884_v46 = vpop.f32.mrf.mxu3 }
  0xef   :  { %836 = vmatmul.bf16.gmra.mxu2 %v504_v43  ;;  %885 = vmatmul.bf16.gmra.mxu3 %v505_v44  ;;  %v264_v47 = vpop.f32.mrf.mxu0  ;;  %v313_v50 = vpop.f32.mrf.mxu1  ;;  %v2464_v43 = vld [vmem:[#allocation5 + $0x94] sm:$0xf0] }
  0xf0   :  { %v452_v61 = vadd.f32 %v2822_v5, %v264_v47  ;;  %v453_v62 = vadd.f32 %v2824_v6, %v313_v50  ;;  %1250 = vmatpush.bf16.msra.mxu2 %v2160_v32  ;;  %v2220_v50 = vor.u32 %v2464_v43, %v2219_v42  ;;  %1299 = vmatpush.bf16.msra.mxu3 %v2224_v40 }
  0xf1   :  { %1152 = vmatpush.bf16.msra.mxu0 %v2156_v41  ;;  %v2148_v41 = vor.u32 %v2446_v38, %v2147_v30  ;;  %v2492_v30 = vld [vmem:[#allocation7 + $0x78] sm:$0xff] }
  0xf2   :  { %v484_v12 = vmax.f32 %v452_v61, 0.0  ;;  %v485_v13 = vmax.f32 %v453_v62, 0.0  ;;  %1201 = vmatpush.bf16.msra.mxu1 %v2220_v50  ;;  %v2211_v50 = vld [vmem:[#allocation5 + $0x80] sm:$0xf] }
  0xf5   :  { %1153 = vmatpush.bf16.msra.mxu0 %v2148_v41 }
  0xf6   :  { %v2890_v10 = vpop.f32.mrf.mxu2  ;;  %v2892_v11 = vpop.f32.mrf.mxu3 }
  0xf7   :  { %v266_v2 = vpop.f32.mrf.mxu0  ;;  %v315_v3 = vpop.f32.mrf.mxu1 }
  0xf8   :  { %v454_v4 = vadd.f32 %v2822_v5, %v266_v2  ;;  %v455_v9 = vadd.f32 %v2824_v6, %v315_v3 }
  0xfa   :  { %v486_v14 = vmax.f32 %v454_v4, 0.0  ;;  %v487_v15 = vmax.f32 %v455_v9, 0.0 }
  0xfc   :  { %v506_v23 = vpack.c.bf16 %v486_v14, %v484_v12  ;;  %v507_v24 = vpack.c.bf16 %v487_v15, %v485_v13  ;;  %v2445_v13 = vld [vmem:[#allocation5 + $0x4] sm:$0xf]  ;;  %v2149_v14 = vld [vmem:[#allocation5 + $0x8] sm:$0xf0] }
  0xfd   :  { %v2152_v15 = vor.u32 %v2445_v13, %v2149_v14 }
  0xfe   :  { %743 = vmatmul.bf16.gmra.mxu0 %v506_v23  ;;  %792 = vmatmul.bf16.gmra.mxu1 %v507_v24  ;;  %v2894_v44 = vpop.f32.mrf.mxu2  ;;  %v2896_v47 = vpop.f32.mrf.mxu3 }
  0xff   :  { %841 = vmatmul.bf16.gmra.mxu2 %v506_v23  ;;  %890 = vmatmul.bf16.gmra.mxu3 %v507_v24  ;;  %v269_v25 = vpop.f32.mrf.mxu0  ;;  %v318_v28 = vpop.f32.mrf.mxu1 }
 0x100   :  { %v456_v51 = vadd.f32 %v2822_v5, %v269_v25  ;;  %v457_v54 = vadd.f32 %v2824_v6, %v318_v28  ;;  %1251 = vmatpush.bf16.msra.mxu2 %v2152_v15  ;;  %v2461_v28 = vld [vmem:[#allocation5 + $0x84] sm:$0xf] }
 0x101   :  { %v2216_v37 = vor.u32 %v2461_v28, %v2213_v29 }
 0x102   :  { %v488_v59 = vmax.f32 %v456_v51, 0.0  ;;  %v489_v60 = vmax.f32 %v457_v54, 0.0  ;;  %v2462_v51 = vld [vmem:[#allocation5 + $0x84] sm:$0xf0] }
 0x103   :  { %1300 = vmatpush.bf16.msra.mxu3 %v2216_v37  ;;  %v2212_v54 = vor.u32 %v2462_v51, %v2211_v50 }
 0x105   :  { %1202 = vmatpush.bf16.msra.mxu1 %v2212_v54 }
 0x106   :  { %v2902_v1 = vpop.f32.mrf.mxu2  ;;  %v2904_v2 = vpop.f32.mrf.mxu3 }
 0x107   :  { %v271_v55 = vpop.f32.mrf.mxu0  ;;  %v320_v56 = vpop.f32.mrf.mxu1  ;;  %1831 = vmatpush.bf16.msrb.mxu3 %v2492_v30 }
 0x108   :  { %v458_v57 = vadd.f32 %v2822_v5, %v271_v55  ;;  %v459_v58 = vadd.f32 %v2824_v6, %v320_v56 }
 0x10a   :  { %v490_v61 = vmax.f32 %v458_v57, 0.0  ;;  %v491_v62 = vmax.f32 %v459_v58, 0.0  ;;  %v544_v57 = vld [vmem:[%s3143_s4] sm:$0x3] }
 0x10c   :  { %v508_v3 = vpack.c.bf16 %v490_v61, %v488_v59  ;;  %v509_v4 = vpack.c.bf16 %v491_v62, %v489_v60  ;;  %v2925_v62 = vperm.slane %v544_v57, 0 }
 0x10e   :  { %748 = vmatmul.bf16.gmra.mxu0 %v508_v3  ;;  %797 = vmatmul.bf16.gmra.mxu1 %v509_v4  ;;  %v2908_v22 = vpop.f32.mrf.mxu2  ;;  %v2910_v23 = vpop.f32.mrf.mxu3 }
 0x10f   :  { %846 = vmatmul.bf16.gmra.mxu2 %v508_v3  ;;  %895 = vmatmul.bf16.gmra.mxu3 %v509_v4  ;;  %v274_v9 = vpop.f32.mrf.mxu0  ;;  %v323_v12 = vpop.f32.mrf.mxu1 }
 0x110   :  { %v460_v20 = vadd.f32 %v2822_v5, %v274_v9  ;;  %v461_v21 = vadd.f32 %v2824_v6, %v323_v12  ;;  %v2928_v12 = vperm.slane %v544_v57, 1 }
 0x112   :  { %v492_v39 = vmax.f32 %v460_v20, 0.0  ;;  %v493_v40 = vmax.f32 %v461_v21, 0.0 }
 0x117   :  { %v276_v24 = vpop.f32.mrf.mxu0  ;;  %v325_v25 = vpop.f32.mrf.mxu1 }
 0x118   :  { %v462_v31 = vadd.f32 %v2822_v5, %v276_v24  ;;  %v463_v32 = vadd.f32 %v2824_v6, %v325_v25  ;;  %v2914_v5 = vpop.f32.mrf.mxu2  ;;  %v2916_v6 = vpop.f32.mrf.mxu3  ;;  %v2484_v25 = vld [vmem:[#allocation7 + $0x38] sm:$0xff] }
 0x119   :  { %3150 = vst [vmem:[#allocation15_spill] sm:$0xff] %v2916_v6  ;;  %1782 = vmatpush.bf16.msrb.mxu2 %v2484_v25  ;;  %v2499_v25 = vld [vmem:[#allocation8 + $0x30] sm:$0xff] }
 0x11a   :  { %v494_v42 = vmax.f32 %v462_v31, 0.0  ;;  %v495_v43 = vmax.f32 %v463_v32, 0.0  ;;  %v2500_v31 = vld [vmem:[#allocation8 + $0x38] sm:$0xff] }
 0x11b   :  { %v2508_v32 = vld [vmem:[#allocation8 + $0x78] sm:$0xff]  ;;  %1588 = vmatpush.bf16.msrb.mxu0 %v2500_v31 }
 0x11c   :  { %v510_v55 = vpack.c.bf16 %v494_v42, %v492_v39  ;;  %v511_v56 = vpack.c.bf16 %v495_v43, %v493_v40  ;;  %1637 = vmatpush.bf16.msrb.mxu1 %v2508_v32 }
 0x11e   :  { %753 = vmatmul.bf16.gmra.mxu0 %v510_v55  ;;  %802 = vmatmul.bf16.gmra.mxu1 %v511_v56 }
 0x11f   :  { %851 = vmatmul.bf16.gmra.mxu2 %v510_v55  ;;  %900 = vmatmul.bf16.gmra.mxu3 %v511_v56 }
 0x120   :  { %v2921_v58 = vpop.f32.mrf.mxu2  ;;  %v2923_v59 = vpop.f32.mrf.mxu3  ;;  %1589 = vmatpush.bf16.msrb.mxu0 %v2499_v25 }
 0x121   :  { %3151 = vst [vmem:[#allocation16_spill] sm:$0xff] %v2921_v58 }
 0x122   :  { %3152 = vst [vmem:[#allocation17_spill] sm:$0xff] %v2923_v59 }
 0x12b   :  { %v719_v60 = vpop.f32.mrf.mxu0  ;;  %v768_v61 = vpop.f32.mrf.mxu1 }
 0x12c   :  { %v720_v3 = vadd.f32 %v719_v60, %v2925_v62 }
 0x12e   :  { %v769_v15 = vadd.f32 %v768_v61, %v720_v3 }
 0x130   :  { %v906_v28 = vmax.f32 %v769_v15, 0.0  ;;  %v2483_v15 = vld [vmem:[#allocation7 + $0x30] sm:$0xff] }
 0x131   :  { %1783 = vmatpush.bf16.msrb.mxu2 %v2483_v15 }
 0x132   :  { %v817_v4 = vpop.f32.mrf.mxu2  ;;  %v866_v9 = vpop.f32.mrf.mxu3 }
 0x133   :  { %v721_v13 = vpop.f32.mrf.mxu0  ;;  %v770_v14 = vpop.f32.mrf.mxu1  ;;  %v818_v24 = vadd.f32 %v817_v4, %v2928_v12 }
 0x134   :  { %v722_v20 = vadd.f32 %v721_v13, %v2925_v62 }
 0x135   :  { %v867_v40 = vadd.f32 %v866_v9, %v818_v24  ;;  %v2491_v24 = vld [vmem:[#allocation7 + $0x70] sm:$0xff] }
 0x136   :  { %v771_v21 = vadd.f32 %v770_v14, %v722_v20  ;;  %1832 = vmatpush.bf16.msrb.mxu3 %v2491_v24  ;;  %v2506_v24 = vld [vmem:[#allocation8 + $0x68] sm:$0xff] }
 0x137   :  { %v907_v51 = vmax.f32 %v867_v40, 0.0 }
 0x138   :  { %v908_v29 = vmax.f32 %v771_v21, 0.0 }
 0x13a   :  { %v2932_v37 = vpack.c.bf16 %v908_v29, %v906_v28  ;;  %v819_v38 = vpop.f32.mrf.mxu2  ;;  %v868_v39 = vpop.f32.mrf.mxu3  ;;  %v2507_v28 = vld [vmem:[#allocation8 + $0x70] sm:$0xff] }
 0x13b   :  { %v820_v41 = vadd.f32 %v819_v38, %v2928_v12  ;;  %v724_v42 = vpop.f32.mrf.mxu0  ;;  %v773_v43 = vpop.f32.mrf.mxu1  ;;  %1638 = vmatpush.bf16.msrb.mxu1 %v2507_v28 }
 0x13c   :  { %1154 = vmatmul.bf16.vlgmr.msra.gmra.mxu0 %v2932_v37  ;;  %1252 = vmatmul.bf16.vlgmr.msra.gmra.mxu2 %v2932_v37  ;;  %v725_v55 = vadd.f32 %v724_v42, %v2925_v62 }
 0x13d   :  { %v869_v50 = vadd.f32 %v868_v39, %v820_v41 }
 0x13e   :  { %v774_v4 = vadd.f32 %v773_v43, %v725_v55 }
 0x13f   :  { %v909_v54 = vmax.f32 %v869_v50, 0.0  ;;  %1639 = vmatpush.bf16.msrb.mxu1 %v2506_v24  ;;  %v2505_v24 = vld [vmem:[#allocation8 + $0x60] sm:$0xff] }
 0x140   :  { %v910_v20 = vmax.f32 %v774_v4, 0.0 }
 0x141   :  { %v2938_v56 = vpack.c.bf16 %v909_v54, %v907_v51 }
 0x142   :  { %v822_v57 = vpop.f32.mrf.mxu2  ;;  %v871_v60 = vpop.f32.mrf.mxu3 }
 0x143   :  { %1203 = vmatmul.bf16.vlgmr.msra.gmra.mxu1 %v2938_v56  ;;  %1301 = vmatmul.bf16.vlgmr.msra.gmra.mxu3 %v2938_v56  ;;  %v726_v61 = vpop.f32.mrf.mxu0  ;;  %v775_v3 = vpop.f32.mrf.mxu1  ;;  %v823_v14 = vadd.f32 %v822_v57, %v2928_v12 }
 0x144   :  { %v727_v9 = vadd.f32 %v726_v61, %v2925_v62  ;;  %1640 = vmatpush.bf16.msrb.mxu1 %v2505_v24  ;;  %v2488_v24 = vld [vmem:[#allocation7 + $0x58] sm:$0xff] }
 0x145   :  { %v872_v32 = vadd.f32 %v871_v60, %v823_v14 }
 0x146   :  { %v776_v13 = vadd.f32 %v775_v3, %v727_v9 }
 0x147   :  { %v911_v42 = vmax.f32 %v872_v32, 0.0 }
 0x148   :  { %v912_v21 = vmax.f32 %v776_v13, 0.0  ;;  %v2482_v13 = vld [vmem:[#allocation7 + $0x28] sm:$0xff] }
 0x149   :  { %1784 = vmatpush.bf16.msrb.mxu2 %v2482_v13  ;;  %v2481_v13 = vld [vmem:[#allocation7 + $0x20] sm:$0xff] }
 0x14a   :  { %v824_v29 = vpop.f32.mrf.mxu2  ;;  %v873_v30 = vpop.f32.mrf.mxu3  ;;  %v2944_v31 = vpack.c.bf16 %v912_v21, %v910_v20  ;;  %v2490_v20 = vld [vmem:[#allocation7 + $0x68] sm:$0xff] }
 0x14b   :  { %v825_v38 = vadd.f32 %v824_v29, %v2928_v12  ;;  %v729_v39 = vpop.f32.mrf.mxu0  ;;  %v778_v40 = vpop.f32.mrf.mxu1  ;;  %v2498_v21 = vld [vmem:[#allocation8 + $0x28] sm:$0xff]  ;;  %1833 = vmatpush.bf16.msrb.mxu3 %v2490_v20  ;;  %v2489_v20 = vld [vmem:[#allocation7 + $0x60] sm:$0xff] }
 0x14c   :  { %1159 = vmatmul.bf16.gmra.mxu0 %v2944_v31  ;;  %1257 = vmatmul.bf16.gmra.mxu2 %v2944_v31  ;;  %v730_v50 = vadd.f32 %v729_v39, %v2925_v62 }
 0x14d   :  { %v874_v41 = vadd.f32 %v873_v30, %v825_v38  ;;  %1590 = vmatpush.bf16.msrb.mxu0 %v2498_v21  ;;  %v2497_v21 = vld [vmem:[#allocation8 + $0x20] sm:$0xff]  ;;  %1785 = vmatpush.bf16.msrb.mxu2 %v2481_v13 }
 0x14e   :  { %v779_v61 = vadd.f32 %v778_v40, %v730_v50 }
 0x14f   :  { %v913_v43 = vmax.f32 %v874_v41, 0.0  ;;  %1834 = vmatpush.bf16.msrb.mxu3 %v2489_v20 }
 0x150   :  { %v914_v14 = vmax.f32 %v779_v61, 0.0 }
 0x151   :  { %v2950_v51 = vpack.c.bf16 %v913_v43, %v911_v42  ;;  %1591 = vmatpush.bf16.msrb.mxu0 %v2497_v21 }
 0x152   :  { %v827_v54 = vpop.f32.mrf.mxu2  ;;  %v876_v55 = vpop.f32.mrf.mxu3 }
 0x153   :  { %1208 = vmatmul.bf16.gmra.mxu1 %v2950_v51  ;;  %1306 = vmatmul.bf16.gmra.mxu3 %v2950_v51  ;;  %v731_v57 = vpop.f32.mrf.mxu0  ;;  %v780_v60 = vpop.f32.mrf.mxu1  ;;  %v828_v9 = vadd.f32 %v827_v54, %v2928_v12 }
 0x154   :  { %v732_v3 = vadd.f32 %v731_v57, %v2925_v62  ;;  %1835 = vmatpush.bf16.msrb.mxu3 %v2488_v24 }
 0x155   :  { %v877_v30 = vadd.f32 %v876_v55, %v828_v9 }
 0x156   :  { %v781_v4 = vadd.f32 %v780_v60, %v732_v3 }
 0x157   :  { %v915_v41 = vmax.f32 %v877_v30, 0.0 }
 0x158   :  { %v916_v15 = vmax.f32 %v781_v4, 0.0 }
 0x15a   :  { %v829_v25 = vpop.f32.mrf.mxu2  ;;  %v878_v28 = vpop.f32.mrf.mxu3  ;;  %v2956_v29 = vpack.c.bf16 %v916_v15, %v914_v14 }
 0x15b   :  { %v830_v32 = vadd.f32 %v829_v25, %v2928_v12  ;;  %v734_v38 = vpop.f32.mrf.mxu0  ;;  %v783_v39 = vpop.f32.mrf.mxu1 }
 0x15c   :  { %1164 = vmatmul.bf16.gmra.mxu0 %v2956_v29  ;;  %1262 = vmatmul.bf16.gmra.mxu2 %v2956_v29  ;;  %v735_v43 = vadd.f32 %v734_v38, %v2925_v62 }
 0x15d   :  { %v879_v40 = vadd.f32 %v878_v28, %v830_v32 }
 0x15e   :  { %v784_v61 = vadd.f32 %v783_v39, %v735_v43 }
 0x15f   :  { %v917_v42 = vmax.f32 %v879_v40, 0.0 }
 0x160   :  { %v918_v14 = vmax.f32 %v784_v61, 0.0 }
 0x161   :  { %v2962_v50 = vpack.c.bf16 %v917_v42, %v915_v41 }
 0x162   :  { %v832_v54 = vpop.f32.mrf.mxu2  ;;  %v881_v57 = vpop.f32.mrf.mxu3 }
 0x163   :  { %1213 = vmatmul.bf16.gmra.mxu1 %v2962_v50  ;;  %1311 = vmatmul.bf16.gmra.mxu3 %v2962_v50  ;;  %v736_v55 = vpop.f32.mrf.mxu0  ;;  %v785_v60 = vpop.f32.mrf.mxu1  ;;  %v833_v9 = vadd.f32 %v832_v54, %v2928_v12 }
 0x164   :  { %v737_v3 = vadd.f32 %v736_v55, %v2925_v62 }
 0x165   :  { %v882_v32 = vadd.f32 %v881_v57, %v833_v9 }
 0x166   :  { %v786_v4 = vadd.f32 %v785_v60, %v737_v3 }
 0x167   :  { %v919_v42 = vmax.f32 %v882_v32, 0.0 }
 0x168   :  { %v920_v15 = vmax.f32 %v786_v4, 0.0 }
 0x16a   :  { %v834_v25 = vpop.f32.mrf.mxu2  ;;  %v883_v28 = vpop.f32.mrf.mxu3  ;;  %v2968_v30 = vpack.c.bf16 %v920_v15, %v918_v14  ;;  %v2480_v15 = vld [vmem:[#allocation7 + $0x18] sm:$0xff] }
 0x16b   :  { %v835_v38 = vadd.f32 %v834_v25, %v2928_v12  ;;  %v739_v39 = vpop.f32.mrf.mxu0  ;;  %v788_v40 = vpop.f32.mrf.mxu1  ;;  %v2496_v25 = vld [vmem:[#allocation8 + $0x18] sm:$0xff]  ;;  %1786 = vmatpush.bf16.msrb.mxu2 %v2480_v15 }
 0x16c   :  { %1169 = vmatmul.bf16.gmra.mxu0 %v2968_v30  ;;  %1267 = vmatmul.bf16.gmra.mxu2 %v2968_v30  ;;  %v740_v54 = vadd.f32 %v739_v39, %v2925_v62 }
 0x16d   :  { %v884_v41 = vadd.f32 %v883_v28, %v835_v38  ;;  %v2504_v28 = vld [vmem:[#allocation8 + $0x58] sm:$0xff]  ;;  %1592 = vmatpush.bf16.msrb.mxu0 %v2496_v25  ;;  %v2479_v25 = vld [vmem:[#allocation7 + $0x10] sm:$0xff] }
 0x16e   :  { %v789_v4 = vadd.f32 %v788_v40, %v740_v54  ;;  %1641 = vmatpush.bf16.msrb.mxu1 %v2504_v28 }
 0x16f   :  { %v921_v43 = vmax.f32 %v884_v41, 0.0  ;;  %1787 = vmatpush.bf16.msrb.mxu2 %v2479_v25 }
 0x170   :  { %v922_v20 = vmax.f32 %v789_v4, 0.0 }
 0x171   :  { %v2974_v55 = vpack.c.bf16 %v921_v43, %v919_v42 }
 0x172   :  { %v837_v60 = vpop.f32.mrf.mxu2  ;;  %v886_v61 = vpop.f32.mrf.mxu3 }
 0x173   :  { %1218 = vmatmul.bf16.gmra.mxu1 %v2974_v55  ;;  %1316 = vmatmul.bf16.gmra.mxu3 %v2974_v55  ;;  %v741_v57 = vpop.f32.mrf.mxu0  ;;  %v790_v3 = vpop.f32.mrf.mxu1  ;;  %v838_v14 = vadd.f32 %v837_v60, %v2928_v12 }
 0x174   :  { %v742_v9 = vadd.f32 %v741_v57, %v2925_v62 }
 0x175   :  { %v887_v41 = vadd.f32 %v886_v61, %v838_v14 }
 0x176   :  { %v791_v13 = vadd.f32 %v790_v3, %v742_v9 }
 0x177   :  { %v923_v60 = vmax.f32 %v887_v41, 0.0  ;;  %v2495_v41 = vld [vmem:[#allocation8 + $0x10] sm:$0xff] }
 0x178   :  { %v924_v21 = vmax.f32 %v791_v13, 0.0  ;;  %1593 = vmatpush.bf16.msrb.mxu0 %v2495_v41  ;;  %v2494_v41 = vld [vmem:[#allocation8 + $0x8] sm:$0xff] }
 0x17a   :  { %v839_v32 = vpop.f32.mrf.mxu2  ;;  %v888_v38 = vpop.f32.mrf.mxu3  ;;  %v2980_v39 = vpack.c.bf16 %v924_v21, %v922_v20 }
 0x17b   :  { %v840_v40 = vadd.f32 %v839_v32, %v2928_v12  ;;  %v744_v42 = vpop.f32.mrf.mxu0  ;;  %v793_v43 = vpop.f32.mrf.mxu1 }
 0x17c   :  { %1174 = vmatmul.bf16.gmra.mxu0 %v2980_v39  ;;  %1272 = vmatmul.bf16.gmra.mxu2 %v2980_v39  ;;  %v745_v3 = vadd.f32 %v744_v42, %v2925_v62 }
 0x17d   :  { %v889_v54 = vadd.f32 %v888_v38, %v840_v40  ;;  %v2487_v38 = vld [vmem:[#allocation7 + $0x50] sm:$0xff]  ;;  %1594 = vmatpush.bf16.msrb.mxu0 %v2494_v41 }
 0x17e   :  { %v794_v15 = vadd.f32 %v793_v43, %v745_v3  ;;  %v2503_v40 = vld [vmem:[#allocation8 + $0x50] sm:$0xff]  ;;  %1836 = vmatpush.bf16.msrb.mxu3 %v2487_v38  ;;  %v2486_v38 = vld [vmem:[#allocation7 + $0x48] sm:$0xff] }
 0x17f   :  { %v925_v57 = vmax.f32 %v889_v54, 0.0  ;;  %1642 = vmatpush.bf16.msrb.mxu1 %v2503_v40 }
 0x180   :  { %v926_v28 = vmax.f32 %v794_v15, 0.0 }
 0x181   :  { %v2986_v4 = vpack.c.bf16 %v925_v57, %v923_v60 }
 0x182   :  { %v842_v9 = vpop.f32.mrf.mxu2  ;;  %v891_v13 = vpop.f32.mrf.mxu3  ;;  %1837 = vmatpush.bf16.msrb.mxu3 %v2486_v38 }
 0x183   :  { %1223 = vmatmul.bf16.gmra.mxu1 %v2986_v4  ;;  %1321 = vmatmul.bf16.gmra.mxu3 %v2986_v4  ;;  %v746_v61 = vpop.f32.mrf.mxu0  ;;  %v795_v14 = vpop.f32.mrf.mxu1  ;;  %v843_v24 = vadd.f32 %v842_v9, %v2928_v12 }
 0x184   :  { %v747_v20 = vadd.f32 %v746_v61, %v2925_v62 }
 0x185   :  { %v892_v57 = vadd.f32 %v891_v13, %v843_v24 }
 0x186   :  { %v796_v21 = vadd.f32 %v795_v14, %v747_v20 }
 0x187   :  { %v927_v14 = vmax.f32 %v892_v57, 0.0 }
 0x188   :  { %v928_v32 = vmax.f32 %v796_v21, 0.0 }
 0x18a   :  { %v844_v42 = vpop.f32.mrf.mxu2  ;;  %v893_v54 = vpop.f32.mrf.mxu3  ;;  %v2992_v60 = vpack.c.bf16 %v928_v32, %v926_v28  ;;  %v2478_v32 = vld [vmem:[#allocation7 + $0x8] sm:$0xff] }
 0x18b   :  { %v845_v43 = vadd.f32 %v844_v42, %v2928_v12  ;;  %v749_v3 = vpop.f32.mrf.mxu0  ;;  %v798_v61 = vpop.f32.mrf.mxu1  ;;  %1788 = vmatpush.bf16.msrb.mxu2 %v2478_v32  ;;  %v2485_v32 = vld [vmem:[#allocation7 + $0x40] sm:$0xff] }
 0x18c   :  { %1179 = vmatmul.bf16.gmra.mxu0 %v2992_v60  ;;  %1277 = vmatmul.bf16.gmra.mxu2 %v2992_v60  ;;  %v750_v20 = vadd.f32 %v749_v3, %v2925_v62 }
 0x18d   :  { %v894_v9 = vadd.f32 %v893_v54, %v845_v43  ;;  %v2502_v54 = vld [vmem:[#allocation8 + $0x48] sm:$0xff]  ;;  %1838 = vmatpush.bf16.msrb.mxu3 %v2485_v32  ;;  %v2493_v32 = vld [vmem:[#allocation8] sm:$0xff] }
 0x18e   :  { %v799_v40 = vadd.f32 %v798_v61, %v750_v20  ;;  %1643 = vmatpush.bf16.msrb.mxu1 %v2502_v54  ;;  %1595 = vmatpush.bf16.msrb.mxu0 %v2493_v32 }
 0x18f   :  { %v929_v15 = vmax.f32 %v894_v9, 0.0 }
 0x190   :  { %v930_v3 = vmax.f32 %v799_v40, 0.0 }
 0x191   :  { %v2998_v21 = vpack.c.bf16 %v929_v15, %v927_v14  ;;  %v2477_v14 = vld [vmem:[#allocation7] sm:$0xff] }
 0x192   :  { %v847_v25 = vpop.f32.mrf.mxu2  ;;  %v896_v28 = vpop.f32.mrf.mxu3  ;;  %1789 = vmatpush.bf16.msrb.mxu2 %v2477_v14 }
 0x193   :  { %1228 = vmatmul.bf16.gmra.mxu1 %v2998_v21  ;;  %1326 = vmatmul.bf16.gmra.mxu3 %v2998_v21  ;;  %v751_v13 = vpop.f32.mrf.mxu0  ;;  %v800_v24 = vpop.f32.mrf.mxu1  ;;  %v848_v43 = vadd.f32 %v847_v25, %v2928_v12 }
 0x194   :  { %v752_v42 = vadd.f32 %v751_v13, %v2925_v62 }
 0x195   :  { %v897_v58 = vadd.f32 %v896_v28, %v848_v43 }
 0x196   :  { %v801_v57 = vadd.f32 %v800_v24, %v752_v42 }
 0x197   :  { %v931_v25 = vmax.f32 %v897_v58, 0.0 }
 0x198   :  { %v932_v9 = vmax.f32 %v801_v57, 0.0 }
 0x19a   :  { %v849_v15 = vpop.f32.mrf.mxu2  ;;  %v898_v59 = vpop.f32.mrf.mxu3  ;;  %v3004_v6 = vpack.c.bf16 %v932_v9, %v930_v3 }
 0x19b   :  { %v850_v61 = vadd.f32 %v849_v15, %v2928_v12  ;;  %v754_v20 = vpop.f32.mrf.mxu0  ;;  %v803_v13 = vpop.f32.mrf.mxu1 }
 0x19c   :  { %1184 = vmatmul.bf16.gmra.mxu0 %v3004_v6  ;;  %1282 = vmatmul.bf16.gmra.mxu2 %v3004_v6  ;;  %v755_v41 = vadd.f32 %v754_v20, %v2925_v62 }
 0x19d   :  { %v899_v24 = vadd.f32 %v898_v59, %v850_v61 }
 0x19e   :  { %v804_v57 = vadd.f32 %v803_v13, %v755_v41 }
 0x19f   :  { %v933_v38 = vmax.f32 %v899_v24, 0.0 }
 0x1a0   :  { %v934_v9 = vmax.f32 %v804_v57, 0.0 }
 0x1a1   :  { %v3010_v40 = vpack.c.bf16 %v933_v38, %v931_v25  ;;  %v2501_v25 = vld [vmem:[#allocation8 + $0x40] sm:$0xff] }
 0x1a2   :  { %v852_v42 = vpop.f32.mrf.mxu2  ;;  %v901_v54 = vpop.f32.mrf.mxu3  ;;  %1644 = vmatpush.bf16.msrb.mxu1 %v2501_v25 }
 0x1a3   :  { %1233 = vmatmul.bf16.gmra.mxu1 %v3010_v40  ;;  %1331 = vmatmul.bf16.gmra.mxu3 %v3010_v40  ;;  %v756_v28 = vpop.f32.mrf.mxu0  ;;  %v805_v3 = vpop.f32.mrf.mxu1  ;;  %v853_v58 = vadd.f32 %v852_v42, %v2928_v12 }
 0x1a4   :  { %v757_v43 = vadd.f32 %v756_v28, %v2925_v62 }
 0x1a5   :  { %v902_v20 = vadd.f32 %v901_v54, %v853_v58 }
 0x1a6   :  { %v806_v59 = vadd.f32 %v805_v3, %v757_v43  ;;  %v1342_v43 = vld [vmem:[%s3145_s6] sm:$0x3] }
 0x1a7   :  { %v935_v13 = vmax.f32 %v902_v20, 0.0  ;;  %v3031_v58 = vperm.slane %v1342_v43, 0 }
 0x1a8   :  { %v936_v14 = vmax.f32 %v806_v59, 0.0 }
 0x1aa   :  { %v854_v15 = vpop.f32.mrf.mxu2  ;;  %v3016_v61 = vpack.c.bf16 %v936_v14, %v934_v9  ;;  %v903_v38 = vpop.f32.mrf.mxu3 }
 0x1ab   :  { %v855_v24 = vadd.f32 %v854_v15, %v2928_v12 }
 0x1ac   :  { %1189 = vmatmul.bf16.gmra.mxu0 %v3016_v61  ;;  %1287 = vmatmul.bf16.gmra.mxu2 %v3016_v61 }
 0x1ad   :  { %v904_v62 = vadd.f32 %v903_v38, %v855_v24 }
 0x1af   :  { %v937_v41 = vmax.f32 %v904_v62, 0.0  ;;  %v3036_v62 = vperm.slane %v1342_v43, 1 }
 0x1b1   :  { %v3021_v42 = vpack.c.bf16 %v937_v41, %v935_v13 }
 0x1b3   :  { %1238 = vmatmul.bf16.gmra.mxu1 %v3021_v42  ;;  %1336 = vmatmul.bf16.gmra.mxu3 %v3021_v42 }
 0x1b9   :  { %v1155_v54 = vpop.f32.mrf.mxu0 }
 0x1ba   :  { %v1156_v3 = vadd.f32 %v1155_v54, %v2828_v18 }
 0x1bc   :  { %1790 = vmatmul.bf16.vlgmr.msrb.gmra.mxu2 %v2932_v37 }
 0x1bf   :  { %v1253_v12 = vpop.f32.mrf.mxu2 }
 0x1c0   :  { %v1204_v28 = vpop.f32.mrf.mxu1  ;;  %v1254_v24 = vadd.f32 %v1253_v12, %v2830_v19 }
 0x1c1   :  { %v1157_v57 = vpop.f32.mrf.mxu0  ;;  %v1205_v59 = vadd.f32 %v1204_v28, %v1156_v3 }
 0x1c2   :  { %v1158_v14 = vadd.f32 %v1157_v57, %v2834_v33 }
 0x1c3   :  { %1839 = vmatmul.bf16.vlgmr.msrb.gmra.mxu3 %v2938_v56  ;;  %v1348_v37 = vadd.f32 %v3031_v58, %v1205_v59 }
 0x1c5   :  { %v1380_v56 = vmax.f32 %v1348_v37, 0.0 }
 0x1c6   :  { %v1302_v9 = vpop.f32.mrf.mxu3 }
 0x1c7   :  { %v1255_v15 = vpop.f32.mrf.mxu2  ;;  %v1303_v38 = vadd.f32 %v1302_v9, %v1254_v24 }
 0x1c8   :  { %v1206_v20 = vpop.f32.mrf.mxu1  ;;  %v1256_v41 = vadd.f32 %v1255_v15, %v2836_v34 }
 0x1c9   :  { %v1207_v32 = vadd.f32 %v1206_v20, %v1158_v14  ;;  %v1160_v25 = vpop.f32.mrf.mxu0  ;;  %v1349_v54 = vadd.f32 %v3036_v62, %v1303_v38 }
 0x1ca   :  { %v1161_v9 = vadd.f32 %v1160_v25, %v2840_v48 }
 0x1cb   :  { %v1350_v18 = vadd.f32 %v3031_v58, %v1207_v32  ;;  %v1381_v59 = vmax.f32 %v1349_v54, 0.0 }
 0x1cc   :  { %1795 = vmatmul.bf16.gmra.mxu2 %v2944_v31 }
 0x1cd   :  { %v1382_v13 = vmax.f32 %v1350_v18, 0.0 }
 0x1ce   :  { %v1304_v33 = vpop.f32.mrf.mxu3 }
 0x1cf   :  { %v1412_v28 = vpack.c.bf16 %v1382_v13, %v1380_v56  ;;  %v1305_v57 = vadd.f32 %v1304_v33, %v1256_v41  ;;  %v1258_v3 = vpop.f32.mrf.mxu2 }
 0x1d0   :  { %v1209_v19 = vpop.f32.mrf.mxu1  ;;  %v1259_v38 = vadd.f32 %v1258_v3, %v2842_v49 }
 0x1d1   :  { %v1351_v12 = vadd.f32 %v3036_v62, %v1305_v57  ;;  %1596 = vmatmul.bf16.vlgmr.msrb.gmra.mxu0 %v1412_v28  ;;  %v1162_v43 = vpop.f32.mrf.mxu0  ;;  %v1210_v20 = vadd.f32 %v1209_v19, %v1161_v9 }
 0x1d2   :  { %v1163_v15 = vadd.f32 %v1162_v43, %v2846_v63 }
 0x1d3   :  { %v1383_v14 = vmax.f32 %v1351_v12, 0.0  ;;  %1844 = vmatmul.bf16.gmra.mxu3 %v2950_v51  ;;  %v1352_v32 = vadd.f32 %v3031_v58, %v1210_v20 }
 0x1d5   :  { %v1413_v31 = vpack.c.bf16 %v1383_v14, %v1381_v59  ;;  %v1384_v51 = vmax.f32 %v1352_v32, 0.0 }
 0x1d6   :  { %v1307_v34 = vpop.f32.mrf.mxu3 }
 0x1d7   :  { %1645 = vmatmul.bf16.vlgmr.msrb.gmra.mxu1 %v1413_v31  ;;  %v1260_v37 = vpop.f32.mrf.mxu2  ;;  %v1308_v13 = vadd.f32 %v1307_v34, %v1259_v38 }
 0x1d8   :  { %v1211_v24 = vpop.f32.mrf.mxu1  ;;  %v1261_v41 = vadd.f32 %v1260_v37, %v2848_v0 }
 0x1d9   :  { %v1212_v18 = vadd.f32 %v1211_v24, %v1163_v15  ;;  %v1165_v56 = vpop.f32.mrf.mxu0  ;;  %v1353_v63 = vadd.f32 %v3036_v62, %v1308_v13 }
 0x1da   :  { %v1166_v43 = vadd.f32 %v1165_v56, %v2852_v16 }
 0x1db   :  { %v1354_v48 = vadd.f32 %v3031_v58, %v1212_v18  ;;  %v1385_v12 = vmax.f32 %v1353_v63, 0.0 }
 0x1dc   :  { %1800 = vmatmul.bf16.gmra.mxu2 %v2956_v29 }
 0x1dd   :  { %v1386_v25 = vmax.f32 %v1354_v48, 0.0 }
 0x1de   :  { %v1309_v33 = vpop.f32.mrf.mxu3 }
 0x1df   :  { %v1310_v54 = vadd.f32 %v1309_v33, %v1261_v41  ;;  %v1263_v28 = vpop.f32.mrf.mxu2  ;;  %v1414_v57 = vpack.c.bf16 %v1386_v25, %v1384_v51 }
 0x1e0   :  { %v1214_v19 = vpop.f32.mrf.mxu1  ;;  %v1264_v15 = vadd.f32 %v1263_v28, %v2854_v17 }
 0x1e1   :  { %v1355_v49 = vadd.f32 %v3036_v62, %v1310_v54  ;;  %1601 = vmatmul.bf16.gmra.mxu0 %v1414_v57  ;;  %v1167_v3 = vpop.f32.mrf.mxu0  ;;  %v1215_v29 = vadd.f32 %v1214_v19, %v1166_v43 }
 0x1e2   :  { %v1168_v14 = vadd.f32 %v1167_v3, %v2858_v35 }
 0x1e3   :  { %v1387_v59 = vmax.f32 %v1355_v49, 0.0  ;;  %1849 = vmatmul.bf16.gmra.mxu3 %v2962_v50  ;;  %v1356_v34 = vadd.f32 %v3031_v58, %v1215_v29 }
 0x1e5   :  { %v1415_v9 = vpack.c.bf16 %v1387_v59, %v1385_v12  ;;  %v1388_v50 = vmax.f32 %v1356_v34, 0.0 }
 0x1e6   :  { %v1312_v0 = vpop.f32.mrf.mxu3 }
 0x1e7   :  { %1650 = vmatmul.bf16.gmra.mxu1 %v1415_v9  ;;  %v1265_v31 = vpop.f32.mrf.mxu2  ;;  %v1313_v32 = vadd.f32 %v1312_v0, %v1264_v15 }
 0x1e8   :  { %v1216_v20 = vpop.f32.mrf.mxu1  ;;  %v1266_v18 = vadd.f32 %v1265_v31, %v2860_v36 }
 0x1e9   :  { %v1217_v37 = vadd.f32 %v1216_v20, %v1168_v14  ;;  %v1170_v24 = vpop.f32.mrf.mxu0  ;;  %v1357_v35 = vadd.f32 %v3036_v62, %v1313_v32 }
 0x1ea   :  { %v1171_v63 = vadd.f32 %v1170_v24, %v2864_v52 }
 0x1eb   :  { %v1358_v16 = vadd.f32 %v3031_v58, %v1217_v37  ;;  %v1389_v33 = vmax.f32 %v1357_v35, 0.0 }
 0x1ec   :  { %1805 = vmatmul.bf16.gmra.mxu2 %v2968_v30 }
 0x1ed   :  { %v1390_v38 = vmax.f32 %v1358_v16, 0.0 }
 0x1ee   :  { %v1314_v56 = vpop.f32.mrf.mxu3 }
 0x1ef   :  { %v1315_v13 = vadd.f32 %v1314_v56, %v1266_v18  ;;  %v1268_v48 = vpop.f32.mrf.mxu2  ;;  %v1416_v51 = vpack.c.bf16 %v1390_v38, %v1388_v50 }
 0x1f0   :  { %v1219_v25 = vpop.f32.mrf.mxu1  ;;  %v1269_v12 = vadd.f32 %v1268_v48, %v2866_v53 }
 0x1f1   :  { %v1359_v17 = vadd.f32 %v3036_v62, %v1315_v13  ;;  %1606 = vmatmul.bf16.gmra.mxu0 %v1416_v51  ;;  %v1172_v41 = vpop.f32.mrf.mxu0  ;;  %v1220_v30 = vadd.f32 %v1219_v25, %v1171_v63 }
 0x1f2   :  { %v1173_v57 = vadd.f32 %v1172_v41, %v2870_v7 }
 0x1f3   :  { %v1391_v54 = vmax.f32 %v1359_v17, 0.0  ;;  %1854 = vmatmul.bf16.gmra.mxu3 %v2974_v55  ;;  %v1360_v3 = vadd.f32 %v3031_v58, %v1220_v30 }
 0x1f5   :  { %v1417_v28 = vpack.c.bf16 %v1391_v54, %v1389_v33  ;;  %v1392_v55 = vmax.f32 %v1360_v3, 0.0 }
 0x1f6   :  { %v1317_v36 = vpop.f32.mrf.mxu3 }
 0x1f7   :  { %1655 = vmatmul.bf16.gmra.mxu1 %v1417_v28  ;;  %v1270_v19 = vpop.f32.mrf.mxu2  ;;  %v1318_v29 = vadd.f32 %v1317_v36, %v1269_v12 }
 0x1f8   :  { %v1221_v49 = vpop.f32.mrf.mxu1  ;;  %v1271_v0 = vadd.f32 %v1270_v19, %v2872_v8 }
 0x1f9   :  { %v1222_v43 = vadd.f32 %v1221_v49, %v1173_v57  ;;  %v1175_v59 = vpop.f32.mrf.mxu0  ;;  %v1361_v7 = vadd.f32 %v3036_v62, %v1318_v29 }
 0x1fa   :  { %v1176_v32 = vadd.f32 %v1175_v59, %v2876_v26 }
 0x1fb   :  { %v1362_v52 = vadd.f32 %v3031_v58, %v1222_v43  ;;  %v1393_v24 = vmax.f32 %v1361_v7, 0.0 }
 0x1fc   :  { %1810 = vmatmul.bf16.gmra.mxu2 %v2980_v39 }
 0x1fd   :  { %v1394_v9 = vmax.f32 %v1362_v52, 0.0 }
 0x1fe   :  { %v1319_v14 = vpop.f32.mrf.mxu3 }
 0x1ff   :  { %v1320_v31 = vadd.f32 %v1319_v14, %v1271_v0  ;;  %v1273_v20 = vpop.f32.mrf.mxu2  ;;  %v1418_v34 = vpack.c.bf16 %v1394_v9, %v1392_v55 }
 0x200   :  { %v1224_v15 = vpop.f32.mrf.mxu1  ;;  %v1274_v13 = vadd.f32 %v1273_v20, %v2878_v27 }
 0x201   :  { %v1363_v53 = vadd.f32 %v3036_v62, %v1320_v31  ;;  %1611 = vmatmul.bf16.gmra.mxu0 %v1418_v34  ;;  %v1177_v37 = vpop.f32.mrf.mxu0  ;;  %v1225_v39 = vadd.f32 %v1224_v15, %v1176_v32 }
 0x202   :  { %v1178_v38 = vadd.f32 %v1177_v37, %v2882_v45 }
 0x203   :  { %v1395_v16 = vmax.f32 %v1363_v53, 0.0  ;;  %1859 = vmatmul.bf16.gmra.mxu3 %v2986_v4  ;;  %v1364_v35 = vadd.f32 %v3031_v58, %v1225_v39 }
 0x205   :  { %v1419_v50 = vpack.c.bf16 %v1395_v16, %v1393_v24  ;;  %v1396_v4 = vmax.f32 %v1364_v35, 0.0 }
 0x206   :  { %v1322_v8 = vpop.f32.mrf.mxu3 }
 0x207   :  { %1660 = vmatmul.bf16.gmra.mxu1 %v1419_v50  ;;  %v1275_v18 = vpop.f32.mrf.mxu2  ;;  %v1323_v25 = vadd.f32 %v1322_v8, %v1274_v13 }
 0x208   :  { %v1226_v56 = vpop.f32.mrf.mxu1  ;;  %v1276_v41 = vadd.f32 %v1275_v18, %v2884_v46 }
 0x209   :  { %v1227_v48 = vadd.f32 %v1226_v56, %v1178_v38  ;;  %v1180_v51 = vpop.f32.mrf.mxu0  ;;  %v1365_v45 = vadd.f32 %v3036_v62, %v1323_v25 }
 0x20a   :  { %v1181_v19 = vadd.f32 %v1180_v51, %v2890_v10 }
 0x20b   :  { %v1366_v26 = vadd.f32 %v3031_v58, %v1227_v48  ;;  %v1397_v57 = vmax.f32 %v1365_v45, 0.0 }
 0x20c   :  { %1815 = vmatmul.bf16.gmra.mxu2 %v2992_v60 }
 0x20d   :  { %v1398_v17 = vmax.f32 %v1366_v26, 0.0 }
 0x20e   :  { %v1324_v33 = vpop.f32.mrf.mxu3 }
 0x20f   :  { %v1325_v63 = vadd.f32 %v1324_v33, %v1276_v41  ;;  %v1278_v54 = vpop.f32.mrf.mxu2  ;;  %v1420_v30 = vpack.c.bf16 %v1398_v17, %v1396_v4 }
 0x210   :  { %v1229_v28 = vpop.f32.mrf.mxu1  ;;  %v1279_v52 = vadd.f32 %v1278_v54, %v2892_v11 }
 0x211   :  { %v1367_v27 = vadd.f32 %v3036_v62, %v1325_v63  ;;  %1616 = vmatmul.bf16.gmra.mxu0 %v1420_v30  ;;  %v1182_v36 = vpop.f32.mrf.mxu0  ;;  %v1230_v60 = vadd.f32 %v1229_v28, %v1181_v19 }
 0x212   :  { %v1183_v12 = vadd.f32 %v1182_v36, %v2894_v44 }
 0x213   :  { %v1399_v49 = vmax.f32 %v1367_v27, 0.0  ;;  %1864 = vmatmul.bf16.gmra.mxu3 %v2998_v21  ;;  %v1368_v29 = vadd.f32 %v3031_v58, %v1230_v60  ;;  %v3153_v27 = vld [vmem:[#allocation16_spill] sm:$0xff]  ;;  %v3154_v60 = vld [vmem:[#allocation15_spill] sm:$0xff] }
 0x215   :  { %v1421_v3 = vpack.c.bf16 %v1399_v49, %v1397_v57  ;;  %v1400_v21 = vmax.f32 %v1368_v29, 0.0 }
 0x216   :  { %v1327_v46 = vpop.f32.mrf.mxu3 }
 0x217   :  { %1665 = vmatmul.bf16.gmra.mxu1 %v1421_v3  ;;  %v1280_v43 = vpop.f32.mrf.mxu2  ;;  %v1328_v0 = vadd.f32 %v1327_v46, %v1279_v52 }
 0x218   :  { %v1231_v59 = vpop.f32.mrf.mxu1  ;;  %v1281_v7 = vadd.f32 %v1280_v43, %v2896_v47 }
 0x219   :  { %v1232_v55 = vadd.f32 %v1231_v59, %v1183_v12  ;;  %v1185_v9 = vpop.f32.mrf.mxu0  ;;  %v1369_v44 = vadd.f32 %v3036_v62, %v1328_v0 }
 0x21a   :  { %v1186_v32 = vadd.f32 %v1185_v9, %v2902_v1 }
 0x21b   :  { %v1370_v10 = vadd.f32 %v3031_v58, %v1232_v55  ;;  %v1401_v24 = vmax.f32 %v1369_v44, 0.0 }
 0x21c   :  { %1820 = vmatmul.bf16.gmra.mxu2 %v3004_v6 }
 0x21d   :  { %v1402_v14 = vmax.f32 %v1370_v10, 0.0 }
 0x21e   :  { %v1329_v31 = vpop.f32.mrf.mxu3 }
 0x21f   :  { %v1330_v20 = vadd.f32 %v1329_v31, %v1281_v7  ;;  %v1283_v34 = vpop.f32.mrf.mxu2  ;;  %v1422_v15 = vpack.c.bf16 %v1402_v14, %v1400_v21 }
 0x220   :  { %v1234_v53 = vpop.f32.mrf.mxu1  ;;  %v1284_v56 = vadd.f32 %v1283_v34, %v2904_v2 }
 0x221   :  { %v1371_v11 = vadd.f32 %v3036_v62, %v1330_v20  ;;  %1621 = vmatmul.bf16.gmra.mxu0 %v1422_v15  ;;  %v1187_v37 = vpop.f32.mrf.mxu0  ;;  %v1235_v6 = vadd.f32 %v1234_v53, %v1186_v32 }
 0x222   :  { %v1188_v50 = vadd.f32 %v1187_v37, %v2908_v22 }
 0x223   :  { %v1403_v16 = vmax.f32 %v1371_v11, 0.0  ;;  %1869 = vmatmul.bf16.gmra.mxu3 %v3010_v40  ;;  %v1372_v18 = vadd.f32 %v3031_v58, %v1235_v6 }
 0x225   :  { %v1423_v39 = vpack.c.bf16 %v1403_v16, %v1401_v24  ;;  %v1404_v40 = vmax.f32 %v1372_v18, 0.0  ;;  %v3115_v16 = vld [vmem:[%s3148_s9] ss:$0 sm:$0xff]  ;;  %s2655_s9 = smov [#allocation10]  }
 0x226   :  { %v1332_v47 = vpop.f32.mrf.mxu3  ;;  %s1920_s30 = sshll.u32 %s2655_s9, 4  ;;  %s1921_s30 = int_to_ptr.vmem [resolvable:$true] %s1920_s30 }
 0x227   :  { %1670 = vmatmul.bf16.gmra.mxu1 %v1423_v39  ;;  %v1285_v8 = vpop.f32.mrf.mxu2  ;;  %v1333_v48 = vadd.f32 %v1332_v47, %v1284_v56 }
 0x228   :  { %v1236_v38 = vpop.f32.mrf.mxu1  ;;  %v1286_v25 = vadd.f32 %v1285_v8, %v2910_v23 }
 0x229   :  { %v1237_v35 = vadd.f32 %v1236_v38, %v1188_v50  ;;  %v1190_v13 = vpop.f32.mrf.mxu0  ;;  %v1373_v22 = vadd.f32 %v3036_v62, %v1333_v48 }
 0x22a   :  { %v1191_v63 = vadd.f32 %v1190_v13, %v2914_v5 }
 0x22b   :  { %v1374_v1 = vadd.f32 %v3031_v58, %v1237_v35  ;;  %v1405_v45 = vmax.f32 %v1373_v22, 0.0 }
 0x22c   :  { %1825 = vmatmul.bf16.gmra.mxu2 %v3016_v61 }
 0x22d   :  { %v1406_v51 = vmax.f32 %v1374_v1, 0.0 }
 0x22e   :  { %v1334_v26 = vpop.f32.mrf.mxu3 }
 0x22f   :  { %v1335_v4 = vadd.f32 %v1334_v26, %v1286_v25  ;;  %v1288_v17 = vpop.f32.mrf.mxu2  ;;  %v1424_v41 = vpack.c.bf16 %v1406_v51, %v1404_v40 }
 0x230   :  { %v1239_v33 = vpop.f32.mrf.mxu1  ;;  %v1289_v3 = vadd.f32 %v1288_v17, %v3154_v60 }
 0x231   :  { %v1375_v2 = vadd.f32 %v3036_v62, %v1335_v4  ;;  %1626 = vmatmul.bf16.gmra.mxu0 %v1424_v41  ;;  %v1192_v61 = vpop.f32.mrf.mxu0  ;;  %v1240_v30 = vadd.f32 %v1239_v33, %v1191_v63 }
 0x232   :  { %v1193_v36 = vadd.f32 %v1192_v61, %v3153_v27 }
 0x233   :  { %v1407_v54 = vmax.f32 %v1375_v2, 0.0  ;;  %1874 = vmatmul.bf16.gmra.mxu3 %v3021_v42  ;;  %v1376_v49 = vadd.f32 %v3031_v58, %v1240_v30  ;;  %v3155_v42 = vld [vmem:[#allocation17_spill] sm:$0xff] }
 0x235   :  { %v1425_v28 = vpack.c.bf16 %v1407_v54, %v1405_v45  ;;  %v1408_v43 = vmax.f32 %v1376_v49, 0.0 }
 0x236   :  { %v1337_v23 = vpop.f32.mrf.mxu3 }
 0x237   :  { %1675 = vmatmul.bf16.gmra.mxu1 %v1425_v28  ;;  %v1290_v57 = vpop.f32.mrf.mxu2  ;;  %v1338_v12 = vadd.f32 %v1337_v23, %v1289_v3 }
 0x238   :  { %v1241_v19 = vpop.f32.mrf.mxu1  ;;  %v1291_v29 = vadd.f32 %v1290_v57, %v3155_v42 }
 0x239   :  { %v1242_v46 = vadd.f32 %v1241_v19, %v1193_v36  ;;  %v1377_v55 = vadd.f32 %v3036_v62, %v1338_v12 }
 0x23b   :  { %v1378_v5 = vadd.f32 %v3031_v58, %v1242_v46  ;;  %v1409_v14 = vmax.f32 %v1377_v55, 0.0 }
 0x23d   :  { %v1410_v59 = vmax.f32 %v1378_v5, 0.0 }
 0x23e   :  { %v1339_v52 = vpop.f32.mrf.mxu3 }
 0x23f   :  { %v1340_v9 = vadd.f32 %v1339_v52, %v1291_v29  ;;  %v1791_v0 = vpop.f32.mrf.mxu2  ;;  %v1426_v10 = vpack.c.bf16 %v1410_v59, %v1408_v43 }
 0x241   :  { %v1379_v21 = vadd.f32 %v3036_v62, %v1340_v9  ;;  %1631 = vmatmul.bf16.gmra.mxu0 %v1426_v10 }
 0x243   :  { %v1411_v7 = vmax.f32 %v1379_v21, 0.0 }
 0x245   :  { %v1427_v31 = vpack.c.bf16 %v1411_v7, %v1409_v14 }
 0x246   :  { %v1840_v44 = vpop.f32.mrf.mxu3 }
 0x247   :  { %1680 = vmatmul.bf16.gmra.mxu1 %v1427_v31  ;;  %v1793_v20 = vpop.f32.mrf.mxu2 }
 0x24e   :  { %v1597_v58 = vpop.f32.mrf.mxu0  ;;  %v1842_v34 = vpop.f32.mrf.mxu3 }
 0x24f   :  { %v1796_v15 = vpop.f32.mrf.mxu2 }
 0x254   :  { %v1646_v53 = vpop.f32.mrf.mxu1 }
 0x255   :  { %v1647_v11 = vadd.f32 %v1646_v53, %v1597_v58 }
 0x256   :  { %v1599_v37 = vpop.f32.mrf.mxu0  ;;  %v1845_v24 = vpop.f32.mrf.mxu3 }
 0x257   :  { %v1792_v32 = vadd.f32 %v1791_v0, %v1647_v11  ;;  %v1798_v62 = vpop.f32.mrf.mxu2 }
 0x259   :  { %v1841_v6 = vadd.f32 %v1840_v44, %v1792_v32 }
 0x25b   :  { %v1884_v39 = vadd.f32 %v3115_v16, %v1841_v6 }
 0x25c   :  { %v1648_v47 = vpop.f32.mrf.mxu1 }
 0x25d   :  { %1900 = vst [vmem:[#allocation10] sm:$0xff] %v1884_v39  ;;  %v1649_v50 = vadd.f32 %v1648_v47, %v1599_v37 }
 0x25e   :  { %v1602_v8 = vpop.f32.mrf.mxu0  ;;  %v1847_v38 = vpop.f32.mrf.mxu3 }
 0x25f   :  { %v1794_v18 = vadd.f32 %v1793_v20, %v1649_v50  ;;  %v1801_v56 = vpop.f32.mrf.mxu2 }
 0x261   :  { %v1843_v35 = vadd.f32 %v1842_v34, %v1794_v18 }
 0x263   :  { %v1885_v13 = vadd.f32 %v3115_v16, %v1843_v35 }
 0x264   :  { %v1651_v48 = vpop.f32.mrf.mxu1 }
 0x265   :  { %1901 = vst [vmem:[#allocation10 + $0x8] sm:$0xff] %v1885_v13  ;;  %v1652_v1 = vadd.f32 %v1651_v48, %v1602_v8 }
 0x266   :  { %v1604_v40 = vpop.f32.mrf.mxu0  ;;  %v1850_v51 = vpop.f32.mrf.mxu3 }
 0x267   :  { %v1797_v25 = vadd.f32 %v1796_v15, %v1652_v1  ;;  %v1803_v22 = vpop.f32.mrf.mxu2 }
 0x269   :  { %v1846_v26 = vadd.f32 %v1845_v24, %v1797_v25 }
 0x26b   :  { %v1886_v4 = vadd.f32 %v3115_v16, %v1846_v26 }
 0x26c   :  { %v1653_v17 = vpop.f32.mrf.mxu1 }
 0x26d   :  { %1902 = vst [vmem:[#allocation10 + $0x10] sm:$0xff] %v1886_v4  ;;  %v1654_v41 = vadd.f32 %v1653_v17, %v1604_v40 }
 0x26e   :  { %v1607_v33 = vpop.f32.mrf.mxu0  ;;  %v1852_v2 = vpop.f32.mrf.mxu3 }
 0x26f   :  { %v1799_v45 = vadd.f32 %v1798_v62, %v1654_v41  ;;  %v1806_v61 = vpop.f32.mrf.mxu2 }
 0x271   :  { %v1848_v63 = vadd.f32 %v1847_v38, %v1799_v45 }
 0x273   :  { %v1887_v54 = vadd.f32 %v3115_v16, %v1848_v63 }
 0x274   :  { %v1656_v30 = vpop.f32.mrf.mxu1 }
 0x275   :  { %1903 = vst [vmem:[#allocation10 + $0x18] sm:$0xff] %v1887_v54  ;;  %v1657_v28 = vadd.f32 %v1656_v30, %v1607_v33 }
 0x276   :  { %v1609_v23 = vpop.f32.mrf.mxu0  ;;  %v1855_v27 = vpop.f32.mrf.mxu3 }
 0x277   :  { %v1802_v36 = vadd.f32 %v1801_v56, %v1657_v28  ;;  %v1808_v3 = vpop.f32.mrf.mxu2 }
 0x279   :  { %v1851_v57 = vadd.f32 %v1850_v51, %v1802_v36 }
 0x27b   :  { %v1888_v19 = vadd.f32 %v3115_v16, %v1851_v57 }
 0x27c   :  { %v1658_v49 = vpop.f32.mrf.mxu1 }
 0x27d   :  { %1904 = vst [vmem:[#allocation10 + $0x20] sm:$0xff] %v1888_v19  ;;  %v1659_v60 = vadd.f32 %v1658_v49, %v1609_v23 }
 0x27e   :  { %v1612_v46 = vpop.f32.mrf.mxu0  ;;  %v1857_v5 = vpop.f32.mrf.mxu3 }
 0x27f   :  { %v1804_v12 = vadd.f32 %v1803_v22, %v1659_v60  ;;  %v1811_v9 = vpop.f32.mrf.mxu2 }
 0x281   :  { %v1853_v43 = vadd.f32 %v1852_v2, %v1804_v12 }
 0x283   :  { %v1889_v59 = vadd.f32 %v3115_v16, %v1853_v43 }
 0x284   :  { %v1661_v42 = vpop.f32.mrf.mxu1 }
 0x285   :  { %1905 = vst [vmem:[#allocation10 + $0x28] sm:$0xff] %v1889_v59  ;;  %v1662_v29 = vadd.f32 %v1661_v42, %v1612_v46 }
 0x286   :  { %v1614_v52 = vpop.f32.mrf.mxu0  ;;  %v1860_v10 = vpop.f32.mrf.mxu3 }
 0x287   :  { %v1807_v55 = vadd.f32 %v1806_v61, %v1662_v29  ;;  %v1813_v58 = vpop.f32.mrf.mxu2 }
 0x289   :  { %v1856_v0 = vadd.f32 %v1855_v27, %v1807_v55 }
 0x28b   :  { %v1890_v21 = vadd.f32 %v3115_v16, %v1856_v0 }
 0x28c   :  { %v1663_v14 = vpop.f32.mrf.mxu1 }
 0x28d   :  { %1906 = vst [vmem:[#allocation10 + $0x30] sm:$0xff] %v1890_v21  ;;  %v1664_v7 = vadd.f32 %v1663_v14, %v1614_v52 }
 0x28e   :  { %v1617_v31 = vpop.f32.mrf.mxu0  ;;  %v1862_v15 = vpop.f32.mrf.mxu3 }
 0x28f   :  { %v1809_v44 = vadd.f32 %v1808_v3, %v1664_v7  ;;  %v1816_v6 = vpop.f32.mrf.mxu2 }
 0x291   :  { %v1858_v20 = vadd.f32 %v1857_v5, %v1809_v44 }
 0x293   :  { %v1891_v34 = vadd.f32 %v3115_v16, %v1858_v20 }
 0x294   :  { %v1666_v53 = vpop.f32.mrf.mxu1 }
 0x295   :  { %1907 = vst [vmem:[#allocation10 + $0x38] sm:$0xff] %v1891_v34  ;;  %v1667_v11 = vadd.f32 %v1666_v53, %v1617_v31 }
 0x296   :  { %v1619_v37 = vpop.f32.mrf.mxu0  ;;  %v1865_v50 = vpop.f32.mrf.mxu3 }
 0x297   :  { %v1812_v24 = vadd.f32 %v1811_v9, %v1667_v11  ;;  %v1818_v48 = vpop.f32.mrf.mxu2 }
 0x299   :  { %v1861_v32 = vadd.f32 %v1860_v10, %v1812_v24 }
 0x29b   :  { %v1892_v62 = vadd.f32 %v3115_v16, %v1861_v32 }
 0x29c   :  { %v1668_v39 = vpop.f32.mrf.mxu1 }
 0x29d   :  { %1908 = vst [vmem:[#allocation10 + $0x40] sm:$0xff] %v1892_v62  ;;  %v1669_v47 = vadd.f32 %v1668_v39, %v1619_v37 }
 0x29e   :  { %v1622_v8 = vpop.f32.mrf.mxu0  ;;  %v1867_v51 = vpop.f32.mrf.mxu3 }
 0x29f   :  { %v1814_v38 = vadd.f32 %v1813_v58, %v1669_v47  ;;  %v1821_v33 = vpop.f32.mrf.mxu2 }
 0x2a1   :  { %v1863_v18 = vadd.f32 %v1862_v15, %v1814_v38 }
 0x2a3   :  { %v1893_v56 = vadd.f32 %v3115_v16, %v1863_v18 }
 0x2a4   :  { %v1671_v35 = vpop.f32.mrf.mxu1 }
 0x2a5   :  { %1909 = vst [vmem:[#allocation10 + $0x48] sm:$0xff] %v1893_v56  ;;  %v1672_v13 = vadd.f32 %v1671_v35, %v1622_v8 }
 0x2a6   :  { %v1624_v1 = vpop.f32.mrf.mxu0  ;;  %v1870_v45 = vpop.f32.mrf.mxu3 }
 0x2a7   :  { %v1817_v40 = vadd.f32 %v1816_v6, %v1672_v13  ;;  %v1823_v27 = vpop.f32.mrf.mxu2 }
 0x2a9   :  { %v1866_v25 = vadd.f32 %v1865_v50, %v1817_v40 }
 0x2ab   :  { %v1894_v26 = vadd.f32 %v3115_v16, %v1866_v25 }
 0x2ac   :  { %v1673_v22 = vpop.f32.mrf.mxu1 }
 0x2ad   :  { %1910 = vst [vmem:[#allocation10 + $0x50] sm:$0xff] %v1894_v26  ;;  %v1674_v4 = vadd.f32 %v1673_v22, %v1624_v1 }
 0x2ae   :  { %v1627_v17 = vpop.f32.mrf.mxu0  ;;  %v1872_v57 = vpop.f32.mrf.mxu3 }
 0x2af   :  { %v1819_v41 = vadd.f32 %v1818_v48, %v1674_v4  ;;  %v1826_v5 = vpop.f32.mrf.mxu2 }
 0x2b1   :  { %v1868_v2 = vadd.f32 %v1867_v51, %v1819_v41 }
 0x2b3   :  { %v1895_v63 = vadd.f32 %v3115_v16, %v1868_v2 }
 0x2b4   :  { %v1676_v54 = vpop.f32.mrf.mxu1 }
 0x2b5   :  { %1911 = vst [vmem:[#allocation10 + $0x58] sm:$0xff] %v1895_v63  ;;  %v1677_v61 = vadd.f32 %v1676_v54, %v1627_v17 }
 0x2b6   :  { %v1629_v28 = vpop.f32.mrf.mxu0  ;;  %v1875_v42 = vpop.f32.mrf.mxu3 }
 0x2b7   :  { %v1822_v30 = vadd.f32 %v1821_v33, %v1677_v61  ;;  %v1828_v21 = vpop.f32.mrf.mxu2 }
 0x2b9   :  { %v1871_v23 = vadd.f32 %v1870_v45, %v1822_v30 }
 0x2bb   :  { %v1896_v36 = vadd.f32 %v3115_v16, %v1871_v23 }
 0x2bc   :  { %v1678_v19 = vpop.f32.mrf.mxu1 }
 0x2bd   :  { %1912 = vst [vmem:[#allocation10 + $0x60] sm:$0xff] %v1896_v36  ;;  %v1679_v49 = vadd.f32 %v1678_v19, %v1629_v28 }
 0x2be   :  { %v1632_v46 = vpop.f32.mrf.mxu0  ;;  %v1877_v7 = vpop.f32.mrf.mxu3 }
 0x2bf   :  { %v1824_v60 = vadd.f32 %v1823_v27, %v1679_v49 }
 0x2c1   :  { %v1873_v3 = vadd.f32 %v1872_v57, %v1824_v60 }
 0x2c3   :  { %v1897_v12 = vadd.f32 %v3115_v16, %v1873_v3 }
 0x2c4   :  { %v1681_v43 = vpop.f32.mrf.mxu1 }
 0x2c5   :  { %1913 = vst [vmem:[#allocation10 + $0x68] sm:$0xff] %v1897_v12  ;;  %v1682_v59 = vadd.f32 %v1681_v43, %v1632_v46 }
 0x2c6   :  { %v1634_v9 = vpop.f32.mrf.mxu0 }
 0x2c7   :  { %v1827_v29 = vadd.f32 %v1826_v5, %v1682_v59 }
 0x2c9   :  { %v1876_v52 = vadd.f32 %v1875_v42, %v1827_v29 }
 0x2cb   :  { %v1898_v55 = vadd.f32 %v3115_v16, %v1876_v52 }
 0x2cc   :  { %v1683_v0 = vpop.f32.mrf.mxu1 }
 0x2cd   :  { %1914 = vst [vmem:[#allocation10 + $0x70] sm:$0xff] %v1898_v55  ;;  %v1684_v10 = vadd.f32 %v1683_v0, %v1634_v9 }
 0x2cf   :  { %v1829_v14 = vadd.f32 %v1828_v21, %v1684_v10 }
 0x2d1   :  { %v1878_v31 = vadd.f32 %v1877_v7, %v1829_v14 }
 0x2d3   :  { %v1899_v44 = vadd.f32 %v3115_v16, %v1878_v31 }
 0x2d5   :  { %1915 = vst [vmem:[#allocation10 + $0x78] sm:$0xff] %v1899_v44 }
 0x2d6   :  { %1928 = dma.vmem_to_hbm [thread:$0]  %s1921_s30, 2048, %s1923_s13, [#allocation4], %s2648_s21, %s2648_s21, %s2649_s22  }
 0x2d7   :  { %2645 = dma.done.wait [#allocation4], 2048  }
 0x2d8   :  { %2646 = vsyncadd [#allocation4], 4294965248 }
 0x2d9   :  { %1933 = vsyncpa [#allocation3], 1 }
 0x2da   :  { %1934 = vsyncpa [#allocation6], 1 }
 0x2db   :  { %1935 = vsyncpa [#allocation9], 1 }
 0x2dc   :  { %1936 = vsyncpa [#allocation4], 1 }

</bundles_post_ra>
